<compile_context>
chip_gen: v7x
topology: tpu7x:2x2x1
jax: 0.10.0
libtpu: 0.0.40
codegen_flags: <defaults>
</compile_context>

<pallas_src>
import jax
import jax.numpy as jnp
from jax import lax
from jax.experimental import pallas as pl
from jax.experimental.pallas import tpu as pltpu

Cin = 4
Cout = 64
H, W = 22, 16               # conv preserves size (pad=1); 2x2 pool halves -> 11 x 8
Hp, Wp = H // 2, W // 2     # 11, 8
HW = Hp * Wp                # 88 pooled spatial positions
KTAP = 4                    # the 4 offsets of the 2x2 max-pool window
PATCH = 9 * Cin             # 36 im2col features per conv output position
K_FLAT = Cout * HW          # 5632 == flattened_size
MAX_BATCH_TILE = 64         # per-step VMEM ~26 MB incl. buffers -> safe on v7x too


# ---------------- fused Pallas kernel ----------------

def fused_conv_pool_fc_kernel(p_ref, wc_ref, bc_ref, wf_ref, bf_ref, o_ref):
    # p_ref : (4, 88, bt, 36) bf16   im2col patches, tap-major / pooled-pos / batch
    # wc_ref: (36, 64)        bf16   conv weight (patch-feature, out-channel)
    # bc_ref: (1, 64)         f32    conv bias
    # wf_ref: (88, 64, 128)   bf16   FC weight, per pooled position, classes padded
    # bf_ref: (1, 128)        f32    FC bias (padded)
    # o_ref : (bt, 128)       f32    lane-dense logits block
    bt = p_ref.shape[2]
    wc = wc_ref[...]

    # Tap-wise conv matmuls with a running max == 2x2 max-pool (same total MXU rows,
    # 4x smaller live f32 intermediate than one merged (352*bt, 36) matmul).
    acc = jnp.dot(p_ref[0].reshape(HW * bt, PATCH), wc,
                  preferred_element_type=jnp.float32)
    for t in range(1, KTAP):                                   # static unroll (4)
        acc = jnp.maximum(
            acc, jnp.dot(p_ref[t].reshape(HW * bt, PATCH), wc,
                         preferred_element_type=jnp.float32))

    # Bias + ReLU once, AFTER the tap max (exact: bias is tap-invariant, ReLU monotone).
    pooled = jnp.maximum(acc + bc_ref[...], 0.0).astype(jnp.bfloat16)  # (88*bt, 64)
    pooled = pooled.reshape(HW, bt, Cout)      # leading-dim split only (bt % 8 == 0)

    # Fully-fused FC: batched matmul over the 88 pooled positions (leading batch dim
    # on both operands -> native Mosaic lowering), then reduce over positions.
    part = jnp.einsum("hbc,hck->hbk", pooled, wf_ref[...],
                      preferred_element_type=jnp.float32)       # (88, bt, 128) f32
    o_ref[...] = jnp.sum(part, axis=0) + bf_ref[...]


# ---------------- parameter prep (hoisted: run ONCE, not per forward) ----------------

def prepare_params(params):
    """Re-layout PyTorch-layout parameters for the kernel (pure transposes/casts)."""
    conv_w, conv_b, fc_w, fc_b = params
    num_classes = fc_w.shape[0]
    ncp = ((num_classes + 127) // 128) * 128            # lane-dense padded class count

    # conv weight: (O, I, KH, KW) -> (KH, KW, I, O) -> (36, 64), feature = (dh*3+dw)*4+c
    w_conv = jnp.transpose(conv_w, (2, 3, 1, 0)).reshape(PATCH, Cout).astype(jnp.bfloat16)
    b_conv = conv_b.reshape(1, Cout).astype(jnp.float32)

    # FC weight: PyTorch flattens pooled NCHW as c*88 + hw; our pooled tensor is
    # (hw, b, c), so we need w_fc3[hw, c, k] = fc_w[k, c*88 + hw], classes padded to 128.
    w_fc3 = jnp.transpose(fc_w.reshape(num_classes, Cout, HW), (2, 1, 0))   # (88, 64, K)
    w_fc3 = jnp.pad(w_fc3, ((0, 0), (0, 0), (0, ncp - num_classes))).astype(jnp.bfloat16)
    b_fc = jnp.pad(fc_b, (0, ncp - num_classes)).reshape(1, ncp).astype(jnp.float32)
    return w_conv, b_conv, w_fc3, b_fc


# ---------------- forward ----------------

def my_nn_forward(x_nchw, prep, num_classes):
    w_conv, b_conv, w_fc3, b_fc = prep
    n = x_nchw.shape[0]
    ncp = w_fc3.shape[2]

    # Batch tile: multiple of 8 (keeps in-kernel leading-dim reshapes layout-trivial),
    # capped at 64 so the block + pipeline buffers fit v7x's 64 MiB VMEM comfortably.
    n8 = ((n + 7) // 8) * 8
    bt = min(MAX_BATCH_TILE, n8)
    n_pad = pl.cdiv(n, bt) * bt

    # im2col via 9 static shifted slices (dense, bandwidth-friendly; no gather).
    # NOTE: input is cast to bf16 here, so the conv loses input precision (not just
    # matmul precision) -- acceptable for inference, checked against f32 reference.
    xp = jnp.pad(jnp.transpose(x_nchw, (0, 2, 3, 1)).astype(jnp.bfloat16),
                 ((0, 0), (1, 1), (1, 1), (0, 0)))                    # (n, 24, 18, 4)
    slabs = [xp[:, dh:dh + H, dw:dw + W, :] for dh in range(3) for dw in range(3)]
    p = jnp.stack(slabs, axis=-2).reshape(n, H, W, PATCH)             # (n, 22, 16, 36)
    # split conv positions into (pooled position, pool tap) and make the layout
    # tap-major / hw / batch / feature so the kernel's reshapes are leading-dim only.
    p = p.reshape(n, Hp, 2, Wp, 2, PATCH)
    p = jnp.transpose(p, (2, 4, 1, 3, 0, 5)).reshape(KTAP, HW, n, PATCH)
    if n_pad != n:
        p = jnp.pad(p, ((0, 0), (0, 0), (0, n_pad - n), (0, 0)))

    grid = (n_pad // bt,)
    cparams = pltpu.CompilerParams(dimension_semantics=("parallel",),
                                   vmem_limit_bytes=48 * 1024 * 1024)

    out = pl.pallas_call(
        fused_conv_pool_fc_kernel,
        out_shape=jax.ShapeDtypeStruct((n_pad, ncp), jnp.float32),
        grid=grid,
        in_specs=[
            pl.BlockSpec((KTAP, HW, bt, PATCH), lambda i: (0, 0, i, 0)),
            pl.BlockSpec((PATCH, Cout), lambda i: (0, 0)),
            pl.BlockSpec((1, Cout), lambda i: (0, 0)),
            pl.BlockSpec((HW, Cout, ncp), lambda i: (0, 0, 0)),
            pl.BlockSpec((1, ncp), lambda i: (0, 0)),
        ],
        out_specs=pl.BlockSpec((bt, ncp), lambda i: (i, 0)),
        compiler_params=cparams,
        cost_estimate=pl.CostEstimate(
            flops=2 * n_pad * (KTAP * HW * PATCH * Cout + HW * Cout * ncp),
            transcendentals=0,
            bytes_accessed=(n_pad * KTAP * HW * PATCH * 2
                            + PATCH * Cout * 2 + HW * Cout * ncp * 2
                            + (Cout + ncp) * 4 + n_pad * ncp * 4)),
    )(p, w_conv, b_conv, w_fc3, b_fc)

    return out[:n, :num_classes]


# ---------------- pure-XLA f32 reference (correctness check) ----------------

def reference_forward(x_nchw, params):
    conv_w, conv_b, fc_w, fc_b = params
    y = lax.conv_general_dilated(x_nchw, conv_w, (1, 1), ((1, 1), (1, 1)),
                                 dimension_numbers=("NCHW", "OIHW", "NCHW"))
    y = y + conv_b.reshape(1, Cout, 1, 1)
    y = jnp.maximum(y, 0.0)
    y = lax.reduce_window(y, -jnp.inf, lax.max, (1, 1, 2, 2), (1, 1, 2, 2), "VALID")
    y = y.reshape(y.shape[0], -1)
    return y @ fc_w.T + fc_b


if __name__ == "__main__":
    batch, num_classes = 2, 10
    # Note: the module's hidden_size arg is unused in its forward; dropout_rate only
    # matters in training mode.  Spatial size must be 22x16 (flattened_size = 64*11*8).
    key = jax.random.PRNGKey(0)
    kx, kw1, kb1, kw2, kb2 = jax.random.split(key, 5)
    x = jax.random.normal(kx, (batch, Cin, H, W), jnp.float32)          # NCHW
    conv_w = 0.1 * jax.random.normal(kw1, (Cout, Cin, 3, 3), jnp.float32)
    conv_b = 0.1 * jax.random.normal(kb1, (Cout,), jnp.float32)
    fc_w = 0.02 * jax.random.normal(kw2, (num_classes, K_FLAT), jnp.float32)
    fc_b = 0.02 * jax.random.normal(kb2, (num_classes,), jnp.float32)
    params = (conv_w, conv_b, fc_w, fc_b)

    prep = prepare_params(params)          # one-time weight re-layout (hoisted)
    fwd = jax.jit(my_nn_forward, static_argnums=(2,))

    out = jax.block_until_ready(fwd(x, prep, num_classes))
    ref = jax.block_until_ready(reference_forward(x, params))
    assert out.shape == (batch, num_classes)
    # Loose tolerance: kernel uses bf16 operands (f32 accumulation) incl. the input
    # cast, while the reference is pure f32; observed error ~1e-2 on O(1) outputs.
    assert jnp.allclose(out, ref, atol=1e-1, rtol=1e-1), "mismatch vs XLA reference"
    print("KERNEL_OK")
</pallas_src>

<mosaic_0001>
module attributes {stable_mosaic.version = 11 : i64} {
  func.func @fused_conv_pool_fc_kernel(%arg0: i32, %arg1: memref<4x88x8x36xbf16, #tpu.memory_space<vmem>>, %arg2: memref<36x64xbf16, #tpu.memory_space<vmem>>, %arg3: memref<1x64xf32, #tpu.memory_space<vmem>>, %arg4: memref<88x64x128xbf16, #tpu.memory_space<vmem>>, %arg5: memref<1x128xf32, #tpu.memory_space<vmem>>, %arg6: memref<8x128xf32, #tpu.memory_space<vmem>>) attributes {dimension_semantics = [#tpu.dimension_semantics<parallel>], iteration_bounds = array<i64: 1>, scalar_prefetch = 0 : i64, scratch_operands = 0 : i64, tpu.core_type = #tpu.core_type<tc>, window_params = [{transform_indices = @transform_0, window_bounds = array<i64: 4, 88, 8, 36>}, {pipeline_mode = #tpu.pipeline_mode<synchronous>, transform_indices = @transform_1, window_bounds = array<i64: 36, 64>}, {pipeline_mode = #tpu.pipeline_mode<synchronous>, transform_indices = @transform_2, window_bounds = array<i64: 1, 64>}, {pipeline_mode = #tpu.pipeline_mode<synchronous>, transform_indices = @transform_3, window_bounds = array<i64: 88, 64, 128>}, {pipeline_mode = #tpu.pipeline_mode<synchronous>, transform_indices = @transform_4, window_bounds = array<i64: 1, 128>}, {transform_indices = @transform_5, window_bounds = array<i64: 8, 128>}]} {
    %c0 = arith.constant 0 : index
    %c0_0 = arith.constant 0 : index
    %0 = vector.load %arg2[%c0, %c0_0] : memref<36x64xbf16, #tpu.memory_space<vmem>>, vector<36x64xbf16>
    %c0_1 = arith.constant 0 : index
    %c0_2 = arith.constant 0 : index
    %c0_3 = arith.constant 0 : index
    %c0_4 = arith.constant 0 : index
    %1 = vector.load %arg1[%c0_1, %c0_2, %c0_3, %c0_4] : memref<4x88x8x36xbf16, #tpu.memory_space<vmem>>, vector<1x88x8x36xbf16>
    %2 = vector.shape_cast %1 : vector<1x88x8x36xbf16> to vector<88x8x36xbf16>
    %3 = vector.shape_cast %2 : vector<88x8x36xbf16> to vector<704x36xbf16>
    %cst = arith.constant dense<0.000000e+00> : vector<704x64xf32>
    %4 = tpu.matmul %3, %0, %cst {dimension_numbers = #tpu.dot_dimension_numbers<[1], [0], [0], [1], [0, 0, 1, 1], [], []>} : vector<704x36xbf16>, vector<36x64xbf16>, vector<704x64xf32> -> vector<704x64xf32>
    %c1 = arith.constant 1 : index
    %c0_5 = arith.constant 0 : index
    %c0_6 = arith.constant 0 : index
    %c0_7 = arith.constant 0 : index
    %5 = vector.load %arg1[%c1, %c0_5, %c0_6, %c0_7] : memref<4x88x8x36xbf16, #tpu.memory_space<vmem>>, vector<1x88x8x36xbf16>
    %6 = vector.shape_cast %5 : vector<1x88x8x36xbf16> to vector<88x8x36xbf16>
    %7 = vector.shape_cast %6 : vector<88x8x36xbf16> to vector<704x36xbf16>
    %cst_8 = arith.constant dense<0.000000e+00> : vector<704x64xf32>
    %8 = tpu.matmul %7, %0, %cst_8 {dimension_numbers = #tpu.dot_dimension_numbers<[1], [0], [0], [1], [0, 0, 1, 1], [], []>} : vector<704x36xbf16>, vector<36x64xbf16>, vector<704x64xf32> -> vector<704x64xf32>
    %9 = arith.maximumf %4, %8 : vector<704x64xf32>
    %c2 = arith.constant 2 : index
    %c0_9 = arith.constant 0 : index
    %c0_10 = arith.constant 0 : index
    %c0_11 = arith.constant 0 : index
    %10 = vector.load %arg1[%c2, %c0_9, %c0_10, %c0_11] : memref<4x88x8x36xbf16, #tpu.memory_space<vmem>>, vector<1x88x8x36xbf16>
    %11 = vector.shape_cast %10 : vector<1x88x8x36xbf16> to vector<88x8x36xbf16>
    %12 = vector.shape_cast %11 : vector<88x8x36xbf16> to vector<704x36xbf16>
    %cst_12 = arith.constant dense<0.000000e+00> : vector<704x64xf32>
    %13 = tpu.matmul %12, %0, %cst_12 {dimension_numbers = #tpu.dot_dimension_numbers<[1], [0], [0], [1], [0, 0, 1, 1], [], []>} : vector<704x36xbf16>, vector<36x64xbf16>, vector<704x64xf32> -> vector<704x64xf32>
    %14 = arith.maximumf %9, %13 : vector<704x64xf32>
    %c3 = arith.constant 3 : index
    %c0_13 = arith.constant 0 : index
    %c0_14 = arith.constant 0 : index
    %c0_15 = arith.constant 0 : index
    %15 = vector.load %arg1[%c3, %c0_13, %c0_14, %c0_15] : memref<4x88x8x36xbf16, #tpu.memory_space<vmem>>, vector<1x88x8x36xbf16>
    %16 = vector.shape_cast %15 : vector<1x88x8x36xbf16> to vector<88x8x36xbf16>
    %17 = vector.shape_cast %16 : vector<88x8x36xbf16> to vector<704x36xbf16>
    %cst_16 = arith.constant dense<0.000000e+00> : vector<704x64xf32>
    %18 = tpu.matmul %17, %0, %cst_16 {dimension_numbers = #tpu.dot_dimension_numbers<[1], [0], [0], [1], [0, 0, 1, 1], [], []>} : vector<704x36xbf16>, vector<36x64xbf16>, vector<704x64xf32> -> vector<704x64xf32>
    %19 = arith.maximumf %14, %18 : vector<704x64xf32>
    %c0_17 = arith.constant 0 : index
    %c0_18 = arith.constant 0 : index
    %20 = vector.load %arg3[%c0_17, %c0_18] : memref<1x64xf32, #tpu.memory_space<vmem>>, vector<1x64xf32>
    %21 = vector.broadcast %20 : vector<1x64xf32> to vector<704x64xf32>
    %22 = arith.addf %19, %21 : vector<704x64xf32>
    %cst_19 = arith.constant 0.000000e+00 : f32
    %23 = vector.broadcast %cst_19 : f32 to vector<704x64xf32>
    %24 = arith.maximumf %22, %23 : vector<704x64xf32>
    %25 = arith.truncf %24 : vector<704x64xf32> to vector<704x64xbf16>
    %26 = vector.shape_cast %25 : vector<704x64xbf16> to vector<88x8x64xbf16>
    %c0_20 = arith.constant 0 : index
    %c0_21 = arith.constant 0 : index
    %c0_22 = arith.constant 0 : index
    %27 = vector.load %arg4[%c0_20, %c0_21, %c0_22] : memref<88x64x128xbf16, #tpu.memory_space<vmem>>, vector<88x64x128xbf16>
    "tpu.trace_start"() <{level = 10 : i32, message = "hbc,hck->hbk"}> : () -> ()
    %cst_23 = arith.constant dense<0.000000e+00> : vector<88x8x128xf32>
    %28 = tpu.matmul %26, %27, %cst_23 {dimension_numbers = #tpu.dot_dimension_numbers<[2], [1], [1], [2], [0, 0, 0, 1, 1, 2], [0], [0]>} : vector<88x8x64xbf16>, vector<88x64x128xbf16>, vector<88x8x128xf32> -> vector<88x8x128xf32>
    "tpu.trace_stop"() : () -> ()
    %cst_24 = arith.constant dense<0.000000e+00> : vector<8x128xf32>
    %29 = vector.multi_reduction <add>, %28, %cst_24 [0] : vector<88x8x128xf32> to vector<8x128xf32>
    %c0_25 = arith.constant 0 : index
    %c0_26 = arith.constant 0 : index
    %30 = vector.load %arg5[%c0_25, %c0_26] : memref<1x128xf32, #tpu.memory_space<vmem>>, vector<1x128xf32>
    %31 = vector.broadcast %30 : vector<1x128xf32> to vector<8x128xf32>
    %32 = arith.addf %29, %31 : vector<8x128xf32>
    %c0_27 = arith.constant 0 : index
    %c0_28 = arith.constant 0 : index
    %33 = vector.load %arg6[%c0_27, %c0_28] : memref<8x128xf32, #tpu.memory_space<vmem>>, vector<8x128xf32>
    tpu.vector_store %arg6[%c0_27, %c0_28], %32 {strides = array<i32>} : memref<8x128xf32, #tpu.memory_space<vmem>>, vector<8x128xf32>,
    return
  }
  func.func @transform_0(%arg0: i32) -> (i32, i32, i32, i32) {
    %c0_i32 = arith.constant 0 : i32
    %c0_i32_0 = arith.constant 0 : i32
    %c0_i32_1 = arith.constant 0 : i32
    %c0_i32_2 = arith.constant 0 : i32
    return %c0_i32, %c0_i32_0, %arg0, %c0_i32_1 : i32, i32, i32, i32
  }
  func.func @transform_1(%arg0: i32) -> (i32, i32) {
    %c0_i32 = arith.constant 0 : i32
    %c0_i32_0 = arith.constant 0 : i32
    %c0_i32_1 = arith.constant 0 : i32
    return %c0_i32, %c0_i32_0 : i32, i32
  }
  func.func @transform_2(%arg0: i32) -> (i32, i32) {
    %c0_i32 = arith.constant 0 : i32
    %c0_i32_0 = arith.constant 0 : i32
    %c0_i32_1 = arith.constant 0 : i32
    return %c0_i32, %c0_i32_0 : i32, i32
  }
  func.func @transform_3(%arg0: i32) -> (i32, i32, i32) {
    %c0_i32 = arith.constant 0 : i32
    %c0_i32_0 = arith.constant 0 : i32
    %c0_i32_1 = arith.constant 0 : i32
    %c0_i32_2 = arith.constant 0 : i32
    return %c0_i32, %c0_i32_0, %c0_i32_1 : i32, i32, i32
  }
  func.func @transform_4(%arg0: i32) -> (i32, i32) {
    %c0_i32 = arith.constant 0 : i32
    %c0_i32_0 = arith.constant 0 : i32
    %c0_i32_1 = arith.constant 0 : i32
    return %c0_i32, %c0_i32_0 : i32, i32
  }
  func.func @transform_5(%arg0: i32) -> (i32, i32) {
    %c0_i32 = arith.constant 0 : i32
    %c0_i32_0 = arith.constant 0 : i32
    return %arg0, %c0_i32 : i32, i32
  }
}

</mosaic_0001>

<bundles_post_ra>
// kernel: my_nn_forward.1
= control target key start
LH: loop header
LB: loop body
LE: loop exit
PB: predicated region body
PF: predicated region fallthrough
CT: control target
= control target key end

     0   :  { %vm349_vm0 = vcmask 293888   ;;  %vm482_vm1 = vcmask 1041408   ;;  %v18697_v59 = vmov 0.0   ;;  %vm14600_vm2 = vmmov 0   ;;  %s18691_s1 = inlined_call_operand.vmem [shape: bf16[36,64], index: 1, kind: input, shape index: {}]   ;;  %s18692_s0 = inlined_call_operand.vmem [shape: bf16[4,88,8,36], index: 0, kind: input, shape index: {}]   ;;  %s18693_s3 = inlined_call_operand.vmem [shape: bf16[88,64,128], index: 3, kind: input, shape index: {}]   ;;  %s18694_s2 = inlined_call_operand.vmem [shape: f32[1,64], index: 2, kind: input, shape index: {}]   ;;  %s18695_s4 = inlined_call_operand.vmem [shape: f32[1,128], index: 4, kind: input, shape index: {}]   ;;  %s18696_s5 = inlined_call_operand.vmem [shape: f32[8,128], index: 5, kind: output, shape index: {}]  }
   0x1   :  { %v14064_v0 = vld [vmem:[%s18691_s1] sm:$0xff]   ;;  %v14065_v1 = vld [vmem:[%s18691_s1 + $0x8] sm:$0xff]   ;;  %v14066_v2 = vld [vmem:[%s18691_s1 + $0x10] ss:$0 sps:$4 sm:$0x33]   ;;  %vm4788_vm3 = vcmask 523264  }
   0x2   :  { %12626 = vmatprep.subr.bf16.mxu0 %v14064_v0  ;;  %12720 = vmatprep.subr.bf16.mxu1 %v14064_v0  ;;  %v14067_v3 = vld [vmem:[%s18692_s0] sm:$0xff]   ;;  %v484_v5 = vsel %vm482_vm1, %v14066_v2, 0  ;;  %v14069_v6 = vld [vmem:[%s18692_s0 + $0x8] sm:$0xff]   ;;  %v14071_v8 = vld [vmem:[%s18692_s0 + $0x10] sm:$0xff]  }
   0x3   :  { %12627 = vmatpush3.bf16.msra.mxu0 %v14064_v0  ;;  %12721 = vmatpush3.bf16.msra.mxu1 %v14064_v0  ;;  %v14068_v4 = vld [vmem:[%s18692_s0 + $0x160] sm:$0xff]   ;;  %v14070_v7 = vld [vmem:[%s18692_s0 + $0x168] sm:$0xff]   ;;  %v14072_v9 = vld [vmem:[%s18692_s0 + $0x170] sm:$0xff]  }
   0x4   :  { %12628 = vmatprep.subr.bf16.mxu0 %v14065_v1  ;;  %12722 = vmatprep.subr.bf16.mxu1 %v14065_v1  ;;  %v14073_v10 = vld [vmem:[%s18692_s0 + $0x18] sm:$0xff]   ;;  %v14075_v12 = vld [vmem:[%s18692_s0 + $0x20] sm:$0xff]   ;;  %v14077_v14 = vld [vmem:[%s18692_s0 + $0x28] sm:$0xff]  }
   0x5   :  { %12632 = vmatprep.mubr.msk.bf16.mxu0 %vm349_vm0, %v14067_v3  ;;  %12726 = vmatprep.mubr.msk.bf16.mxu1 %vm349_vm0, %v14068_v4  ;;  %v14074_v11 = vld [vmem:[%s18692_s0 + $0x178] sm:$0xff]   ;;  %v14076_v13 = vld [vmem:[%s18692_s0 + $0x180] sm:$0xff]   ;;  %v14078_v15 = vld [vmem:[%s18692_s0 + $0x188] sm:$0xff]  }
   0x6   :  { %v14079_v16 = vld [vmem:[%s18692_s0 + $0x30] sm:$0xff]   ;;  %v14081_v18 = vld [vmem:[%s18692_s0 + $0x38] sm:$0xff]   ;;  %v14083_v20 = vld [vmem:[%s18692_s0 + $0x40] sm:$0xff]  }
   0x7   :  { %12629 = vmatpush3.bf16.msra.mxu0 %v14065_v1  ;;  %12723 = vmatpush3.bf16.msra.mxu1 %v14065_v1  ;;  %v14080_v17 = vld [vmem:[%s18692_s0 + $0x190] sm:$0xff]   ;;  %v14082_v19 = vld [vmem:[%s18692_s0 + $0x198] sm:$0xff]   ;;  %v14084_v21 = vld [vmem:[%s18692_s0 + $0x1a0] sm:$0xff]  }
   0x8   :  { %14058 = vmatprep.subr.msk.bf16.mxu0 %vm482_vm1, %v14066_v2  ;;  %14059 = vmatprep.subr.msk.bf16.mxu1 %vm482_vm1, %v14066_v2  ;;  %v14085_v22 = vld [vmem:[%s18692_s0 + $0x48] sm:$0xff]   ;;  %v14087_v24 = vld [vmem:[%s18692_s0 + $0x50] sm:$0xff]   ;;  %v14089_v26 = vld [vmem:[%s18692_s0 + $0x58] sm:$0xff]  }
   0x9   :  { %v14086_v23 = vld [vmem:[%s18692_s0 + $0x1a8] sm:$0xff]   ;;  %v14088_v25 = vld [vmem:[%s18692_s0 + $0x1b0] sm:$0xff]   ;;  %v14090_v27 = vld [vmem:[%s18692_s0 + $0x1b8] sm:$0xff]  }
   0xa   :  { %v14091_v28 = vld [vmem:[%s18692_s0 + $0x60] sm:$0xff]   ;;  %v14093_v30 = vld [vmem:[%s18692_s0 + $0x68] sm:$0xff]   ;;  %v14095_v32 = vld [vmem:[%s18692_s0 + $0x70] sm:$0xff]  }
   0xb   :  { %12631 = vmatpush3.bf16.msra.mxu0 %v484_v5  ;;  %12725 = vmatpush3.bf16.msra.mxu1 %v484_v5  ;;  %v14092_v29 = vld [vmem:[%s18692_s0 + $0x1c0] sm:$0xff]   ;;  %v14094_v31 = vld [vmem:[%s18692_s0 + $0x1c8] sm:$0xff]   ;;  %v14096_v33 = vld [vmem:[%s18692_s0 + $0x1d0] sm:$0xff]  }
   0xc   :  { %12814 = vmatprep.subr.bf16.mxu0 %v14064_v0  ;;  %12908 = vmatprep.subr.bf16.mxu1 %v14064_v0  ;;  %v14097_v34 = vld [vmem:[%s18692_s0 + $0x78] sm:$0xff]   ;;  %v14099_v36 = vld [vmem:[%s18692_s0 + $0x80] sm:$0xff]   ;;  %v14101_v38 = vld [vmem:[%s18692_s0 + $0x88] sm:$0xff]  }
   0xd   :  { %v14098_v35 = vld [vmem:[%s18692_s0 + $0x1d8] sm:$0xff]   ;;  %v14100_v37 = vld [vmem:[%s18692_s0 + $0x1e0] sm:$0xff]   ;;  %v14102_v39 = vld [vmem:[%s18692_s0 + $0x1e8] sm:$0xff]  }
   0xe   :  { %12633 = vmatmul.mubr.msk.bf16.vlgmr.msra.gmra.mrb[0].mxu0 %vm349_vm0, %v14069_v6  ;;  %12727 = vmatmul.mubr.msk.bf16.vlgmr.msra.gmra.mrb[0].mxu1 %vm349_vm0, %v14070_v7  ;;  %v14103_v40 = vld [vmem:[%s18692_s0 + $0x90] sm:$0xff]   ;;  %v14105_v42 = vld [vmem:[%s18692_s0 + $0x98] sm:$0xff]   ;;  %v14107_v44 = vld [vmem:[%s18692_s0 + $0xa0] sm:$0xff]  }
   0xf   :  { %12815 = vmatpush3.bf16.msra.mxu0 %v14064_v0  ;;  %12909 = vmatpush3.bf16.msra.mxu1 %v14064_v0  ;;  %v14104_v41 = vld [vmem:[%s18692_s0 + $0x1f0] sm:$0xff]   ;;  %v14106_v43 = vld [vmem:[%s18692_s0 + $0x1f8] sm:$0xff]   ;;  %v14108_v45 = vld [vmem:[%s18692_s0 + $0x200] sm:$0xff]  }
  0x10   :  { %12636 = vmatprep.mubr.msk.bf16.mxu0 %vm349_vm0, %v14071_v8  ;;  %12730 = vmatprep.mubr.msk.bf16.mxu1 %vm349_vm0, %v14072_v9  ;;  %v14109_v46 = vld [vmem:[%s18692_s0 + $0xa8] sm:$0xff]   ;;  %v14111_v48 = vld [vmem:[%s18692_s0 + $0xb0] sm:$0xff]   ;;  %v14113_v50 = vld [vmem:[%s18692_s0 + $0xb8] sm:$0xff]  }
  0x11   :  { %12816 = vmatprep.subr.bf16.mxu0 %v14065_v1  ;;  %12910 = vmatprep.subr.bf16.mxu1 %v14065_v1  ;;  %v14110_v47 = vld [vmem:[%s18692_s0 + $0x208] sm:$0xff]   ;;  %v14112_v49 = vld [vmem:[%s18692_s0 + $0x210] sm:$0xff]   ;;  %v14114_v51 = vld [vmem:[%s18692_s0 + $0x218] sm:$0xff]  }
  0x12   :  { %v14115_v52 = vld [vmem:[%s18692_s0 + $0xc0] sm:$0xff]   ;;  %v14117_v54 = vld [vmem:[%s18692_s0 + $0xc8] sm:$0xff]   ;;  %v14119_v56 = vld [vmem:[%s18692_s0 + $0xd0] sm:$0xff]  }
  0x13   :  { %12817 = vmatpush3.bf16.msra.mxu0 %v14065_v1  ;;  %12911 = vmatpush3.bf16.msra.mxu1 %v14065_v1  ;;  %v14116_v53 = vld [vmem:[%s18692_s0 + $0x220] sm:$0xff]   ;;  %v14118_v55 = vld [vmem:[%s18692_s0 + $0x228] sm:$0xff]   ;;  %v14120_v57 = vld [vmem:[%s18692_s0 + $0x230] sm:$0xff]  }
  0x14   :  { %14060 = vmatprep.subr.msk.bf16.mxu0 %vm482_vm1, %v14066_v2  ;;  %14061 = vmatprep.subr.msk.bf16.mxu1 %vm482_vm1, %v14066_v2  ;;  %v14121_v58 = vld [vmem:[%s18692_s0 + $0xd8] sm:$0xff]   ;;  %v14123_v61 = vld [vmem:[%s18692_s0 + $0xe0] sm:$0xff]   ;;  %v14125_v63 = vld [vmem:[%s18692_s0 + $0xe8] sm:$0xff]  }
  0x15   :  { %v14122_v60 = vld [vmem:[%s18692_s0 + $0x238] sm:$0xff]   ;;  %v14124_v62 = vld [vmem:[%s18692_s0 + $0x240] sm:$0xff]   ;;  %v14126_v0 = vld [vmem:[%s18692_s0 + $0x248] sm:$0xff]  }
  0x16   :  { %12637 = vmatmul.mubr.msk.bf16.gmra.mrb[4].mxu0 %vm349_vm0, %v14073_v10  ;;  %12731 = vmatmul.mubr.msk.bf16.gmra.mrb[4].mxu1 %vm349_vm0, %v14074_v11  ;;  %v14127_v1 = vld [vmem:[%s18692_s0 + $0xf0] sm:$0xff]   ;;  %v14129_v3 = vld [vmem:[%s18692_s0 + $0xf8] sm:$0xff]   ;;  %v14132_v6 = vld [vmem:[%s18692_s0 + $0x260] sm:$0xff]  }
  0x17   :  { %12640 = vmatprep.mubr.msk.bf16.mxu0 %vm349_vm0, %v14075_v12  ;;  %12734 = vmatprep.mubr.msk.bf16.mxu1 %vm349_vm0, %v14076_v13  ;;  %v14128_v2 = vld [vmem:[%s18692_s0 + $0x250] sm:$0xff]   ;;  %v14130_v4 = vld [vmem:[%s18692_s0 + $0x258] sm:$0xff]   ;;  %v14133_v7 = vld [vmem:[%s18692_s0 + $0x108] sm:$0xff]  }
  0x18   :  { %12819 = vmatpush3.bf16.msra.mxu0 %v484_v5  ;;  %12913 = vmatpush3.bf16.msra.mxu1 %v484_v5  ;;  %v14131_v5 = vld [vmem:[%s18692_s0 + $0x100] sm:$0xff]   ;;  %v14134_v8 = vld [vmem:[%s18692_s0 + $0x268] sm:$0xff]   ;;  %v14135_v9 = vld [vmem:[%s18692_s0 + $0x110] sm:$0xff]  }
  0x19   :  { %13002 = vmatprep.subr.bf16.mxu0 %v18697_v59  ;;  %13014 = vmatprep.subr.bf16.mxu1 %v18697_v59  ;;  %v14136_v10 = vld [vmem:[%s18692_s0 + $0x270] sm:$0xff]   ;;  %v14137_v11 = vld [vmem:[%s18692_s0 + $0x118] sm:$0xff]   ;;  %v14139_v13 = vld [vmem:[%s18692_s0 + $0x120] sm:$0xff]  }
  0x1a   :  { %v14138_v12 = vld [vmem:[%s18692_s0 + $0x278] sm:$0xff]  }
  0x1e   :  { %12641 = vmatmul.mubr.msk.bf16.gmra.mrb[8].mxu0 %vm349_vm0, %v14077_v14  ;;  %12735 = vmatmul.mubr.msk.bf16.gmra.mrb[8].mxu1 %vm349_vm0, %v14078_v15  ;;  %v14140_v14 = vld [vmem:[%s18692_s0 + $0x280] sm:$0xff]   ;;  %v14141_v15 = vld [vmem:[%s18692_s0 + $0x128] sm:$0xff]  }
  0x1f   :  { %12644 = vmatprep.mubr.msk.bf16.mxu0 %vm349_vm0, %v14079_v16  ;;  %12738 = vmatprep.mubr.msk.bf16.mxu1 %vm349_vm0, %v14080_v17  ;;  %v14142_v16 = vld [vmem:[%s18692_s0 + $0x288] sm:$0xff]   ;;  %v14143_v17 = vld [vmem:[%s18692_s0 + $0x130] sm:$0xff]  }
  0x26   :  { %12645 = vmatmul.mubr.msk.bf16.gmra.mrb[12].mxu0 %vm349_vm0, %v14081_v18  ;;  %12739 = vmatmul.mubr.msk.bf16.gmra.mrb[12].mxu1 %vm349_vm0, %v14082_v19  ;;  %v14144_v18 = vld [vmem:[%s18692_s0 + $0x290] sm:$0xff]   ;;  %v14145_v19 = vld [vmem:[%s18692_s0 + $0x138] sm:$0xff]  }
  0x27   :  { %12648 = vmatprep.mubr.msk.bf16.mxu0 %vm349_vm0, %v14083_v20  ;;  %12742 = vmatprep.mubr.msk.bf16.mxu1 %vm349_vm0, %v14084_v21  ;;  %v14146_v20 = vld [vmem:[%s18692_s0 + $0x298] sm:$0xff]   ;;  %v14147_v21 = vld [vmem:[%s18692_s0 + $0x140] sm:$0xff]  }
  0x2e   :  { %12649 = vmatmul.mubr.msk.bf16.gmra.mrb[16].mxu0 %vm349_vm0, %v14085_v22  ;;  %12743 = vmatmul.mubr.msk.bf16.gmra.mrb[16].mxu1 %vm349_vm0, %v14086_v23  ;;  %v14148_v22 = vld [vmem:[%s18692_s0 + $0x2a0] sm:$0xff]   ;;  %v14149_v23 = vld [vmem:[%s18692_s0 + $0x148] sm:$0xff]  }
  0x2f   :  { %12652 = vmatprep.mubr.msk.bf16.mxu0 %vm349_vm0, %v14087_v24  ;;  %12746 = vmatprep.mubr.msk.bf16.mxu1 %vm349_vm0, %v14088_v25  ;;  %v14150_v24 = vld [vmem:[%s18692_s0 + $0x2a8] sm:$0xff]   ;;  %v14151_v25 = vld [vmem:[%s18692_s0 + $0x150] sm:$0xff]  }
  0x36   :  { %12653 = vmatmul.mubr.msk.bf16.gmra.mrb[20].mxu0 %vm349_vm0, %v14089_v26  ;;  %12747 = vmatmul.mubr.msk.bf16.gmra.mrb[20].mxu1 %vm349_vm0, %v14090_v27  ;;  %v14152_v26 = vld [vmem:[%s18692_s0 + $0x2b0] sm:$0xff]   ;;  %v14153_v27 = vld [vmem:[%s18692_s0 + $0x158] sm:$0xff]  }
  0x37   :  { %12656 = vmatprep.mubr.msk.bf16.mxu0 %vm349_vm0, %v14091_v28  ;;  %12750 = vmatprep.mubr.msk.bf16.mxu1 %vm349_vm0, %v14092_v29  ;;  %v14154_v28 = vld [vmem:[%s18692_s0 + $0x2b8] sm:$0xff]   ;;  %v14155_v29 = vld [vmem:[%s18692_s0 + $0x2c0] sm:$0xff]  }
  0x3e   :  { %12657 = vmatmul.mubr.msk.bf16.gmra.mrb[24].mxu0 %vm349_vm0, %v14093_v30  ;;  %12751 = vmatmul.mubr.msk.bf16.gmra.mrb[24].mxu1 %vm349_vm0, %v14094_v31  ;;  %v14156_v30 = vld [vmem:[%s18692_s0 + $0x420] sm:$0xff]   ;;  %v14157_v31 = vld [vmem:[%s18692_s0 + $0x2c8] sm:$0xff]  }
  0x3f   :  { %12660 = vmatprep.mubr.msk.bf16.mxu0 %vm349_vm0, %v14095_v32  ;;  %12754 = vmatprep.mubr.msk.bf16.mxu1 %vm349_vm0, %v14096_v33  ;;  %v14158_v32 = vld [vmem:[%s18692_s0 + $0x428] sm:$0xff]   ;;  %v14159_v33 = vld [vmem:[%s18692_s0 + $0x2d0] sm:$0xff]  }
  0x46   :  { %12661 = vmatmul.mubr.msk.bf16.gmra.mrb[28].mxu0 %vm349_vm0, %v14097_v34  ;;  %12755 = vmatmul.mubr.msk.bf16.gmra.mrb[28].mxu1 %vm349_vm0, %v14098_v35  ;;  %v14161_v34 = vld [vmem:[%s18692_s0 + $0x430] sm:$0xff]   ;;  %v14181_v35 = vld [vmem:[%s18693_s3] sm:$0xff]  }
  0x47   :  { %12664 = vmatprep.mubr.msk.bf16.mxu0 %vm349_vm0, %v14099_v36  ;;  %12758 = vmatprep.mubr.msk.bf16.mxu1 %vm349_vm0, %v14100_v37  ;;  %v14184_v36 = vld [vmem:[%s18693_s3 + $0x20] sm:$0xff]   ;;  %v14205_v37 = vld [vmem:[%s18693_s3 + $0x8] sm:$0xff]  }
  0x4e   :  { %12665 = vmatmul.mubr.msk.bf16.gmra.mrb[32].mxu0 %vm349_vm0, %v14101_v38  ;;  %12759 = vmatmul.mubr.msk.bf16.gmra.mrb[32].mxu1 %vm349_vm0, %v14102_v39  ;;  %v14206_v38 = vld [vmem:[%s18693_s3 + $0x28] sm:$0xff]   ;;  %v14160_v39 = vld [vmem:[%s18692_s0 + $0x2d8] sm:$0xff]  }
  0x4f   :  { %12668 = vmatprep.mubr.msk.bf16.mxu0 %vm349_vm0, %v14103_v40  ;;  %12762 = vmatprep.mubr.msk.bf16.mxu1 %vm349_vm0, %v14104_v41  ;;  %v14162_v40 = vld [vmem:[%s18692_s0 + $0x438] sm:$0xff]   ;;  %v14163_v41 = vld [vmem:[%s18692_s0 + $0x2e0] sm:$0xff]  }
  0x56   :  { %12669 = vmatmul.mubr.msk.bf16.gmra.mrb[36].mxu0 %vm349_vm0, %v14105_v42  ;;  %12763 = vmatmul.mubr.msk.bf16.gmra.mrb[36].mxu1 %vm349_vm0, %v14106_v43  ;;  %v14165_v42 = vld [vmem:[%s18692_s0 + $0x440] sm:$0xff]   ;;  %v14229_v43 = vld [vmem:[%s18693_s3 + $0x10] sm:$0xff]  }
  0x57   :  { %12672 = vmatprep.mubr.msk.bf16.mxu0 %vm349_vm0, %v14107_v44  ;;  %12766 = vmatprep.mubr.msk.bf16.mxu1 %vm349_vm0, %v14108_v45  ;;  %v14232_v44 = vld [vmem:[%s18693_s3 + $0x30] sm:$0xff]   ;;  %v14164_v45 = vld [vmem:[%s18692_s0 + $0x2e8] sm:$0xff]  }
  0x5e   :  { %12673 = vmatmul.mubr.msk.bf16.gmra.mrb[40].mxu0 %vm349_vm0, %v14109_v46  ;;  %12767 = vmatmul.mubr.msk.bf16.gmra.mrb[40].mxu1 %vm349_vm0, %v14110_v47  ;;  %v14166_v46 = vld [vmem:[%s18692_s0 + $0x448] sm:$0xff]   ;;  %v14167_v47 = vld [vmem:[%s18692_s0 + $0x2f0] sm:$0xff]  }
  0x5f   :  { %12676 = vmatprep.mubr.msk.bf16.mxu0 %vm349_vm0, %v14111_v48  ;;  %12770 = vmatprep.mubr.msk.bf16.mxu1 %vm349_vm0, %v14112_v49  ;;  %v14169_v48 = vld [vmem:[%s18692_s0 + $0x450] sm:$0xff]   ;;  %v14168_v49 = vld [vmem:[%s18692_s0 + $0x2f8] sm:$0xff]  }
  0x66   :  { %12677 = vmatmul.mubr.msk.bf16.gmra.mrb[44].mxu0 %vm349_vm0, %v14113_v50  ;;  %12771 = vmatmul.mubr.msk.bf16.gmra.mrb[44].mxu1 %vm349_vm0, %v14114_v51  ;;  %v14170_v50 = vld [vmem:[%s18692_s0 + $0x458] sm:$0xff]   ;;  %v14171_v51 = vld [vmem:[%s18692_s0 + $0x300] sm:$0xff]  }
  0x67   :  { %12680 = vmatprep.mubr.msk.bf16.mxu0 %vm349_vm0, %v14115_v52  ;;  %12774 = vmatprep.mubr.msk.bf16.mxu1 %vm349_vm0, %v14116_v53  ;;  %v14173_v52 = vld [vmem:[%s18692_s0 + $0x460] sm:$0xff]   ;;  %v14172_v53 = vld [vmem:[%s18692_s0 + $0x308] sm:$0xff]  }
  0x6e   :  { %12681 = vmatmul.mubr.msk.bf16.gmra.mrb[48].mxu0 %vm349_vm0, %v14117_v54  ;;  %12775 = vmatmul.mubr.msk.bf16.gmra.mrb[48].mxu1 %vm349_vm0, %v14118_v55  ;;  %v14174_v54 = vld [vmem:[%s18692_s0 + $0x468] sm:$0xff]   ;;  %v14175_v55 = vld [vmem:[%s18692_s0 + $0x310] sm:$0xff]  }
  0x6f   :  { %12684 = vmatprep.mubr.msk.bf16.mxu0 %vm349_vm0, %v14119_v56  ;;  %12778 = vmatprep.mubr.msk.bf16.mxu1 %vm349_vm0, %v14120_v57  ;;  %v14177_v56 = vld [vmem:[%s18692_s0 + $0x470] sm:$0xff]   ;;  %v14176_v57 = vld [vmem:[%s18692_s0 + $0x318] sm:$0xff]  }
  0x76   :  { %12685 = vmatmul.mubr.msk.bf16.gmra.mrb[52].mxu0 %vm349_vm0, %v14121_v58  ;;  %12779 = vmatmul.mubr.msk.bf16.gmra.mrb[52].mxu1 %vm349_vm0, %v14122_v60  ;;  %v14178_v58 = vld [vmem:[%s18692_s0 + $0x478] sm:$0xff]  }
  0x77   :  { %12688 = vmatprep.mubr.msk.bf16.mxu0 %vm349_vm0, %v14123_v61  ;;  %12782 = vmatprep.mubr.msk.bf16.mxu1 %vm349_vm0, %v14124_v62 }
  0x7e   :  { %12689 = vmatmul.mubr.msk.bf16.gmra.mrb[56].mxu0 %vm349_vm0, %v14125_v63  ;;  %12783 = vmatmul.mubr.msk.bf16.gmra.mrb[56].mxu1 %vm349_vm0, %v14126_v0 }
  0x7f   :  { %12692 = vmatprep.mubr.msk.bf16.mxu0 %vm349_vm0, %v14127_v1  ;;  %12786 = vmatprep.mubr.msk.bf16.mxu1 %vm349_vm0, %v14128_v2 }
  0x86   :  { %12693 = vmatmul.mubr.msk.bf16.gmra.mrb[60].mxu0 %vm349_vm0, %v14129_v3  ;;  %12787 = vmatmul.mubr.msk.bf16.gmra.mrb[60].mxu1 %vm349_vm0, %v14130_v4  ;;  %v14179_v4 = vld [vmem:[%s18692_s0 + $0x320] sm:$0xff]  }
  0x87   :  { %12696 = vmatprep.mubr.msk.bf16.mxu0 %vm349_vm0, %v14131_v5  ;;  %12790 = vmatprep.mubr.msk.bf16.mxu1 %vm349_vm0, %v14132_v6  ;;  %v14182_v5 = vld [vmem:[%s18692_s0 + $0x480] sm:$0xff]  }
  0x8e   :  { %12697 = vmatmul.mubr.msk.bf16.gmra.mrb[64].mxu0 %vm349_vm0, %v14133_v7  ;;  %12791 = vmatmul.mubr.msk.bf16.gmra.mrb[64].mxu1 %vm349_vm0, %v14134_v8 }
  0x8f   :  { %12700 = vmatprep.mubr.msk.bf16.mxu0 %vm349_vm0, %v14135_v9  ;;  %12794 = vmatprep.mubr.msk.bf16.mxu1 %vm349_vm0, %v14136_v10  ;;  %v14180_v10 = vld [vmem:[%s18692_s0 + $0x328] sm:$0xff]  }
  0x90   :  { %v14208_v9 = vld [vmem:[%s18692_s0 + $0x388] sm:$0xff]  }
  0x96   :  { %12701 = vmatmul.mubr.msk.bf16.gmra.mrb[68].mxu0 %vm349_vm0, %v14137_v11  ;;  %12795 = vmatmul.mubr.msk.bf16.gmra.mrb[68].mxu1 %vm349_vm0, %v14138_v12  ;;  %v14183_v11 = vld [vmem:[%s18692_s0 + $0x488] sm:$0xff]  }
  0x97   :  { %12704 = vmatprep.mubr.msk.bf16.mxu0 %vm349_vm0, %v14139_v13  ;;  %12798 = vmatprep.mubr.msk.bf16.mxu1 %vm349_vm0, %v14140_v14  ;;  %v14185_v14 = vld [vmem:[%s18692_s0 + $0x330] sm:$0xff]  }
  0x9e   :  { %12705 = vmatmul.mubr.msk.bf16.gmra.mrb[72].mxu0 %vm349_vm0, %v14141_v15  ;;  %12799 = vmatmul.mubr.msk.bf16.gmra.mrb[72].mxu1 %vm349_vm0, %v14142_v16  ;;  %v14187_v15 = vld [vmem:[%s18692_s0 + $0x490] sm:$0xff]  }
  0x9f   :  { %12708 = vmatprep.mubr.msk.bf16.mxu0 %vm349_vm0, %v14143_v17  ;;  %12802 = vmatprep.mubr.msk.bf16.mxu1 %vm349_vm0, %v14144_v18 }
  0xa6   :  { %12709 = vmatmul.mubr.msk.bf16.gmra.mrb[76].mxu0 %vm349_vm0, %v14145_v19  ;;  %12803 = vmatmul.mubr.msk.bf16.gmra.mrb[76].mxu1 %vm349_vm0, %v14146_v20 }
  0xa7   :  { %12712 = vmatprep.mubr.msk.bf16.mxu0 %vm349_vm0, %v14147_v21  ;;  %12806 = vmatprep.mubr.msk.bf16.mxu1 %vm349_vm0, %v14148_v22 }
  0xae   :  { %12713 = vmatmul.mubr.msk.bf16.gmra.mrb[80].mxu0 %vm349_vm0, %v14149_v23  ;;  %12807 = vmatmul.mubr.msk.bf16.gmra.mrb[80].mxu1 %vm349_vm0, %v14150_v24 }
  0xaf   :  { %12716 = vmatprep.mubr.msk.bf16.mxu0 %vm349_vm0, %v14151_v25  ;;  %12810 = vmatprep.mubr.msk.bf16.mxu1 %vm349_vm0, %v14152_v26  ;;  %v14186_v26 = vld [vmem:[%s18692_s0 + $0x338] sm:$0xff]   ;;  %v14210_v25 = vld [vmem:[%s18692_s0 + $0x4e8] sm:$0xff]  }
  0xb6   :  { %12717 = vmatmul.mubr.msk.bf16.gmra.mrb[84].mxu0 %vm349_vm0, %v14153_v27  ;;  %12811 = vmatmul.mubr.msk.bf16.gmra.mrb[84].mxu1 %vm349_vm0, %v14154_v28  ;;  %v14188_v27 = vld [vmem:[%s18692_s0 + $0x498] sm:$0xff]  }
  0xb7   :  { %12820 = vmatprep.mubr.msk.bf16.mxu0 %vm349_vm0, %v14155_v29  ;;  %12914 = vmatprep.mubr.msk.bf16.mxu1 %vm349_vm0, %v14156_v30  ;;  %v14189_v30 = vld [vmem:[%s18692_s0 + $0x340] sm:$0xff]  }
  0xbe   :  { %12821 = vmatmul.mubr.msk.bf16.vlgmr.msra.gmra.mrb[88].mxu0 %vm349_vm0, %v14157_v31  ;;  %12915 = vmatmul.mubr.msk.bf16.vlgmr.msra.gmra.mrb[88].mxu1 %vm349_vm0, %v14158_v32 }
  0xbf   :  { %12824 = vmatprep.mubr.msk.bf16.mxu0 %vm349_vm0, %v14159_v33  ;;  %12918 = vmatprep.mubr.msk.bf16.mxu1 %vm349_vm0, %v14161_v34  ;;  %v14191_v33 = vld [vmem:[%s18692_s0 + $0x4a0] sm:$0xff]   ;;  %v14249_v34 = vld [vmem:[%s18693_s3 + $0x18] sm:$0xff]  }
  0xc0   :  { %13003 = vmatpush3.bf16.msra.mxu0 %v14181_v35  ;;  %13015 = vmatpush3.bf16.msra.mxu1 %v14184_v36 }
  0xc1   :  { %13004 = vmatprep.subr.bf16.mxu0 %v18697_v59  ;;  %13016 = vmatprep.subr.bf16.mxu1 %v18697_v59 }
  0xc4   :  { %13005 = vmatpush3.bf16.msra.mxu0 %v14205_v37  ;;  %13017 = vmatpush3.bf16.msra.mxu1 %v14206_v38 }
  0xc5   :  { %13006 = vmatprep.subr.bf16.mxu0 %v18697_v59  ;;  %13018 = vmatprep.subr.bf16.mxu1 %v18697_v59 }
  0xc6   :  { %12825 = vmatmul.mubr.msk.bf16.gmra.mrb[92].mxu0 %vm349_vm0, %v14160_v39  ;;  %12919 = vmatmul.mubr.msk.bf16.gmra.mrb[92].mxu1 %vm349_vm0, %v14162_v40 }
  0xc7   :  { %12828 = vmatprep.mubr.msk.bf16.mxu0 %vm349_vm0, %v14163_v41  ;;  %12922 = vmatprep.mubr.msk.bf16.mxu1 %vm349_vm0, %v14165_v42  ;;  %v14250_v41 = vld [vmem:[%s18693_s3 + $0x38] sm:$0xff]  }
  0xc8   :  { %13007 = vmatpush3.bf16.msra.mxu0 %v14229_v43  ;;  %13019 = vmatpush3.bf16.msra.mxu1 %v14232_v44  ;;  %v14190_v44 = vld [vmem:[%s18692_s0 + $0x348] sm:$0xff]   ;;  %v14202_v43 = vld [vmem:[%s18692_s0 + $0x378] sm:$0xff]  }
  0xc9   :  { %13008 = vmatprep.subr.bf16.mxu0 %v18697_v59  ;;  %13020 = vmatprep.subr.bf16.mxu1 %v18697_v59 }
  0xcc   :  { %13009 = vmatpush3.bf16.msra.mxu0 %v14249_v34  ;;  %13021 = vmatpush3.bf16.msra.mxu1 %v14250_v41 }
  0xcd   :  { %13026 = vmatprep.subr.bf16.mxu0 %v18697_v59  ;;  %13038 = vmatprep.subr.bf16.mxu1 %v18697_v59 }
  0xce   :  { %12829 = vmatmul.mubr.msk.bf16.gmra.mrb[96].mxu0 %vm349_vm0, %v14164_v45  ;;  %12923 = vmatmul.mubr.msk.bf16.gmra.mrb[96].mxu1 %vm349_vm0, %v14166_v46  ;;  %v14192_v45 = vld [vmem:[%s18692_s0 + $0x4a8] sm:$0xff]  }
  0xcf   :  { %12832 = vmatprep.mubr.msk.bf16.mxu0 %vm349_vm0, %v14167_v47  ;;  %12926 = vmatprep.mubr.msk.bf16.mxu1 %vm349_vm0, %v14169_v48  ;;  %v14193_v48 = vld [vmem:[%s18692_s0 + $0x350] sm:$0xff]  }
  0xd6   :  { %12833 = vmatmul.mubr.msk.bf16.gmra.mrb[100].mxu0 %vm349_vm0, %v14168_v49  ;;  %12927 = vmatmul.mubr.msk.bf16.gmra.mrb[100].mxu1 %vm349_vm0, %v14170_v50  ;;  %v14195_v49 = vld [vmem:[%s18692_s0 + $0x4b0] sm:$0xff]  }
  0xd7   :  { %12836 = vmatprep.mubr.msk.bf16.mxu0 %vm349_vm0, %v14171_v51  ;;  %12930 = vmatprep.mubr.msk.bf16.mxu1 %vm349_vm0, %v14173_v52 }
  0xde   :  { %12837 = vmatmul.mubr.msk.bf16.gmra.mrb[104].mxu0 %vm349_vm0, %v14172_v53  ;;  %12931 = vmatmul.mubr.msk.bf16.gmra.mrb[104].mxu1 %vm349_vm0, %v14174_v54 }
  0xdf   :  { %12840 = vmatprep.mubr.msk.bf16.mxu0 %vm349_vm0, %v14175_v55  ;;  %12934 = vmatprep.mubr.msk.bf16.mxu1 %vm349_vm0, %v14177_v56 }
  0xe1   :  { %v15117_v60 = vpop.f32.mrb[0].mxu0  ;;  %v15119_v61 = vpop.f32.mrb[0].mxu1 }
  0xe2   :  { %v15123_v63 = vpop.f32.mrb[1].mxu0  ;;  %v15125_v0 = vpop.f32.mrb[1].mxu1 }
  0xe3   :  { %v15129_v2 = vpop.f32.mrb[2].mxu0  ;;  %v15131_v3 = vpop.f32.mrb[2].mxu1 }
  0xe4   :  { %v15141_v7 = vpop.f32.mrb[3].mxu0  ;;  %v15143_v8 = vpop.f32.mrb[3].mxu1 }
  0xe6   :  { %12841 = vmatmul.mubr.msk.bf16.gmra.mrb[108].mxu0 %vm349_vm0, %v14176_v57  ;;  %12935 = vmatmul.mubr.msk.bf16.gmra.mrb[108].mxu1 %vm349_vm0, %v14178_v58 }
  0xe7   :  { %12844 = vmatprep.mubr.msk.bf16.mxu0 %vm349_vm0, %v14179_v4  ;;  %12938 = vmatprep.mubr.msk.bf16.mxu1 %vm349_vm0, %v14182_v5  ;;  %v14194_v5 = vld [vmem:[%s18692_s0 + $0x358] sm:$0xff]  }
  0xe8   :  { %v14204_v4 = vld [vmem:[%s18692_s0 + $0x4d8] sm:$0xff]  }
  0xe9   :  { %v15157_v12 = vpop.f32.mrb[4].mxu0  ;;  %v15159_v13 = vpop.f32.mrb[4].mxu1 }
  0xea   :  { %v15169_v17 = vpop.f32.mrb[5].mxu0  ;;  %v15171_v18 = vpop.f32.mrb[5].mxu1 }
  0xeb   :  { %v15175_v20 = vpop.f32.mrb[6].mxu0  ;;  %v15177_v21 = vpop.f32.mrb[6].mxu1 }
  0xec   :  { %v15181_v23 = vpop.f32.mrb[7].mxu0  ;;  %v15183_v24 = vpop.f32.mrb[7].mxu1 }
  0xee   :  { %12845 = vmatmul.mubr.msk.bf16.gmra.mrb[112].mxu0 %vm349_vm0, %v14180_v10  ;;  %12939 = vmatmul.mubr.msk.bf16.gmra.mrb[112].mxu1 %vm349_vm0, %v14183_v11  ;;  %v14196_v10 = vld [vmem:[%s18692_s0 + $0x4b8] sm:$0xff]  }
  0xef   :  { %12848 = vmatprep.mubr.msk.bf16.mxu0 %vm349_vm0, %v14185_v14  ;;  %12942 = vmatprep.mubr.msk.bf16.mxu1 %vm349_vm0, %v14187_v15  ;;  %v14197_v15 = vld [vmem:[%s18692_s0 + $0x360] sm:$0xff]  }
  0xf1   :  { %v15197_v28 = vpop.f32.mrb[8].mxu0  ;;  %v15199_v29 = vpop.f32.mrb[8].mxu1 }
  0xf2   :  { %v15204_v31 = vpop.f32.mrb[9].mxu0  ;;  %v15206_v32 = vpop.f32.mrb[9].mxu1 }
  0xf3   :  { %v15216_v36 = vpop.f32.mrb[10].mxu0  ;;  %v15218_v37 = vpop.f32.mrb[10].mxu1 }
  0xf4   :  { %v15222_v39 = vpop.f32.mrb[11].mxu0  ;;  %v15224_v40 = vpop.f32.mrb[11].mxu1 }
  0xf6   :  { %12849 = vmatmul.mubr.msk.bf16.gmra.mrb[116].mxu0 %vm349_vm0, %v14186_v26  ;;  %12943 = vmatmul.mubr.msk.bf16.gmra.mrb[116].mxu1 %vm349_vm0, %v14188_v27  ;;  %v14199_v26 = vld [vmem:[%s18692_s0 + $0x4c0] sm:$0xff]  }
  0xf7   :  { %12852 = vmatprep.mubr.msk.bf16.mxu0 %vm349_vm0, %v14189_v30  ;;  %12946 = vmatprep.mubr.msk.bf16.mxu1 %vm349_vm0, %v14191_v33  ;;  %v14200_v33 = vld [vmem:[%s18692_s0 + $0x4c8] sm:$0xff]  }
  0xf9   :  { %v15244_v46 = vpop.f32.mrb[12].mxu0  ;;  %v15246_v47 = vpop.f32.mrb[12].mxu1 }
  0xfa   :  { %v15255_v50 = vpop.f32.mrb[13].mxu0  ;;  %v15257_v51 = vpop.f32.mrb[13].mxu1 }
  0xfb   :  { %v15261_v53 = vpop.f32.mrb[14].mxu0  ;;  %v15263_v54 = vpop.f32.mrb[14].mxu1 }
  0xfc   :  { %v15267_v56 = vpop.f32.mrb[15].mxu0  ;;  %v15269_v57 = vpop.f32.mrb[15].mxu1 }
  0xfe   :  { %12853 = vmatmul.mubr.msk.bf16.gmra.mrb[120].mxu0 %vm349_vm0, %v14190_v44  ;;  %12947 = vmatmul.mubr.msk.bf16.gmra.mrb[120].mxu1 %vm349_vm0, %v14192_v45  ;;  %v14198_v44 = vld [vmem:[%s18692_s0 + $0x368] sm:$0xff]  }
  0xff   :  { %12856 = vmatprep.mubr.msk.bf16.mxu0 %vm349_vm0, %v14193_v48  ;;  %12950 = vmatprep.mubr.msk.bf16.mxu1 %vm349_vm0, %v14195_v49 }
 0x101   :  { %v15285_v11 = vpop.f32.mrb[16].mxu0  ;;  %v15287_v14 = vpop.f32.mrb[16].mxu1 }
 0x102   :  { %v15295_v27 = vpop.f32.mrb[17].mxu0  ;;  %v15297_v30 = vpop.f32.mrb[17].mxu1 }
 0x103   :  { %v15301_v34 = vpop.f32.mrb[18].mxu0  ;;  %v15303_v41 = vpop.f32.mrb[18].mxu1 }
 0x104   :  { %v15307_v45 = vpop.f32.mrb[19].mxu0  ;;  %v15309_v48 = vpop.f32.mrb[19].mxu1 }
 0x106   :  { %12857 = vmatmul.mubr.msk.bf16.gmra.mrb[124].mxu0 %vm349_vm0, %v14194_v5  ;;  %12951 = vmatmul.mubr.msk.bf16.gmra.mrb[124].mxu1 %vm349_vm0, %v14196_v10  ;;  %v14201_v5 = vld [vmem:[%s18692_s0 + $0x370] sm:$0xff]  }
 0x107   :  { %12860 = vmatprep.mubr.msk.bf16.mxu0 %vm349_vm0, %v14197_v15  ;;  %12954 = vmatprep.mubr.msk.bf16.mxu1 %vm349_vm0, %v14199_v26  ;;  %v14203_v10 = vld [vmem:[%s18692_s0 + $0x4d0] sm:$0xff]  }
 0x109   :  { %v15325_v49 = vpop.f32.mrb[20].mxu0  ;;  %v15327_v58 = vpop.f32.mrb[20].mxu1 }
 0x10a   :  { %v15335_v15 = vpop.f32.mrb[21].mxu0  ;;  %v15337_v26 = vpop.f32.mrb[21].mxu1 }
 0x10b   :  { %v15341_v55 = vpop.f32.mrb[22].mxu0  ;;  %v15343_v52 = vpop.f32.mrb[22].mxu1 }
 0x10c   :  { %v15347_v42 = vpop.f32.mrb[23].mxu0  ;;  %v15349_v38 = vpop.f32.mrb[23].mxu1 }
 0x10d   :  { %18913 = vst [vmem:[#allocation2_spill] sm:$0xff] %v15347_v42  ;;  %18914 = vst [vmem:[#allocation3_spill] sm:$0xff] %v15349_v38 }
 0x10e   :  { %12861 = vmatmul.mubr.msk.bf16.gmra.mrb[128].mxu0 %vm349_vm0, %v14198_v44  ;;  %12955 = vmatmul.mubr.msk.bf16.gmra.mrb[128].mxu1 %vm349_vm0, %v14200_v33  ;;  %v14207_v33 = vld [vmem:[%s18692_s0 + $0x380] sm:$0xff]  }
 0x10f   :  { %12864 = vmatprep.mubr.msk.bf16.mxu0 %vm349_vm0, %v14201_v5  ;;  %12958 = vmatprep.mubr.msk.bf16.mxu1 %vm349_vm0, %v14203_v10  ;;  %v14209_v44 = vld [vmem:[%s18692_s0 + $0x4e0] sm:$0xff]  }
 0x111   :  { %v15365_v35 = vpop.f32.mrb[24].mxu0  ;;  %v15367_v22 = vpop.f32.mrb[24].mxu1 }
 0x112   :  { %18915 = vst [vmem:[#allocation4_spill] sm:$0xff] %v15365_v35  ;;  %18916 = vst [vmem:[#allocation5_spill] sm:$0xff] %v15367_v22  ;;  %v15375_v5 = vpop.f32.mrb[25].mxu0  ;;  %v15377_v10 = vpop.f32.mrb[25].mxu1 }
 0x113   :  { %18917 = vst [vmem:[#allocation6_spill] sm:$0xff] %v15375_v5  ;;  %18918 = vst [vmem:[#allocation7_spill] sm:$0xff] %v15377_v10  ;;  %v15381_v19 = vpop.f32.mrb[26].mxu0  ;;  %v15383_v16 = vpop.f32.mrb[26].mxu1 }
 0x114   :  { %18919 = vst [vmem:[#allocation8_spill] sm:$0xff] %v15381_v19  ;;  %18920 = vst [vmem:[#allocation9_spill] sm:$0xff] %v15383_v16  ;;  %v15387_v6 = vpop.f32.mrb[27].mxu0  ;;  %v15389_v1 = vpop.f32.mrb[27].mxu1  ;;  %v14212_v19 = vld [vmem:[%s18692_s0 + $0x398] sm:$0xff]  }
 0x115   :  { %18921 = vst [vmem:[#allocation10_spill] sm:$0xff] %v15387_v6  ;;  %18922 = vst [vmem:[#allocation11_spill] sm:$0xff] %v15389_v1  ;;  %v14211_v1 = vld [vmem:[%s18692_s0 + $0x390] sm:$0xff]  }
 0x116   :  { %12865 = vmatmul.mubr.msk.bf16.gmra.mrb[132].mxu0 %vm349_vm0, %v14202_v43  ;;  %12959 = vmatmul.mubr.msk.bf16.gmra.mrb[132].mxu1 %vm349_vm0, %v14204_v4  ;;  %v14213_v6 = vld [vmem:[%s18692_s0 + $0x4f0] sm:$0xff]  }
 0x117   :  { %12868 = vmatprep.mubr.msk.bf16.mxu0 %vm349_vm0, %v14207_v33  ;;  %12962 = vmatprep.mubr.msk.bf16.mxu1 %vm349_vm0, %v14209_v44 }
 0x119   :  { %v15405_v62 = vpop.f32.mrb[28].mxu0  ;;  %v15407_v16 = vpop.f32.mrb[28].mxu1 }
 0x11a   :  { %18923 = vst [vmem:[#allocation12_spill] sm:$0xff] %v15405_v62  ;;  %18924 = vst [vmem:[#allocation13_spill] sm:$0xff] %v15407_v16  ;;  %v15409_v59 = vpop.f32.mrb[29].mxu0  ;;  %v15411_v43 = vpop.f32.mrb[29].mxu1 }
 0x11b   :  { %18925 = vst [vmem:[#allocation14_spill] sm:$0xff] %v15409_v59  ;;  %18926 = vst [vmem:[#allocation15_spill] sm:$0xff] %v15411_v43  ;;  %v15415_v33 = vpop.f32.mrb[30].mxu0  ;;  %v15417_v44 = vpop.f32.mrb[30].mxu1  ;;  %v14214_v43 = vld [vmem:[%s18692_s0 + $0x4f8] sm:$0xff]  }
 0x11c   :  { %18927 = vst [vmem:[#allocation16_spill] sm:$0xff] %v15415_v33  ;;  %18928 = vst [vmem:[#allocation17_spill] sm:$0xff] %v15417_v44  ;;  %v15427_v10 = vpop.f32.mrb[31].mxu0  ;;  %v15429_v5 = vpop.f32.mrb[31].mxu1  ;;  %v14216_v33 = vld [vmem:[%s18692_s0 + $0x3a8] sm:$0xff]  }
 0x11d   :  { %18929 = vst [vmem:[#allocation18_spill] sm:$0xff] %v15427_v10  ;;  %18930 = vst [vmem:[#allocation19_spill] sm:$0xff] %v15429_v5 }
 0x11e   :  { %12869 = vmatmul.mubr.msk.bf16.gmra.mrb[136].mxu0 %vm349_vm0, %v14208_v9  ;;  %12963 = vmatmul.mubr.msk.bf16.gmra.mrb[136].mxu1 %vm349_vm0, %v14210_v25  ;;  %v14218_v25 = vld [vmem:[%s18692_s0 + $0x508] sm:$0xff]  }
 0x11f   :  { %12872 = vmatprep.mubr.msk.bf16.mxu0 %vm349_vm0, %v14211_v1  ;;  %12966 = vmatprep.mubr.msk.bf16.mxu1 %vm349_vm0, %v14213_v6  ;;  %v14215_v1 = vld [vmem:[%s18692_s0 + $0x3a0] sm:$0xff]  }
 0x120   :  { %v14217_v6 = vld [vmem:[%s18692_s0 + $0x500] sm:$0xff]  }
 0x121   :  { %v15445_v4 = vpop.f32.mrb[32].mxu0  ;;  %v15447_v44 = vpop.f32.mrb[32].mxu1 }
 0x122   :  { %18931 = vst [vmem:[#allocation20_spill] sm:$0xff] %v15445_v4  ;;  %18932 = vst [vmem:[#allocation21_spill] sm:$0xff] %v15447_v44  ;;  %v15449_v16 = vpop.f32.mrb[33].mxu0  ;;  %v15451_v9 = vpop.f32.mrb[33].mxu1 }
 0x123   :  { %18933 = vst [vmem:[#allocation22_spill] sm:$0xff] %v15449_v16  ;;  %18934 = vst [vmem:[#allocation23_spill] sm:$0xff] %v15451_v9  ;;  %v15461_v5 = vpop.f32.mrb[34].mxu0  ;;  %v15463_v10 = vpop.f32.mrb[34].mxu1 }
 0x124   :  { %18935 = vst [vmem:[#allocation24_spill] sm:$0xff] %v15461_v5  ;;  %18936 = vst [vmem:[#allocation25_spill] sm:$0xff] %v15463_v10  ;;  %v15467_v59 = vpop.f32.mrb[35].mxu0  ;;  %v15469_v62 = vpop.f32.mrb[35].mxu1  ;;  %v14220_v5 = vld [vmem:[%s18692_s0 + $0x3b8] sm:$0xff]  }
 0x125   :  { %18937 = vst [vmem:[#allocation26_spill] sm:$0xff] %v15467_v59  ;;  %18938 = vst [vmem:[#allocation27_spill] sm:$0xff] %v15469_v62 }
 0x126   :  { %12873 = vmatmul.mubr.msk.bf16.gmra.mrb[140].mxu0 %vm349_vm0, %v14212_v19  ;;  %12967 = vmatmul.mubr.msk.bf16.gmra.mrb[140].mxu1 %vm349_vm0, %v14214_v43  ;;  %v14219_v43 = vld [vmem:[%s18692_s0 + $0x3b0] sm:$0xff]  }
 0x127   :  { %12876 = vmatprep.mubr.msk.bf16.mxu0 %vm349_vm0, %v14215_v1  ;;  %12970 = vmatprep.mubr.msk.bf16.mxu1 %vm349_vm0, %v14217_v6  ;;  %v14221_v1 = vld [vmem:[%s18692_s0 + $0x510] sm:$0xff]   ;;  %v14222_v6 = vld [vmem:[%s18692_s0 + $0x518] sm:$0xff]  }
 0x129   :  { %v15485_v22 = vpop.f32.mrb[36].mxu0  ;;  %v15487_v10 = vpop.f32.mrb[36].mxu1 }
 0x12a   :  { %18939 = vst [vmem:[#allocation28_spill] sm:$0xff] %v15485_v22  ;;  %18940 = vst [vmem:[#allocation29_spill] sm:$0xff] %v15487_v10  ;;  %v15489_v35 = vpop.f32.mrb[37].mxu0  ;;  %v15491_v19 = vpop.f32.mrb[37].mxu1 }
 0x12b   :  { %18941 = vst [vmem:[#allocation30_spill] sm:$0xff] %v15489_v35  ;;  %18942 = vst [vmem:[#allocation31_spill] sm:$0xff] %v15491_v19  ;;  %v15501_v62 = vpop.f32.mrb[38].mxu0  ;;  %v15503_v59 = vpop.f32.mrb[38].mxu1 }
 0x12c   :  { %18943 = vst [vmem:[#allocation32_spill] sm:$0xff] %v15501_v62  ;;  %18944 = vst [vmem:[#allocation33_spill] sm:$0xff] %v15503_v59  ;;  %v15507_v9 = vpop.f32.mrb[39].mxu0  ;;  %v15509_v16 = vpop.f32.mrb[39].mxu1  ;;  %v14224_v62 = vld [vmem:[%s18692_s0 + $0x3c8] sm:$0xff]  }
 0x12d   :  { %18945 = vst [vmem:[#allocation34_spill] sm:$0xff] %v15507_v9  ;;  %18946 = vst [vmem:[#allocation35_spill] sm:$0xff] %v15509_v16 }
 0x12e   :  { %12877 = vmatmul.mubr.msk.bf16.gmra.mrb[144].mxu0 %vm349_vm0, %v14216_v33  ;;  %12971 = vmatmul.mubr.msk.bf16.gmra.mrb[144].mxu1 %vm349_vm0, %v14218_v25  ;;  %v14223_v25 = vld [vmem:[%s18692_s0 + $0x3c0] sm:$0xff]  }
 0x12f   :  { %12880 = vmatprep.mubr.msk.bf16.mxu0 %vm349_vm0, %v14219_v43  ;;  %12974 = vmatprep.mubr.msk.bf16.mxu1 %vm349_vm0, %v14221_v1  ;;  %v14225_v43 = vld [vmem:[%s18692_s0 + $0x520] sm:$0xff]   ;;  %v14226_v1 = vld [vmem:[%s18692_s0 + $0x528] sm:$0xff]  }
 0x131   :  { %v15525_v44 = vpop.f32.mrb[40].mxu0  ;;  %v15527_v59 = vpop.f32.mrb[40].mxu1 }
 0x132   :  { %18947 = vst [vmem:[#allocation36_spill] sm:$0xff] %v15525_v44  ;;  %18948 = vst [vmem:[#allocation37_spill] sm:$0xff] %v15527_v59  ;;  %v15529_v4 = vpop.f32.mrb[41].mxu0  ;;  %v15531_v33 = vpop.f32.mrb[41].mxu1 }
 0x133   :  { %18949 = vst [vmem:[#allocation38_spill] sm:$0xff] %v15529_v4  ;;  %18950 = vst [vmem:[#allocation39_spill] sm:$0xff] %v15531_v33  ;;  %v15541_v16 = vpop.f32.mrb[42].mxu0  ;;  %v15543_v9 = vpop.f32.mrb[42].mxu1 }
 0x134   :  { %18951 = vst [vmem:[#allocation40_spill] sm:$0xff] %v15541_v16  ;;  %18952 = vst [vmem:[#allocation41_spill] sm:$0xff] %v15543_v9  ;;  %v15547_v19 = vpop.f32.mrb[43].mxu0  ;;  %v15549_v35 = vpop.f32.mrb[43].mxu1  ;;  %v14228_v16 = vld [vmem:[%s18692_s0 + $0x3d8] sm:$0xff]  }
 0x135   :  { %18953 = vst [vmem:[#allocation42_spill] sm:$0xff] %v15547_v19  ;;  %18954 = vst [vmem:[#allocation43_spill] sm:$0xff] %v15549_v35 }
 0x136   :  { %12881 = vmatmul.mubr.msk.bf16.gmra.mrb[148].mxu0 %vm349_vm0, %v14220_v5  ;;  %12975 = vmatmul.mubr.msk.bf16.gmra.mrb[148].mxu1 %vm349_vm0, %v14222_v6  ;;  %v14227_v6 = vld [vmem:[%s18692_s0 + $0x3d0] sm:$0xff]  }
 0x137   :  { %12884 = vmatprep.mubr.msk.bf16.mxu0 %vm349_vm0, %v14223_v25  ;;  %12978 = vmatprep.mubr.msk.bf16.mxu1 %vm349_vm0, %v14225_v43  ;;  %v14230_v25 = vld [vmem:[%s18692_s0 + $0x530] sm:$0xff]   ;;  %v14231_v43 = vld [vmem:[%s18692_s0 + $0x538] sm:$0xff]  }
 0x139   :  { %v15565_v10 = vpop.f32.mrb[44].mxu0  ;;  %v15567_v9 = vpop.f32.mrb[44].mxu1 }
 0x13a   :  { %18955 = vst [vmem:[#allocation44_spill] sm:$0xff] %v15565_v10  ;;  %18956 = vst [vmem:[#allocation45_spill] sm:$0xff] %v15567_v9  ;;  %v15569_v22 = vpop.f32.mrb[45].mxu0  ;;  %v15571_v5 = vpop.f32.mrb[45].mxu1 }
 0x13b   :  { %18957 = vst [vmem:[#allocation46_spill] sm:$0xff] %v15569_v22  ;;  %18958 = vst [vmem:[#allocation47_spill] sm:$0xff] %v15571_v5  ;;  %v15581_v35 = vpop.f32.mrb[46].mxu0  ;;  %v15583_v19 = vpop.f32.mrb[46].mxu1 }
 0x13c   :  { %18959 = vst [vmem:[#allocation48_spill] sm:$0xff] %v15581_v35  ;;  %18960 = vst [vmem:[#allocation49_spill] sm:$0xff] %v15583_v19  ;;  %v15587_v33 = vpop.f32.mrb[47].mxu0  ;;  %v15589_v4 = vpop.f32.mrb[47].mxu1  ;;  %v14234_v35 = vld [vmem:[%s18692_s0 + $0x3e8] sm:$0xff]  }
 0x13d   :  { %18961 = vst [vmem:[#allocation50_spill] sm:$0xff] %v15587_v33  ;;  %18962 = vst [vmem:[#allocation51_spill] sm:$0xff] %v15589_v4 }
 0x13e   :  { %12885 = vmatmul.mubr.msk.bf16.gmra.mrb[152].mxu0 %vm349_vm0, %v14224_v62  ;;  %12979 = vmatmul.mubr.msk.bf16.gmra.mrb[152].mxu1 %vm349_vm0, %v14226_v1  ;;  %v14233_v1 = vld [vmem:[%s18692_s0 + $0x3e0] sm:$0xff]  }
 0x13f   :  { %12888 = vmatprep.mubr.msk.bf16.mxu0 %vm349_vm0, %v14227_v6  ;;  %12982 = vmatprep.mubr.msk.bf16.mxu1 %vm349_vm0, %v14230_v25  ;;  %v14235_v6 = vld [vmem:[%s18692_s0 + $0x540] sm:$0xff]   ;;  %v14236_v25 = vld [vmem:[%s18692_s0 + $0x548] sm:$0xff]  }
 0x141   :  { %v15605_v59 = vpop.f32.mrb[48].mxu0  ;;  %v15607_v19 = vpop.f32.mrb[48].mxu1 }
 0x142   :  { %18963 = vst [vmem:[#allocation52_spill] sm:$0xff] %v15605_v59  ;;  %18964 = vst [vmem:[#allocation53_spill] sm:$0xff] %v15607_v19  ;;  %v15609_v44 = vpop.f32.mrb[49].mxu0  ;;  %v15611_v62 = vpop.f32.mrb[49].mxu1 }
 0x143   :  { %18965 = vst [vmem:[#allocation54_spill] sm:$0xff] %v15609_v44  ;;  %18966 = vst [vmem:[#allocation55_spill] sm:$0xff] %v15611_v62  ;;  %v15621_v4 = vpop.f32.mrb[50].mxu0  ;;  %v15623_v33 = vpop.f32.mrb[50].mxu1 }
 0x144   :  { %18967 = vst [vmem:[#allocation56_spill] sm:$0xff] %v15621_v4  ;;  %18968 = vst [vmem:[#allocation57_spill] sm:$0xff] %v15623_v33  ;;  %v15627_v5 = vpop.f32.mrb[51].mxu0  ;;  %v15629_v22 = vpop.f32.mrb[51].mxu1  ;;  %v14238_v4 = vld [vmem:[%s18692_s0 + $0x3f8] sm:$0xff]  }
 0x145   :  { %18969 = vst [vmem:[#allocation58_spill] sm:$0xff] %v15627_v5  ;;  %18970 = vst [vmem:[#allocation59_spill] sm:$0xff] %v15629_v22 }
 0x146   :  { %12889 = vmatmul.mubr.msk.bf16.gmra.mrb[156].mxu0 %vm349_vm0, %v14228_v16  ;;  %12983 = vmatmul.mubr.msk.bf16.gmra.mrb[156].mxu1 %vm349_vm0, %v14231_v43  ;;  %v14237_v43 = vld [vmem:[%s18692_s0 + $0x3f0] sm:$0xff]  }
 0x147   :  { %12892 = vmatprep.mubr.msk.bf16.mxu0 %vm349_vm0, %v14233_v1  ;;  %12986 = vmatprep.mubr.msk.bf16.mxu1 %vm349_vm0, %v14235_v6  ;;  %v14239_v1 = vld [vmem:[%s18692_s0 + $0x550] sm:$0xff]   ;;  %v14240_v6 = vld [vmem:[%s18692_s0 + $0x558] sm:$0xff]  }
 0x149   :  { %v15645_v9 = vpop.f32.mrb[52].mxu0  ;;  %v15647_v33 = vpop.f32.mrb[52].mxu1 }
 0x14a   :  { %18971 = vst [vmem:[#allocation60_spill] sm:$0xff] %v15645_v9  ;;  %18972 = vst [vmem:[#allocation61_spill] sm:$0xff] %v15647_v33  ;;  %v15649_v10 = vpop.f32.mrb[53].mxu0  ;;  %v15651_v16 = vpop.f32.mrb[53].mxu1 }
 0x14b   :  { %18973 = vst [vmem:[#allocation62_spill] sm:$0xff] %v15649_v10  ;;  %18974 = vst [vmem:[#allocation63_spill] sm:$0xff] %v15651_v16  ;;  %v15661_v22 = vpop.f32.mrb[54].mxu0  ;;  %v15663_v5 = vpop.f32.mrb[54].mxu1 }
 0x14c   :  { %18975 = vst [vmem:[#allocation64_spill] sm:$0xff] %v15661_v22  ;;  %18976 = vst [vmem:[#allocation65_spill] sm:$0xff] %v15663_v5  ;;  %v15667_v62 = vpop.f32.mrb[55].mxu0  ;;  %v15669_v44 = vpop.f32.mrb[55].mxu1  ;;  %v14242_v22 = vld [vmem:[%s18692_s0 + $0x408] sm:$0xff]  }
 0x14d   :  { %18977 = vst [vmem:[#allocation66_spill] sm:$0xff] %v15667_v62  ;;  %18978 = vst [vmem:[#allocation67_spill] sm:$0xff] %v15669_v44 }
 0x14e   :  { %12893 = vmatmul.mubr.msk.bf16.gmra.mrb[160].mxu0 %vm349_vm0, %v14234_v35  ;;  %12987 = vmatmul.mubr.msk.bf16.gmra.mrb[160].mxu1 %vm349_vm0, %v14236_v25  ;;  %v14241_v25 = vld [vmem:[%s18692_s0 + $0x400] sm:$0xff]  }
 0x14f   :  { %12896 = vmatprep.mubr.msk.bf16.mxu0 %vm349_vm0, %v14237_v43  ;;  %12990 = vmatprep.mubr.msk.bf16.mxu1 %vm349_vm0, %v14239_v1  ;;  %v14243_v43 = vld [vmem:[%s18692_s0 + $0x560] sm:$0xff]   ;;  %v14244_v1 = vld [vmem:[%s18692_s0 + $0x568] sm:$0xff]  }
 0x151   :  { %v15685_v19 = vpop.f32.mrb[56].mxu0  ;;  %v15687_v5 = vpop.f32.mrb[56].mxu1 }
 0x152   :  { %18979 = vst [vmem:[#allocation68_spill] sm:$0xff] %v15685_v19  ;;  %18980 = vst [vmem:[#allocation69_spill] sm:$0xff] %v15687_v5  ;;  %v15689_v59 = vpop.f32.mrb[57].mxu0  ;;  %v15691_v35 = vpop.f32.mrb[57].mxu1  ;;  %v14246_v19 = vld [vmem:[%s18692_s0 + $0x418] sm:$0xff]  }
 0x153   :  { %18981 = vst [vmem:[#allocation70_spill] sm:$0xff] %v15689_v59  ;;  %18982 = vst [vmem:[#allocation71_spill] sm:$0xff] %v15691_v35  ;;  %v15701_v44 = vpop.f32.mrb[58].mxu0  ;;  %v15703_v62 = vpop.f32.mrb[58].mxu1 }
 0x154   :  { %18983 = vst [vmem:[#allocation72_spill] sm:$0xff] %v15701_v44  ;;  %18984 = vst [vmem:[#allocation73_spill] sm:$0xff] %v15703_v62  ;;  %v15707_v16 = vpop.f32.mrb[59].mxu0  ;;  %v15709_v10 = vpop.f32.mrb[59].mxu1 }
 0x155   :  { %18985 = vst [vmem:[#allocation74_spill] sm:$0xff] %v15707_v16  ;;  %18986 = vst [vmem:[#allocation75_spill] sm:$0xff] %v15709_v10 }
 0x156   :  { %12897 = vmatmul.mubr.msk.bf16.gmra.mrb[164].mxu0 %vm349_vm0, %v14238_v4  ;;  %12991 = vmatmul.mubr.msk.bf16.gmra.mrb[164].mxu1 %vm349_vm0, %v14240_v6  ;;  %v14245_v6 = vld [vmem:[%s18692_s0 + $0x410] sm:$0xff]  }
 0x157   :  { %12900 = vmatprep.mubr.msk.bf16.mxu0 %vm349_vm0, %v14241_v25  ;;  %12994 = vmatprep.mubr.msk.bf16.mxu1 %vm349_vm0, %v14243_v43  ;;  %v14247_v25 = vld [vmem:[%s18692_s0 + $0x570] sm:$0xff]  }
 0x159   :  { %v15725_v33 = vpop.f32.mrb[60].mxu0  ;;  %v15727_v62 = vpop.f32.mrb[60].mxu1 }
 0x15a   :  { %18987 = vst [vmem:[#allocation76_spill] sm:$0xff] %v15725_v33  ;;  %18988 = vst [vmem:[#allocation77_spill] sm:$0xff] %v15727_v62  ;;  %v15729_v9 = vpop.f32.mrb[61].mxu0  ;;  %v15731_v4 = vpop.f32.mrb[61].mxu1 }
 0x15b   :  { %18989 = vst [vmem:[#allocation78_spill] sm:$0xff] %v15729_v9  ;;  %18990 = vst [vmem:[#allocation79_spill] sm:$0xff] %v15731_v4  ;;  %v15741_v10 = vpop.f32.mrb[62].mxu0  ;;  %v15743_v16 = vpop.f32.mrb[62].mxu1 }
 0x15c   :  { %18991 = vst [vmem:[#allocation80_spill] sm:$0xff] %v15741_v10  ;;  %18992 = vst [vmem:[#allocation81_spill] sm:$0xff] %v15743_v16  ;;  %v15747_v35 = vpop.f32.mrb[63].mxu0  ;;  %v15749_v59 = vpop.f32.mrb[63].mxu1 }
 0x15d   :  { %18993 = vst [vmem:[#allocation82_spill] sm:$0xff] %v15747_v35  ;;  %18994 = vst [vmem:[#allocation83_spill] sm:$0xff] %v15749_v59 }
 0x15e   :  { %12901 = vmatmul.mubr.msk.bf16.gmra.mrb[168].mxu0 %vm349_vm0, %v14242_v22  ;;  %12995 = vmatmul.mubr.msk.bf16.gmra.mrb[168].mxu1 %vm349_vm0, %v14244_v1  ;;  %v14248_v22 = vld [vmem:[%s18692_s0 + $0x578] sm:$0xff]   ;;  %v19003_v1 = vmov 0.0  }
 0x15f   :  { %12904 = vmatprep.mubr.msk.bf16.mxu0 %vm349_vm0, %v14245_v6  ;;  %12998 = vmatprep.mubr.msk.bf16.mxu1 %vm349_vm0, %v14247_v25 }
 0x161   :  { %v15759_v43 = vpop.f32.mrb[64].mxu0  ;;  %v15761_v44 = vpop.f32.mrb[64].mxu1 }
 0x162   :  { %18995 = vst [vmem:[#allocation84_spill] sm:$0xff] %v15759_v43  ;;  %18996 = vst [vmem:[#allocation85_spill] sm:$0xff] %v15761_v44  ;;  %v15763_v4 = vpop.f32.mrb[65].mxu0  ;;  %v15765_v9 = vpop.f32.mrb[65].mxu1 }
 0x163   :  { %18997 = vst [vmem:[#allocation86_spill] sm:$0xff] %v15763_v4  ;;  %18998 = vst [vmem:[#allocation87_spill] sm:$0xff] %v15765_v9  ;;  %v15775_v6 = vpop.f32.mrb[66].mxu0  ;;  %v15777_v25 = vpop.f32.mrb[66].mxu1 }
 0x164   :  { %18999 = vst [vmem:[#allocation88_spill] sm:$0xff] %v15775_v6  ;;  %19000 = vst [vmem:[#allocation89_spill] sm:$0xff] %v15777_v25  ;;  %v15781_v59 = vpop.f32.mrb[67].mxu0  ;;  %v15783_v35 = vpop.f32.mrb[67].mxu1 }
 0x165   :  { %19001 = vst [vmem:[#allocation90_spill] sm:$0xff] %v15781_v59  ;;  %19002 = vst [vmem:[#allocation91_spill] sm:$0xff] %v15783_v35 }
 0x166   :  { %12905 = vmatmul.mubr.msk.bf16.gmra.mrb[172].mxu0 %vm349_vm0, %v14246_v19  ;;  %12999 = vmatmul.mubr.msk.bf16.gmra.mrb[172].mxu1 %vm349_vm0, %v14248_v22 }
 0x167   :  { %13010 = vmatprep.mubr.msk.bf16.mxu0 %vm14600_vm2, %v19003_v1  ;;  %13022 = vmatprep.mubr.msk.bf16.mxu1 %vm14600_vm2, %v19003_v1 }
 0x169   :  { %v15795_v5 = vpop.f32.mrb[68].mxu0  ;;  %v15797_v9 = vpop.f32.mrb[68].mxu1 }
 0x16a   :  { %19004 = vst [vmem:[#allocation92_spill] sm:$0xff] %v15795_v5  ;;  %19005 = vst [vmem:[#allocation93_spill] sm:$0xff] %v15797_v9  ;;  %v15799_v4 = vpop.f32.mrb[69].mxu0  ;;  %v15801_v16 = vpop.f32.mrb[69].mxu1 }
 0x16b   :  { %19006 = vst [vmem:[#allocation94_spill] sm:$0xff] %v15799_v4  ;;  %19007 = vst [vmem:[#allocation95_spill] sm:$0xff] %v15801_v16  ;;  %v15805_v10 = vpop.f32.mrb[70].mxu0  ;;  %v15807_v22 = vpop.f32.mrb[70].mxu1 }
 0x16c   :  { %19008 = vst [vmem:[#allocation96_spill] sm:$0xff] %v15805_v10  ;;  %19009 = vst [vmem:[#allocation97_spill] sm:$0xff] %v15807_v22  ;;  %v15811_v59 = vpop.f32.mrb[71].mxu0  ;;  %v15813_v25 = vpop.f32.mrb[71].mxu1 }
 0x16d   :  { %19010 = vst [vmem:[#allocation98_spill] sm:$0xff] %v15811_v59  ;;  %19011 = vst [vmem:[#allocation99_spill] sm:$0xff] %v15813_v25 }
 0x171   :  { %v15819_v43 = vpop.f32.mrb[72].mxu0  ;;  %v15821_v19 = vpop.f32.mrb[72].mxu1 }
 0x172   :  { %19012 = vst [vmem:[#allocation100_spill] sm:$0xff] %v15819_v43  ;;  %19013 = vst [vmem:[#allocation101_spill] sm:$0xff] %v15821_v19  ;;  %v15823_v9 = vpop.f32.mrb[73].mxu0  ;;  %v15825_v5 = vpop.f32.mrb[73].mxu1 }
 0x173   :  { %19014 = vst [vmem:[#allocation102_spill] sm:$0xff] %v15823_v9  ;;  %19015 = vst [vmem:[#allocation103_spill] sm:$0xff] %v15825_v5  ;;  %v15829_v16 = vpop.f32.mrb[74].mxu0  ;;  %v15831_v4 = vpop.f32.mrb[74].mxu1 }
 0x174   :  { %19016 = vst [vmem:[#allocation104_spill] sm:$0xff] %v15829_v16  ;;  %19017 = vst [vmem:[#allocation105_spill] sm:$0xff] %v15831_v4  ;;  %v15835_v22 = vpop.f32.mrb[75].mxu0  ;;  %v15837_v44 = vpop.f32.mrb[75].mxu1 }
 0x175   :  { %19018 = vst [vmem:[#allocation106_spill] sm:$0xff] %v15835_v22  ;;  %19019 = vst [vmem:[#allocation107_spill] sm:$0xff] %v15837_v44  ;;  %v19043_v44 = vmax.f32 %v15117_v60, %v15119_v61 }
 0x179   :  { %v15843_v10 = vpop.f32.mrb[76].mxu0  ;;  %v15845_v35 = vpop.f32.mrb[76].mxu1 }
 0x17a   :  { %19020 = vst [vmem:[#allocation108_spill] sm:$0xff] %v15843_v10  ;;  %19021 = vst [vmem:[#allocation109_spill] sm:$0xff] %v15845_v35  ;;  %v15847_v19 = vpop.f32.mrb[77].mxu0  ;;  %v15849_v43 = vpop.f32.mrb[77].mxu1 }
 0x17b   :  { %19022 = vst [vmem:[#allocation110_spill] sm:$0xff] %v15847_v19  ;;  %19023 = vst [vmem:[#allocation111_spill] sm:$0xff] %v15849_v43  ;;  %v15853_v5 = vpop.f32.mrb[78].mxu0  ;;  %v15855_v9 = vpop.f32.mrb[78].mxu1 }
 0x17c   :  { %19024 = vst [vmem:[#allocation112_spill] sm:$0xff] %v15853_v5  ;;  %19025 = vst [vmem:[#allocation113_spill] sm:$0xff] %v15855_v9  ;;  %v15859_v4 = vpop.f32.mrb[79].mxu0  ;;  %v15861_v59 = vpop.f32.mrb[79].mxu1 }
 0x17d   :  { %19026 = vst [vmem:[#allocation114_spill] sm:$0xff] %v15859_v4  ;;  %19027 = vst [vmem:[#allocation115_spill] sm:$0xff] %v15861_v59  ;;  %v19044_v59 = vmax.f32 %v15123_v63, %v15125_v0  ;;  %v19046_v63 = vmax.f32 %v15141_v7, %v15143_v8  ;;  %v14251_v7 = vld [vmem:[%s18693_s3 + $0x40] sm:$0xff]  }
 0x181   :  { %v15867_v16 = vpop.f32.mrb[80].mxu0  ;;  %v15869_v6 = vpop.f32.mrb[80].mxu1 }
 0x182   :  { %19028 = vst [vmem:[#allocation116_spill] sm:$0xff] %v15867_v16  ;;  %19029 = vst [vmem:[#allocation117_spill] sm:$0xff] %v15869_v6  ;;  %v15871_v35 = vpop.f32.mrb[81].mxu0  ;;  %v15873_v10 = vpop.f32.mrb[81].mxu1 }
 0x183   :  { %19030 = vst [vmem:[#allocation118_spill] sm:$0xff] %v15871_v35  ;;  %19031 = vst [vmem:[#allocation119_spill] sm:$0xff] %v15873_v10  ;;  %v15877_v43 = vpop.f32.mrb[82].mxu0  ;;  %v15879_v19 = vpop.f32.mrb[82].mxu1 }
 0x184   :  { %19032 = vst [vmem:[#allocation120_spill] sm:$0xff] %v15877_v43  ;;  %19033 = vst [vmem:[#allocation121_spill] sm:$0xff] %v15879_v19  ;;  %v15883_v9 = vpop.f32.mrb[83].mxu0  ;;  %v15885_v22 = vpop.f32.mrb[83].mxu1 }
 0x185   :  { %19034 = vst [vmem:[#allocation122_spill] sm:$0xff] %v15883_v9  ;;  %19035 = vst [vmem:[#allocation123_spill] sm:$0xff] %v15885_v22  ;;  %v15926_v9 = vld [vmem:[%s18694_s2] ss:$0 sm:$0xff]  ;;  %v19045_v22 = vmax.f32 %v15129_v2, %v15131_v3  ;;  %v19047_v2 = vmax.f32 %v15157_v12, %v15159_v13  ;;  %v19049_v12 = vmax.f32 %v15175_v20, %v15177_v21 }
 0x189   :  { %v15891_v5 = vpop.f32.mrb[84].mxu0  ;;  %v15893_v25 = vpop.f32.mrb[84].mxu1 }
 0x18a   :  { %19036 = vst [vmem:[#allocation124_spill] sm:$0xff] %v15891_v5  ;;  %19037 = vst [vmem:[#allocation125_spill] sm:$0xff] %v15893_v25  ;;  %v15895_v6 = vpop.f32.mrb[85].mxu0  ;;  %v15897_v16 = vpop.f32.mrb[85].mxu1 }
 0x18b   :  { %19038 = vst [vmem:[#allocation126_spill] sm:$0xff] %v15895_v6  ;;  %19039 = vst [vmem:[#allocation127_spill] sm:$0xff] %v15897_v16  ;;  %v15901_v10 = vpop.f32.mrb[86].mxu0  ;;  %v15903_v35 = vpop.f32.mrb[86].mxu1 }
 0x18c   :  { %19040 = vst [vmem:[#allocation128_spill] sm:$0xff] %v15903_v35  ;;  %v15907_v19 = vpop.f32.mrb[87].mxu0  ;;  %v15909_v4 = vpop.f32.mrb[87].mxu1 }
 0x18d   :  { %19041 = vst [vmem:[#allocation129_spill] sm:$0xff] %v15907_v19  ;;  %19042 = vst [vmem:[#allocation130_spill] sm:$0xff] %v15909_v4 }
 0x191   :  { %v12822_v43 = vpop.f32.mrb[88].mxu0  ;;  %v12916_v62 = vpop.f32.mrb[88].mxu1 }
 0x192   :  { %v2613_v25 = vmax.f32 %v19043_v44, %v12822_v43  ;;  %v2260_v5 = vpop.f32.mrb[89].mxu0  ;;  %v3174_v33 = vpop.f32.mrb[89].mxu1 }
 0x193   :  { %v2611_v16 = vmax.f32 %v19044_v59, %v2260_v5  ;;  %v12823_v6 = vpop.f32.mrb[90].mxu0  ;;  %v15921_v38 = vpop.f32.mrb[90].mxu1 }
 0x194   :  { %v3527_v42 = vmax.f32 %v2613_v25, %v12916_v62  ;;  %v2614_v60 = vmax.f32 %v19045_v22, %v12823_v6  ;;  %v2263_v61 = vpop.f32.mrb[91].mxu0  ;;  %v3177_v44 = vpop.f32.mrb[91].mxu1  ;;  %v19048_v6 = vmax.f32 %v15169_v17, %v15171_v18  ;;  %v14252_v17 = vld [vmem:[%s18693_s3 + $0x60] sm:$0xff]  }
 0x195   :  { %v3525_v43 = vmax.f32 %v2611_v16, %v3174_v33  ;;  %v2612_v59 = vmax.f32 %v19046_v63, %v2263_v61 }
 0x196   :  { %v3528_v0 = vmax.f32 %v2614_v60, %v15921_v38 }
 0x197   :  { %v3620_v5 = vadd.f32 %v15926_v9, %v3525_v43  ;;  %v3526_v62 = vmax.f32 %v2612_v59, %v3177_v44  ;;  %v14253_v59 = vld [vmem:[%s18693_s3 + $0x48] sm:$0xff]  }
 0x199   :  { %v3708_v25 = vmax.f32 %v3620_v5, 0.0  ;;  %v3621_v4 = vadd.f32 %v15926_v9, %v3526_v62  ;;  %v12826_v19 = vpop.f32.mrb[92].mxu0  ;;  %v15937_v35 = vpop.f32.mrb[92].mxu1 }
 0x19a   :  { %v15942_v3 = vmax.f32 %v19047_v2, %v12826_v19  ;;  %v2276_v33 = vpop.f32.mrb[93].mxu0  ;;  %v15944_v16 = vpop.f32.mrb[93].mxu1  ;;  %v19051_v2 = vmax.f32 %v15197_v28, %v15199_v29  ;;  %v19053_v28 = vmax.f32 %v15216_v36, %v15218_v37 }
 0x19b   :  { %v11910_v8 = vpack.c.bf16 %v3708_v25, %v3708_v25  ;;  %v3709_v38 = vmax.f32 %v3621_v4, 0.0  ;;  %v15952_v22 = vmax.f32 %v19048_v6, %v2276_v33  ;;  %v12827_v60 = vpop.f32.mrb[94].mxu0  ;;  %v15954_v61 = vpop.f32.mrb[94].mxu1  ;;  %v19050_v4 = vmax.f32 %v15181_v23, %v15183_v24  ;;  %v14254_v24 = vld [vmem:[%s18693_s3 + $0x68] sm:$0xff]  }
 0x19c   :  { %v15959_v13 = vmax.f32 %v19049_v12, %v12827_v60  ;;  %v3531_v19 = vmax.f32 %v15942_v3, %v15937_v35  ;;  %v2279_v44 = vpop.f32.mrb[95].mxu0  ;;  %v15963_v43 = vpop.f32.mrb[95].mxu1  ;;  %v3622_v25 = vadd.f32 %v15926_v9, %v3527_v42  ;;  %v19052_v6 = vmax.f32 %v15204_v31, %v15206_v32  ;;  %v14256_v31 = vld [vmem:[%s18693_s3 + $0x70] sm:$0xff]  }
 0x19d   :  { %v11911_v18 = vpack.c.bf16 %v3709_v38, %v3709_v38  ;;  %v15971_v63 = vmax.f32 %v19050_v4, %v2279_v44  ;;  %v3529_v20 = vmax.f32 %v15952_v22, %v15944_v16  ;;  %13011 = vmatmul.mubr.msk.bf16.vlgmr.msra.gmra.mrb[176].mxu0 %vm4788_vm3, %v11910_v8  ;;  %v14255_v38 = vld [vmem:[%s18693_s3 + $0x50] sm:$0xff]   ;;  %v3623_v32 = vadd.f32 %v15926_v9, %v3528_v0 }
 0x19e   :  { %v3532_v21 = vmax.f32 %v15959_v13, %v15954_v61  ;;  %13027 = vmatpush3.bf16.msra.mxu0 %v14251_v7  ;;  %13034 = vmatprep.mubr.msk.bf16.mxu0 %vm14600_vm2, %v19003_v1  ;;  %v19054_v4 = vmax.f32 %v15222_v39, %v15224_v40  ;;  %v3710_v37 = vmax.f32 %v3622_v25, 0.0  ;;  %v14258_v39 = vld [vmem:[%s18693_s3 + $0x78] sm:$0xff]   ;;  %v14279_v0 = vld [vmem:[%s18693_s3 + $0x110] sm:$0xff]  }
 0x19f   :  { %v3530_v23 = vmax.f32 %v15971_v63, %v15963_v43  ;;  %13023 = vmatmul.mubr.msk.bf16.vlgmr.msra.gmra.mrb[176].mxu1 %vm4788_vm3, %v11911_v18  ;;  %13028 = vmatprep.subr.bf16.mxu0 %v19003_v1  ;;  %v3711_v40 = vmax.f32 %v3623_v32, 0.0  ;;  %v14265_v43 = vld [vmem:[%s18693_s3 + $0x98] sm:$0xff]  }
 0x1a0   :  { %13039 = vmatpush3.bf16.msra.mxu1 %v14252_v17  ;;  %13046 = vmatprep.mubr.msk.bf16.mxu1 %vm14600_vm2, %v19003_v1  ;;  %v14273_v61 = vld [vmem:[%s18693_s3 + $0xd8] sm:$0xff]  }
 0x1a1   :  { %v12830_v5 = vpop.f32.mrb[96].mxu0  ;;  %13040 = vmatprep.subr.bf16.mxu1 %v19003_v1  ;;  %v15993_v62 = vpop.f32.mrb[96].mxu1 }
 0x1a2   :  { %v15999_v33 = vmax.f32 %v19051_v2, %v12830_v5  ;;  %13029 = vmatpush3.bf16.msra.mxu0 %v14253_v59  ;;  %v2292_v7 = vpop.f32.mrb[97].mxu0  ;;  %v16001_v8 = vpop.f32.mrb[97].mxu1  ;;  %v14257_v5 = vld [vmem:[%s18693_s3 + $0x58] sm:$0xff]  }
 0x1a3   :  { %v16009_v60 = vmax.f32 %v19052_v6, %v2292_v7  ;;  %v12831_v12 = vpop.f32.mrb[98].mxu0  ;;  %13030 = vmatprep.subr.bf16.mxu0 %v19003_v1  ;;  %v16012_v42 = vpop.f32.mrb[98].mxu1  ;;  %v19055_v7 = vmax.f32 %v15244_v46, %v15246_v47  ;;  %v19057_v47 = vmax.f32 %v15261_v53, %v15263_v54 }
 0x1a4   :  { %v16017_v29 = vmax.f32 %v19053_v28, %v12831_v12  ;;  %13041 = vmatpush3.bf16.msra.mxu1 %v14254_v24  ;;  %v2295_v17 = vpop.f32.mrb[99].mxu0  ;;  %v16021_v18 = vpop.f32.mrb[99].mxu1  ;;  %v14259_v28 = vld [vmem:[%s18693_s3 + $0x80] sm:$0xff]  }
 0x1a5   :  { %v16030_v59 = vmax.f32 %v19054_v4, %v2295_v17  ;;  %13042 = vmatprep.subr.bf16.mxu1 %v19003_v1  ;;  %v11912_v17 = vpack.c.bf16 %v3710_v37, %v3710_v37 }
 0x1a6   :  { %13031 = vmatpush3.bf16.msra.mxu0 %v14255_v38 }
 0x1a7   :  { %13032 = vmatprep.subr.bf16.mxu0 %v19003_v1 }
 0x1a8   :  { %13043 = vmatpush3.bf16.msra.mxu1 %v14256_v31  ;;  %v19056_v31 = vmax.f32 %v15255_v50, %v15257_v51  ;;  %v14260_v50 = vld [vmem:[%s18693_s3 + $0xa0] sm:$0xff]   ;;  %v11913_v51 = vpack.c.bf16 %v3711_v40, %v3711_v40 }
 0x1a9   :  { %v12834_v25 = vpop.f32.mrb[100].mxu0  ;;  %13044 = vmatprep.subr.bf16.mxu1 %v19003_v1  ;;  %v16047_v2 = vpop.f32.mrb[100].mxu1 }
 0x1aa   :  { %v16052_v38 = vmax.f32 %v19055_v7, %v12834_v25  ;;  %13033 = vmatpush3.bf16.msra.mxu0 %v14257_v5  ;;  %v2308_v6 = vpop.f32.mrb[101].mxu0  ;;  %v16054_v12 = vpop.f32.mrb[101].mxu1 }
 0x1ab   :  { %v16062_v32 = vmax.f32 %v19056_v31, %v2308_v6  ;;  %v12835_v4 = vpop.f32.mrb[102].mxu0  ;;  %13050 = vmatprep.subr.bf16.mxu0 %v19003_v1  ;;  %v16065_v46 = vpop.f32.mrb[102].mxu1  ;;  %v19058_v6 = vmax.f32 %v15267_v56, %v15269_v57  ;;  %v14262_v57 = vld [vmem:[%s18693_s3 + $0xa8] sm:$0xff]  }
 0x1ac   :  { %v16070_v5 = vmax.f32 %v19057_v47, %v12835_v4  ;;  %13045 = vmatpush3.bf16.msra.mxu1 %v14258_v39  ;;  %v2311_v37 = vpop.f32.mrb[103].mxu0  ;;  %v16074_v7 = vpop.f32.mrb[103].mxu1  ;;  %v14261_v39 = vld [vmem:[%s18693_s3 + $0x88] sm:$0xff]   ;;  %v19059_v4 = vmax.f32 %v15285_v11, %v15287_v14  ;;  %v19061_v11 = vmax.f32 %v15301_v34, %v15303_v41  ;;  %v19062_v34 = vmax.f32 %v15307_v45, %v15309_v48  ;;  %v14266_v45 = vld [vmem:[%s18693_s3 + $0xb8] sm:$0xff]  }
 0x1ad   :  { %v16082_v31 = vmax.f32 %v19058_v6, %v2311_v37  ;;  %13035 = vmatmul.mubr.msk.bf16.vlgmr.msra.gmra.mrb[180].mxu0 %vm4788_vm3, %v11912_v17  ;;  %13062 = vmatprep.subr.bf16.mxu1 %v19003_v1  ;;  %v3624_v17 = vadd.f32 %v15926_v9, %v3529_v20  ;;  %v19060_v6 = vmax.f32 %v15295_v27, %v15297_v30  ;;  %v14264_v27 = vld [vmem:[%s18693_s3 + $0xb0] sm:$0xff]   ;;  %v19089_v56 = vld [vmem:[#allocation15_spill] sm:$0xff] }
 0x1ae   :  { %13051 = vmatpush3.bf16.msra.mxu0 %v14259_v28  ;;  %13058 = vmatprep.mubr.msk.bf16.mxu0 %vm14600_vm2, %v19003_v1  ;;  %v3625_v30 = vadd.f32 %v15926_v9, %v3530_v23 }
 0x1af   :  { %13047 = vmatmul.mubr.msk.bf16.vlgmr.msra.gmra.mrb[180].mxu1 %vm4788_vm3, %v11913_v51  ;;  %13052 = vmatprep.subr.bf16.mxu0 %v19003_v1  ;;  %v14263_v51 = vld [vmem:[%s18693_s3 + $0x90] sm:$0xff]  }
 0x1b0   :  { %13063 = vmatpush3.bf16.msra.mxu1 %v14260_v50  ;;  %13070 = vmatprep.mubr.msk.bf16.mxu1 %vm14600_vm2, %v19003_v1  ;;  %v3713_v48 = vmax.f32 %v3625_v30, 0.0  ;;  %v19064_v30 = vmax.f32 %v15335_v15, %v15337_v26  ;;  %v14268_v15 = vld [vmem:[%s18693_s3 + $0xe0] sm:$0xff]  }
 0x1b1   :  { %v12838_v40 = vpop.f32.mrb[104].mxu0  ;;  %13064 = vmatprep.subr.bf16.mxu1 %v19003_v1  ;;  %v16105_v28 = vpop.f32.mrb[104].mxu1 }
 0x1b2   :  { %v16114_v47 = vmax.f32 %v19059_v4, %v12838_v40  ;;  %13053 = vmatpush3.bf16.msra.mxu0 %v14261_v39  ;;  %v2324_v37 = vpop.f32.mrb[105].mxu0  ;;  %v16116_v50 = vpop.f32.mrb[105].mxu1  ;;  %v3712_v4 = vmax.f32 %v3624_v17, 0.0  ;;  %v11915_v26 = vpack.c.bf16 %v3713_v48, %v3713_v48 }
 0x1b3   :  { %v16124_v54 = vmax.f32 %v19060_v6, %v2324_v37  ;;  %v12839_v16 = vpop.f32.mrb[106].mxu0  ;;  %13054 = vmatprep.subr.bf16.mxu0 %v19003_v1  ;;  %v16127_v22 = vpop.f32.mrb[106].mxu1 }
 0x1b4   :  { %v16132_v14 = vmax.f32 %v19061_v11, %v12839_v16  ;;  %13065 = vmatpush3.bf16.msra.mxu1 %v14262_v57  ;;  %v2327_v39 = vpop.f32.mrb[107].mxu0  ;;  %v16136_v40 = vpop.f32.mrb[107].mxu1 }
 0x1b5   :  { %v16148_v41 = vmax.f32 %v19062_v34, %v2327_v39  ;;  %13066 = vmatprep.subr.bf16.mxu1 %v19003_v1  ;;  %v14267_v39 = vld [vmem:[%s18693_s3 + $0xc0] sm:$0xff]  }
 0x1b6   :  { %13055 = vmatpush3.bf16.msra.mxu0 %v14263_v51  ;;  %v19063_v51 = vmax.f32 %v15325_v49, %v15327_v58  ;;  %v19065_v49 = vmax.f32 %v15341_v55, %v15343_v52  ;;  %v14271_v55 = vld [vmem:[%s18693_s3 + $0xd0] sm:$0xff]  }
 0x1b7   :  { %13056 = vmatprep.subr.bf16.mxu0 %v19003_v1 }
 0x1b8   :  { %13067 = vmatpush3.bf16.msra.mxu1 %v14264_v27  ;;  %v11914_v27 = vpack.c.bf16 %v3712_v4, %v3712_v4 }
 0x1b9   :  { %v12842_v23 = vpop.f32.mrb[108].mxu0  ;;  %13068 = vmatprep.subr.bf16.mxu1 %v19003_v1  ;;  %v16165_v17 = vpop.f32.mrb[108].mxu1 }
 0x1ba   :  { %v16170_v6 = vmax.f32 %v19063_v51, %v12842_v23  ;;  %13057 = vmatpush3.bf16.msra.mxu0 %v14265_v43  ;;  %v2340_v16 = vpop.f32.mrb[109].mxu0  ;;  %v16172_v11 = vpop.f32.mrb[109].mxu1  ;;  %v19072_v23 = vld [vmem:[#allocation6_spill] sm:$0xff] }
 0x1bb   :  { %v16180_v34 = vmax.f32 %v19064_v30, %v2340_v16  ;;  %v12843_v37 = vpop.f32.mrb[110].mxu0  ;;  %13074 = vmatprep.subr.bf16.mxu0 %v19003_v1  ;;  %v16183_v58 = vpop.f32.mrb[110].mxu1  ;;  %v19066_v16 = vld [vmem:[#allocation2_spill] sm:$0xff]  ;;  %v19067_v30 = vld [vmem:[#allocation3_spill] sm:$0xff] }
 0x1bc   :  { %v16188_v43 = vmax.f32 %v19065_v49, %v12843_v37  ;;  %13069 = vmatpush3.bf16.msra.mxu1 %v14266_v45  ;;  %v2343_v4 = vpop.f32.mrb[111].mxu0  ;;  %v16192_v51 = vpop.f32.mrb[111].mxu1  ;;  %v19068_v20 = vmax.f32 %v19066_v16, %v19067_v30  ;;  %v14269_v37 = vld [vmem:[%s18693_s3 + $0xc8] sm:$0xff]   ;;  %v19069_v49 = vld [vmem:[#allocation4_spill] sm:$0xff] }
 0x1bd   :  { %13059 = vmatmul.mubr.msk.bf16.vlgmr.msra.gmra.mrb[184].mxu0 %vm4788_vm3, %v11914_v27  ;;  %13086 = vmatprep.subr.bf16.mxu1 %v19003_v1  ;;  %v14270_v45 = vld [vmem:[%s18693_s3 + $0xe8] sm:$0xff]   ;;  %v3626_v27 = vadd.f32 %v15926_v9, %v3531_v19  ;;  %v19076_v19 = vld [vmem:[#allocation8_spill] sm:$0xff] }
 0x1be   :  { %v16200_v63 = vmax.f32 %v19068_v20, %v2343_v4  ;;  %13075 = vmatpush3.bf16.msra.mxu0 %v14267_v39  ;;  %13082 = vmatprep.mubr.msk.bf16.mxu0 %vm14600_vm2, %v19003_v1  ;;  %v19070_v4 = vld [vmem:[#allocation5_spill] sm:$0xff]  ;;  %v19073_v20 = vld [vmem:[#allocation7_spill] sm:$0xff] }
 0x1bf   :  { %13071 = vmatmul.mubr.msk.bf16.vlgmr.msra.gmra.mrb[184].mxu1 %vm4788_vm3, %v11915_v26  ;;  %13076 = vmatprep.subr.bf16.mxu0 %v19003_v1  ;;  %v19074_v52 = vmax.f32 %v19072_v23, %v19073_v20  ;;  %v14272_v23 = vld [vmem:[%s18693_s3 + $0xf0] sm:$0xff]   ;;  %v19080_v20 = vld [vmem:[#allocation10_spill] sm:$0xff] }
 0x1c0   :  { %13087 = vmatpush3.bf16.msra.mxu1 %v14268_v15  ;;  %13094 = vmatprep.mubr.msk.bf16.mxu1 %vm14600_vm2, %v19003_v1  ;;  %v19071_v15 = vmax.f32 %v19069_v49, %v19070_v4 }
 0x1c1   :  { %v12846_v48 = vpop.f32.mrb[112].mxu0  ;;  %13088 = vmatprep.subr.bf16.mxu1 %v19003_v1  ;;  %v16223_v39 = vpop.f32.mrb[112].mxu1 }
 0x1c2   :  { %v16232_v26 = vmax.f32 %v19071_v15, %v12846_v48  ;;  %13077 = vmatpush3.bf16.msra.mxu0 %v14269_v37  ;;  %v2356_v16 = vpop.f32.mrb[113].mxu0  ;;  %v16234_v30 = vpop.f32.mrb[113].mxu1  ;;  %v19077_v48 = vld [vmem:[#allocation9_spill] sm:$0xff] }
 0x1c3   :  { %v16242_v57 = vmax.f32 %v19074_v52, %v2356_v16  ;;  %v12847_v35 = vpop.f32.mrb[114].mxu0  ;;  %13078 = vmatprep.subr.bf16.mxu0 %v19003_v1  ;;  %v16245_v3 = vpop.f32.mrb[114].mxu1  ;;  %v19078_v37 = vmax.f32 %v19076_v19, %v19077_v48  ;;  %v3627_v52 = vadd.f32 %v15926_v9, %v3532_v21  ;;  %v19081_v16 = vld [vmem:[#allocation11_spill] sm:$0xff]  ;;  %v3714_v48 = vmax.f32 %v3626_v27, 0.0  ;;  %v14274_v21 = vld [vmem:[%s18693_s3 + $0xf8] sm:$0xff]  }
 0x1c4   :  { %19075 = vst [vmem:[#allocation2_spill] sm:$0xff] %v16245_v3  ;;  %13089 = vmatpush3.bf16.msra.mxu1 %v14270_v45  ;;  %v2359_v15 = vpop.f32.mrb[115].mxu0  ;;  %v16254_v25 = vpop.f32.mrb[115].mxu1 }
 0x1c5   :  { %v16250_v49 = vmax.f32 %v19078_v37, %v12847_v35  ;;  %v19082_v35 = vmax.f32 %v19080_v20, %v19081_v16  ;;  %13090 = vmatprep.subr.bf16.mxu1 %v19003_v1  ;;  %v19085_v16 = vld [vmem:[#allocation13_spill] sm:$0xff]  ;;  %v11916_v45 = vpack.c.bf16 %v3714_v48, %v3714_v48 }
 0x1c6   :  { %13079 = vmatpush3.bf16.msra.mxu0 %v14271_v55  ;;  %v19084_v55 = vld [vmem:[#allocation12_spill] sm:$0xff] }
 0x1c7   :  { %19079 = vst [vmem:[#allocation3_spill] sm:$0xff] %v16250_v49  ;;  %v16266_v19 = vmax.f32 %v19082_v35, %v2359_v15  ;;  %13080 = vmatprep.subr.bf16.mxu0 %v19003_v1  ;;  %v3715_v15 = vmax.f32 %v3627_v52, 0.0  ;;  %v19086_v35 = vmax.f32 %v19084_v55, %v19085_v16  ;;  %v19088_v52 = vld [vmem:[#allocation14_spill] sm:$0xff] }
 0x1c8   :  { %13091 = vmatpush3.bf16.msra.mxu1 %v14272_v23  ;;  %v14275_v23 = vld [vmem:[%s18693_s3 + $0x100] sm:$0xff]   ;;  %v19090_v53 = vmax.f32 %v19088_v52, %v19089_v56  ;;  %v19097_v52 = vld [vmem:[#allocation19_spill] sm:$0xff] }
 0x1c9   :  { %v12850_v27 = vpop.f32.mrb[116].mxu0  ;;  %13092 = vmatprep.subr.bf16.mxu1 %v19003_v1  ;;  %v16283_v20 = vpop.f32.mrb[116].mxu1  ;;  %v11917_v56 = vpack.c.bf16 %v3715_v15, %v3715_v15  ;;  %v14277_v15 = vld [vmem:[%s18693_s3 + $0x108] sm:$0xff]  }
 0x1ca   :  { %19083 = vst [vmem:[#allocation4_spill] sm:$0xff] %v16283_v20  ;;  %v16288_v37 = vmax.f32 %v19086_v35, %v12850_v27  ;;  %13081 = vmatpush3.bf16.msra.mxu0 %v14273_v61  ;;  %v2372_v4 = vpop.f32.mrb[117].mxu0  ;;  %v16290_v13 = vpop.f32.mrb[117].mxu1  ;;  %v19092_v27 = vld [vmem:[#allocation16_spill] sm:$0xff]  ;;  %v19093_v61 = vld [vmem:[#allocation17_spill] sm:$0xff] }
 0x1cb   :  { %v16298_v24 = vmax.f32 %v19090_v53, %v2372_v4  ;;  %v12851_v44 = vpop.f32.mrb[118].mxu0  ;;  %13098 = vmatprep.subr.bf16.mxu0 %v19003_v1  ;;  %v16301_v55 = vpop.f32.mrb[118].mxu1  ;;  %v19094_v16 = vmax.f32 %v19092_v27, %v19093_v61  ;;  %v14276_v53 = vld [vmem:[%s18693_s3 + $0x120] sm:$0xff]   ;;  %v19100_v61 = vmax.f32 %v16009_v60, %v16001_v8 }
 0x1cc   :  { %19087 = vst [vmem:[#allocation5_spill] sm:$0xff] %v16288_v37  ;;  %19091 = vst [vmem:[#allocation6_spill] sm:$0xff] %v16301_v55  ;;  %13093 = vmatpush3.bf16.msra.mxu1 %v14274_v21  ;;  %v2375_v48 = vpop.f32.mrb[119].mxu0  ;;  %v16310_v36 = vpop.f32.mrb[119].mxu1  ;;  %v19096_v4 = vld [vmem:[#allocation18_spill] sm:$0xff] }
 0x1cd   :  { %v16306_v35 = vmax.f32 %v19094_v16, %v12851_v44  ;;  %v19098_v3 = vmax.f32 %v19096_v4, %v19097_v52  ;;  %13083 = vmatmul.mubr.msk.bf16.vlgmr.msra.gmra.mrb[188].mxu0 %vm4788_vm3, %v11916_v45  ;;  %13110 = vmatprep.subr.bf16.mxu1 %v19003_v1  ;;  %v14278_v45 = vld [vmem:[%s18693_s3 + $0x128] sm:$0xff]   ;;  %v3628_v16 = vadd.f32 %v15926_v9, %v19100_v61  ;;  %v19112_v61 = vld [vmem:[#allocation25_spill] sm:$0xff] }
 0x1ce   :  { %13099 = vmatpush3.bf16.msra.mxu0 %v14275_v23  ;;  %13106 = vmatprep.mubr.msk.bf16.mxu0 %vm14600_vm2, %v19003_v1  ;;  %v19107_v44 = vld [vmem:[#allocation23_spill] sm:$0xff] }
 0x1cf   :  { %19095 = vst [vmem:[#allocation7_spill] sm:$0xff] %v16306_v35  ;;  %v16318_v49 = vmax.f32 %v19098_v3, %v2375_v48  ;;  %13095 = vmatmul.mubr.msk.bf16.vlgmr.msra.gmra.mrb[188].mxu1 %vm4788_vm3, %v11917_v56  ;;  %13100 = vmatprep.subr.bf16.mxu0 %v19003_v1  ;;  %v19101_v48 = vld [vmem:[#allocation20_spill] sm:$0xff]  ;;  %v19102_v56 = vld [vmem:[#allocation21_spill] sm:$0xff]  ;;  %v19106_v3 = vld [vmem:[#allocation22_spill] sm:$0xff] }
 0x1d0   :  { %13111 = vmatpush3.bf16.msra.mxu1 %v14276_v53  ;;  %13118 = vmatprep.mubr.msk.bf16.mxu1 %vm14600_vm2, %v19003_v1  ;;  %v19103_v53 = vmax.f32 %v19101_v48, %v19102_v56  ;;  %v19108_v55 = vmax.f32 %v19106_v3, %v19107_v44  ;;  %v19116_v44 = vmax.f32 %v16030_v59, %v16021_v18  ;;  %v14281_v18 = vld [vmem:[%s18693_s3 + $0x118] sm:$0xff]  }
 0x1d1   :  { %v12854_v23 = vpop.f32.mrb[120].mxu0  ;;  %13112 = vmatprep.subr.bf16.mxu1 %v19003_v1  ;;  %v16341_v27 = vpop.f32.mrb[120].mxu1 }
 0x1d2   :  { %19099 = vst [vmem:[#allocation8_spill] sm:$0xff] %v16341_v27  ;;  %v16350_v4 = vmax.f32 %v19103_v53, %v12854_v23  ;;  %13101 = vmatpush3.bf16.msra.mxu0 %v14277_v15  ;;  %v2388_v52 = vpop.f32.mrb[121].mxu0  ;;  %v16352_v21 = vpop.f32.mrb[121].mxu1  ;;  %v19111_v23 = vld [vmem:[#allocation24_spill] sm:$0xff]  ;;  %v3629_v3 = vadd.f32 %v15926_v9, %v19116_v44 }
 0x1d3   :  { %19105 = vst [vmem:[#allocation10_spill] sm:$0xff] %v16352_v21  ;;  %v16360_v35 = vmax.f32 %v19108_v55, %v2388_v52  ;;  %v12855_v8 = vpop.f32.mrb[122].mxu0  ;;  %13102 = vmatprep.subr.bf16.mxu0 %v19003_v1  ;;  %v16363_v60 = vpop.f32.mrb[122].mxu1  ;;  %v19113_v15 = vmax.f32 %v19111_v23, %v19112_v61  ;;  %v14280_v55 = vld [vmem:[%s18693_s3 + $0x130] sm:$0xff]   ;;  %v19117_v52 = vld [vmem:[#allocation26_spill] sm:$0xff]  ;;  %v19118_v23 = vld [vmem:[#allocation27_spill] sm:$0xff] }
 0x1d4   :  { %19104 = vst [vmem:[#allocation9_spill] sm:$0xff] %v16350_v4  ;;  %19110 = vst [vmem:[#allocation12_spill] sm:$0xff] %v16363_v60  ;;  %13113 = vmatpush3.bf16.msra.mxu1 %v14278_v45  ;;  %v2391_v53 = vpop.f32.mrb[123].mxu0  ;;  %v16372_v20 = vpop.f32.mrb[123].mxu1  ;;  %v3717_v44 = vmax.f32 %v3629_v3, 0.0  ;;  %v19125_v3 = vld [vmem:[#allocation30_spill] sm:$0xff] }
 0x1d5   :  { %19109 = vst [vmem:[#allocation11_spill] sm:$0xff] %v16360_v35  ;;  %v16368_v48 = vmax.f32 %v19113_v15, %v12855_v8  ;;  %19115 = vst [vmem:[#allocation14_spill] sm:$0xff] %v16372_v20  ;;  %v19119_v8 = vmax.f32 %v19117_v52, %v19118_v23  ;;  %13114 = vmatprep.subr.bf16.mxu1 %v19003_v1  ;;  %v3716_v15 = vmax.f32 %v3628_v16, 0.0  ;;  %v19123_v23 = vld [vmem:[#allocation29_spill] sm:$0xff] }
 0x1d6   :  { %13103 = vmatpush3.bf16.msra.mxu0 %v14279_v0  ;;  %v19122_v0 = vld [vmem:[#allocation28_spill] sm:$0xff] }
 0x1d7   :  { %19114 = vst [vmem:[#allocation13_spill] sm:$0xff] %v16368_v48  ;;  %v16384_v61 = vmax.f32 %v19119_v8, %v2391_v53  ;;  %13104 = vmatprep.subr.bf16.mxu0 %v19003_v1  ;;  %v14282_v53 = vld [vmem:[%s18693_s3 + $0x138] sm:$0xff]   ;;  %v19124_v8 = vmax.f32 %v19122_v0, %v19123_v23  ;;  %v11918_v60 = vpack.c.bf16 %v3716_v15, %v3716_v15  ;;  %v19126_v48 = vld [vmem:[#allocation31_spill] sm:$0xff] }
 0x1d8   :  { %13115 = vmatpush3.bf16.msra.mxu1 %v14280_v55  ;;  %v14283_v55 = vld [vmem:[%s18693_s3 + $0x140] sm:$0xff]   ;;  %v19127_v27 = vmax.f32 %v19125_v3, %v19126_v48  ;;  %v11919_v48 = vpack.c.bf16 %v3717_v44, %v3717_v44  ;;  %v19134_v3 = vld [vmem:[#allocation35_spill] sm:$0xff] }
 0x1d9   :  { %19120 = vst [vmem:[#allocation15_spill] sm:$0xff] %v16384_v61  ;;  %v12858_v16 = vpop.f32.mrb[124].mxu0  ;;  %13116 = vmatprep.subr.bf16.mxu1 %v19003_v1  ;;  %v16401_v52 = vpop.f32.mrb[124].mxu1  ;;  %v14285_v44 = vld [vmem:[%s18693_s3 + $0x148] sm:$0xff]   ;;  %v14287_v61 = vld [vmem:[%s18693_s3 + $0x150] sm:$0xff]  }
 0x1da   :  { %19121 = vst [vmem:[#allocation16_spill] sm:$0xff] %v16401_v52  ;;  %v16406_v56 = vmax.f32 %v19124_v8, %v12858_v16  ;;  %13105 = vmatpush3.bf16.msra.mxu0 %v14281_v18  ;;  %v2404_v59 = vpop.f32.mrb[125].mxu0  ;;  %v16408_v45 = vpop.f32.mrb[125].mxu1  ;;  %v19129_v16 = vld [vmem:[#allocation32_spill] sm:$0xff]  ;;  %v19130_v18 = vld [vmem:[#allocation33_spill] sm:$0xff] }
 0x1db   :  { %v16416_v4 = vmax.f32 %v19127_v27, %v2404_v59  ;;  %v12859_v20 = vpop.f32.mrb[126].mxu0  ;;  %13122 = vmatprep.subr.bf16.mxu0 %v19003_v1  ;;  %v16419_v0 = vpop.f32.mrb[126].mxu1  ;;  %v19131_v23 = vmax.f32 %v19129_v16, %v19130_v18  ;;  %v14284_v27 = vld [vmem:[%s18693_s3 + $0x160] sm:$0xff]   ;;  %v19137_v18 = vmax.f32 %v15999_v33, %v15993_v62 }
 0x1dc   :  { %19128 = vst [vmem:[#allocation17_spill] sm:$0xff] %v16419_v0  ;;  %13117 = vmatpush3.bf16.msra.mxu1 %v14282_v53  ;;  %v2407_v15 = vpop.f32.mrb[127].mxu0  ;;  %v16428_v21 = vpop.f32.mrb[127].mxu1  ;;  %v19133_v59 = vld [vmem:[#allocation34_spill] sm:$0xff] }
 0x1dd   :  { %v16424_v8 = vmax.f32 %v19131_v23, %v12859_v20  ;;  %v19135_v35 = vmax.f32 %v19133_v59, %v19134_v3  ;;  %13107 = vmatmul.mubr.msk.bf16.vlgmr.msra.gmra.mrb[192].mxu0 %vm4788_vm3, %v11918_v60  ;;  %13134 = vmatprep.subr.bf16.mxu1 %v19003_v1  ;;  %v14286_v60 = vld [vmem:[%s18693_s3 + $0x168] sm:$0xff]   ;;  %v3630_v23 = vadd.f32 %v15926_v9, %v19137_v18  ;;  %v19149_v18 = vld [vmem:[#allocation41_spill] sm:$0xff] }
 0x1de   :  { %13123 = vmatpush3.bf16.msra.mxu0 %v14283_v55  ;;  %13130 = vmatprep.mubr.msk.bf16.mxu0 %vm14600_vm2, %v19003_v1  ;;  %v19144_v20 = vld [vmem:[#allocation39_spill] sm:$0xff] }
 0x1df   :  { %19132 = vst [vmem:[#allocation18_spill] sm:$0xff] %v16424_v8  ;;  %v16436_v37 = vmax.f32 %v19135_v35, %v2407_v15  ;;  %13119 = vmatmul.mubr.msk.bf16.vlgmr.msra.gmra.mrb[192].mxu1 %vm4788_vm3, %v11919_v48  ;;  %13124 = vmatprep.subr.bf16.mxu0 %v19003_v1  ;;  %v19138_v15 = vld [vmem:[#allocation36_spill] sm:$0xff]  ;;  %v19139_v48 = vld [vmem:[#allocation37_spill] sm:$0xff]  ;;  %v19143_v35 = vld [vmem:[#allocation38_spill] sm:$0xff] }
 0x1e0   :  { %13135 = vmatpush3.bf16.msra.mxu1 %v14284_v27  ;;  %13142 = vmatprep.mubr.msk.bf16.mxu1 %vm14600_vm2, %v19003_v1  ;;  %v19140_v27 = vmax.f32 %v19138_v15, %v19139_v48  ;;  %v19145_v0 = vmax.f32 %v19143_v35, %v19144_v20  ;;  %v19153_v20 = vmax.f32 %v16017_v29, %v16012_v42  ;;  %v14289_v42 = vld [vmem:[%s18693_s3 + $0x158] sm:$0xff]  }
 0x1e1   :  { %v12862_v55 = vpop.f32.mrb[128].mxu0  ;;  %13136 = vmatprep.subr.bf16.mxu1 %v19003_v1  ;;  %v16459_v16 = vpop.f32.mrb[128].mxu1  ;;  %v14290_v29 = vld [vmem:[%s18693_s3 + $0x178] sm:$0xff]  }
 0x1e2   :  { %19136 = vst [vmem:[#allocation19_spill] sm:$0xff] %v16459_v16  ;;  %v16468_v59 = vmax.f32 %v19140_v27, %v12862_v55  ;;  %13125 = vmatpush3.bf16.msra.mxu0 %v14285_v44  ;;  %v2420_v3 = vpop.f32.mrb[129].mxu0  ;;  %v16470_v53 = vpop.f32.mrb[129].mxu1  ;;  %v19148_v55 = vld [vmem:[#allocation40_spill] sm:$0xff]  ;;  %v3631_v35 = vadd.f32 %v15926_v9, %v19153_v20 }
 0x1e3   :  { %19142 = vst [vmem:[#allocation21_spill] sm:$0xff] %v16470_v53  ;;  %v16478_v8 = vmax.f32 %v19145_v0, %v2420_v3  ;;  %v12863_v62 = vpop.f32.mrb[130].mxu0  ;;  %13126 = vmatprep.subr.bf16.mxu0 %v19003_v1  ;;  %v16481_v33 = vpop.f32.mrb[130].mxu1  ;;  %v19150_v44 = vmax.f32 %v19148_v55, %v19149_v18  ;;  %v14288_v0 = vld [vmem:[%s18693_s3 + $0x170] sm:$0xff]   ;;  %v19154_v3 = vld [vmem:[#allocation42_spill] sm:$0xff]  ;;  %v19155_v55 = vld [vmem:[#allocation43_spill] sm:$0xff] }
 0x1e4   :  { %19141 = vst [vmem:[#allocation20_spill] sm:$0xff] %v16468_v59  ;;  %19147 = vst [vmem:[#allocation23_spill] sm:$0xff] %v16481_v33  ;;  %13137 = vmatpush3.bf16.msra.mxu1 %v14286_v60  ;;  %v2423_v27 = vpop.f32.mrb[131].mxu0  ;;  %v16490_v52 = vpop.f32.mrb[131].mxu1  ;;  %v19164_v33 = vld [vmem:[#allocation47_spill] sm:$0xff] }
 0x1e5   :  { %19146 = vst [vmem:[#allocation22_spill] sm:$0xff] %v16478_v8  ;;  %v16486_v15 = vmax.f32 %v19150_v44, %v12863_v62  ;;  %19152 = vst [vmem:[#allocation25_spill] sm:$0xff] %v16490_v52  ;;  %v19156_v62 = vmax.f32 %v19154_v3, %v19155_v55  ;;  %13138 = vmatprep.subr.bf16.mxu1 %v19003_v1  ;;  %v3718_v44 = vmax.f32 %v3630_v23, 0.0  ;;  %v19160_v3 = vld [vmem:[#allocation45_spill] sm:$0xff] }
 0x1e6   :  { %13127 = vmatpush3.bf16.msra.mxu0 %v14287_v61  ;;  %v19159_v61 = vld [vmem:[#allocation44_spill] sm:$0xff] }
 0x1e7   :  { %19151 = vst [vmem:[#allocation24_spill] sm:$0xff] %v16486_v15  ;;  %v16502_v18 = vmax.f32 %v19156_v62, %v2423_v27  ;;  %13128 = vmatprep.subr.bf16.mxu0 %v19003_v1  ;;  %v3719_v27 = vmax.f32 %v3631_v35, 0.0  ;;  %v19161_v55 = vmax.f32 %v19159_v61, %v19160_v3  ;;  %v11920_v60 = vpack.c.bf16 %v3718_v44, %v3718_v44  ;;  %v19163_v35 = vld [vmem:[#allocation46_spill] sm:$0xff] }
 0x1e8   :  { %13139 = vmatpush3.bf16.msra.mxu1 %v14288_v0  ;;  %v14291_v0 = vld [vmem:[%s18693_s3 + $0x180] sm:$0xff]   ;;  %v19165_v15 = vmax.f32 %v19163_v35, %v19164_v33  ;;  %v19173_v35 = vld [vmem:[#allocation51_spill] sm:$0xff] }
 0x1e9   :  { %19157 = vst [vmem:[#allocation26_spill] sm:$0xff] %v16502_v18  ;;  %v12866_v23 = vpop.f32.mrb[132].mxu0  ;;  %13140 = vmatprep.subr.bf16.mxu1 %v19003_v1  ;;  %v16519_v20 = vpop.f32.mrb[132].mxu1  ;;  %v14292_v33 = vld [vmem:[%s18693_s3 + $0x1a0] sm:$0xff]  }
 0x1ea   :  { %19158 = vst [vmem:[#allocation27_spill] sm:$0xff] %v16519_v20  ;;  %v16524_v62 = vmax.f32 %v19161_v55, %v12866_v23  ;;  %13129 = vmatpush3.bf16.msra.mxu0 %v14289_v42  ;;  %v2436_v48 = vpop.f32.mrb[133].mxu0  ;;  %v16526_v9 = vpop.f32.mrb[133].mxu1  ;;  %v19167_v23 = vld [vmem:[#allocation48_spill] sm:$0xff]  ;;  %v19168_v42 = vld [vmem:[#allocation49_spill] sm:$0xff] }
 0x1eb   :  { %v16534_v16 = vmax.f32 %v19165_v15, %v2436_v48  ;;  %v12867_v59 = vpop.f32.mrb[134].mxu0  ;;  %13146 = vmatprep.subr.bf16.mxu0 %v19003_v1  ;;  %v16537_v61 = vpop.f32.mrb[134].mxu1  ;;  %v19169_v3 = vmax.f32 %v19167_v23, %v19168_v42  ;;  %v11921_v15 = vpack.c.bf16 %v3719_v27, %v3719_v27  ;;  %v19172_v48 = vld [vmem:[#allocation50_spill] sm:$0xff]  ;;  %v14293_v27 = vld [vmem:[%s18693_s3 + $0x188] sm:$0xff]  }
 0x1ec   :  { %19162 = vst [vmem:[#allocation28_spill] sm:$0xff] %v16524_v62  ;;  %19166 = vst [vmem:[#allocation29_spill] sm:$0xff] %v16537_v61  ;;  %13141 = vmatpush3.bf16.msra.mxu1 %v14290_v29  ;;  %v2439_v44 = vpop.f32.mrb[135].mxu0  ;;  %v16546_v18 = vpop.f32.mrb[135].mxu1  ;;  %v19174_v53 = vmax.f32 %v19172_v48, %v19173_v35  ;;  %v16582_v42 = vld [vmem:[%s18694_s2] ss:$0 sm:$0xff] }
 0x1ed   :  { %v16542_v55 = vmax.f32 %v19169_v3, %v12867_v59  ;;  %19171 = vst [vmem:[#allocation31_spill] sm:$0xff] %v16546_v18  ;;  %13131 = vmatmul.mubr.msk.bf16.vlgmr.msra.gmra.mrb[196].mxu0 %vm4788_vm3, %v11920_v60  ;;  %13158 = vmatprep.subr.bf16.mxu1 %v19003_v1  ;;  %v14294_v60 = vld [vmem:[%s18693_s3 + $0x1a8] sm:$0xff]   ;;  %v19176_v3 = vmax.f32 %v16062_v32, %v16054_v12  ;;  %v19182_v59 = vld [vmem:[#allocation54_spill] sm:$0xff] }
 0x1ee   :  { %v16554_v8 = vmax.f32 %v19174_v53, %v2439_v44  ;;  %13147 = vmatpush3.bf16.msra.mxu0 %v14291_v0  ;;  %13154 = vmatprep.mubr.msk.bf16.mxu0 %vm14600_vm2, %v19003_v1  ;;  %v14295_v53 = vld [vmem:[%s18693_s3 + $0x190] sm:$0xff]   ;;  %v19183_v61 = vld [vmem:[#allocation55_spill] sm:$0xff] }
 0x1ef   :  { %19170 = vst [vmem:[#allocation30_spill] sm:$0xff] %v16542_v55  ;;  %13143 = vmatmul.mubr.msk.bf16.vlgmr.msra.gmra.mrb[196].mxu1 %vm4788_vm3, %v11921_v15  ;;  %13148 = vmatprep.subr.bf16.mxu0 %v19003_v1  ;;  %v3632_v44 = vadd.f32 %v16582_v42, %v19176_v3  ;;  %v19178_v15 = vld [vmem:[#allocation53_spill] sm:$0xff]  ;;  %v19184_v55 = vmax.f32 %v19182_v59, %v19183_v61  ;;  %v14296_v61 = vld [vmem:[%s18693_s3 + $0x1b0] sm:$0xff]  }
 0x1f0   :  { %13159 = vmatpush3.bf16.msra.mxu1 %v14292_v33  ;;  %13166 = vmatprep.mubr.msk.bf16.mxu1 %vm14600_vm2, %v19003_v1  ;;  %v19177_v33 = vld [vmem:[#allocation52_spill] sm:$0xff]  ;;  %v19188_v3 = vld [vmem:[#allocation57_spill] sm:$0xff] }
 0x1f1   :  { %v12870_v0 = vpop.f32.mrb[136].mxu0  ;;  %13160 = vmatprep.subr.bf16.mxu1 %v19003_v1  ;;  %v16577_v23 = vpop.f32.mrb[136].mxu1  ;;  %v19179_v48 = vmax.f32 %v19177_v33, %v19178_v15 }
 0x1f2   :  { %19175 = vst [vmem:[#allocation32_spill] sm:$0xff] %v16577_v23  ;;  %13149 = vmatpush3.bf16.msra.mxu0 %v14293_v27  ;;  %v2452_v29 = vpop.f32.mrb[137].mxu0  ;;  %v16593_v52 = vpop.f32.mrb[137].mxu1 }
 0x1f3   :  { %v16591_v35 = vmax.f32 %v19179_v48, %v12870_v0  ;;  %19181 = vst [vmem:[#allocation34_spill] sm:$0xff] %v16593_v52  ;;  %v16601_v20 = vmax.f32 %v19184_v55, %v2452_v29  ;;  %v12871_v12 = vpop.f32.mrb[138].mxu0  ;;  %13150 = vmatprep.subr.bf16.mxu0 %v19003_v1  ;;  %v16604_v32 = vpop.f32.mrb[138].mxu1  ;;  %v19187_v0 = vld [vmem:[#allocation56_spill] sm:$0xff]  ;;  %v19192_v55 = vmax.f32 %v16082_v31, %v16074_v7  ;;  %v19193_v29 = vld [vmem:[#allocation58_spill] sm:$0xff]  ;;  %v14297_v7 = vld [vmem:[%s18693_s3 + $0x198] sm:$0xff]  }
 0x1f4   :  { %19186 = vst [vmem:[#allocation36_spill] sm:$0xff] %v16604_v32  ;;  %v19189_v27 = vmax.f32 %v19187_v0, %v19188_v3  ;;  %13161 = vmatpush3.bf16.msra.mxu1 %v14294_v60  ;;  %v2455_v48 = vpop.f32.mrb[139].mxu0  ;;  %v16613_v62 = vpop.f32.mrb[139].mxu1  ;;  %v19194_v0 = vld [vmem:[#allocation59_spill] sm:$0xff] }
 0x1f5   :  { %19180 = vst [vmem:[#allocation33_spill] sm:$0xff] %v16591_v35  ;;  %19185 = vst [vmem:[#allocation35_spill] sm:$0xff] %v16601_v20  ;;  %v3633_v59 = vadd.f32 %v16582_v42, %v19192_v55  ;;  %13162 = vmatprep.subr.bf16.mxu1 %v19003_v1 }
 0x1f6   :  { %v16609_v33 = vmax.f32 %v19189_v27, %v12871_v12  ;;  %19191 = vst [vmem:[#allocation38_spill] sm:$0xff] %v16613_v62  ;;  %v19195_v12 = vmax.f32 %v19193_v29, %v19194_v0  ;;  %v3720_v27 = vmax.f32 %v3632_v44, 0.0  ;;  %13151 = vmatpush3.bf16.msra.mxu0 %v14295_v53  ;;  %v19198_v53 = vld [vmem:[#allocation60_spill] sm:$0xff]  ;;  %v19199_v0 = vld [vmem:[#allocation61_spill] sm:$0xff] }
 0x1f7   :  { %13152 = vmatprep.subr.bf16.mxu0 %v19003_v1  ;;  %v3721_v55 = vmax.f32 %v3633_v59, 0.0  ;;  %v19202_v59 = vld [vmem:[#allocation62_spill] sm:$0xff] }
 0x1f8   :  { %19190 = vst [vmem:[#allocation37_spill] sm:$0xff] %v16609_v33  ;;  %v16625_v3 = vmax.f32 %v19195_v12, %v2455_v48  ;;  %13163 = vmatpush3.bf16.msra.mxu1 %v14296_v61  ;;  %v14298_v48 = vld [vmem:[%s18693_s3 + $0x1b8] sm:$0xff]   ;;  %v19200_v12 = vmax.f32 %v19198_v53, %v19199_v0  ;;  %v14299_v61 = vld [vmem:[%s18693_s3 + $0x1c0] sm:$0xff]   ;;  %v11922_v32 = vpack.c.bf16 %v3720_v27, %v3720_v27  ;;  %v19203_v33 = vld [vmem:[#allocation63_spill] sm:$0xff] }
 0x1f9   :  { %v12874_v44 = vpop.f32.mrb[140].mxu0  ;;  %13164 = vmatprep.subr.bf16.mxu1 %v19003_v1  ;;  %v16642_v29 = vpop.f32.mrb[140].mxu1  ;;  %v19204_v23 = vmax.f32 %v19202_v59, %v19203_v33  ;;  %v11923_v33 = vpack.c.bf16 %v3721_v55, %v3721_v55  ;;  %v19211_v59 = vld [vmem:[#allocation67_spill] sm:$0xff] }
 0x1fa   :  { %19196 = vst [vmem:[#allocation39_spill] sm:$0xff] %v16625_v3  ;;  %19197 = vst [vmem:[#allocation40_spill] sm:$0xff] %v16642_v29  ;;  %v16647_v15 = vmax.f32 %v19200_v12, %v12874_v44  ;;  %13153 = vmatpush3.bf16.msra.mxu0 %v14297_v7  ;;  %v2468_v31 = vpop.f32.mrb[141].mxu0  ;;  %v16649_v60 = vpop.f32.mrb[141].mxu1  ;;  %v19206_v44 = vld [vmem:[#allocation64_spill] sm:$0xff]  ;;  %v19207_v7 = vld [vmem:[#allocation65_spill] sm:$0xff] }
 0x1fb   :  { %v16657_v35 = vmax.f32 %v19204_v23, %v2468_v31  ;;  %v12875_v62 = vpop.f32.mrb[142].mxu0  ;;  %13170 = vmatprep.subr.bf16.mxu0 %v19003_v1  ;;  %v16660_v53 = vpop.f32.mrb[142].mxu1  ;;  %v19208_v0 = vmax.f32 %v19206_v44, %v19207_v7  ;;  %v14300_v23 = vld [vmem:[%s18693_s3 + $0x1e0] sm:$0xff]   ;;  %v14301_v55 = vld [vmem:[%s18693_s3 + $0x1c8] sm:$0xff]   ;;  %v19214_v7 = vld [vmem:[#allocation68_spill] sm:$0xff] }
 0x1fc   :  { %19201 = vst [vmem:[#allocation41_spill] sm:$0xff] %v16647_v15  ;;  %19205 = vst [vmem:[#allocation42_spill] sm:$0xff] %v16660_v53  ;;  %13165 = vmatpush3.bf16.msra.mxu1 %v14298_v48  ;;  %v2471_v27 = vpop.f32.mrb[143].mxu0  ;;  %v16669_v52 = vpop.f32.mrb[143].mxu1  ;;  %v19210_v31 = vld [vmem:[#allocation66_spill] sm:$0xff]  ;;  %v19219_v48 = vmax.f32 %v16052_v38, %v16047_v2 }
 0x1fd   :  { %v16665_v12 = vmax.f32 %v19208_v0, %v12875_v62  ;;  %v19212_v20 = vmax.f32 %v19210_v31, %v19211_v59  ;;  %13155 = vmatmul.mubr.msk.bf16.vlgmr.msra.gmra.mrb[200].mxu0 %vm4788_vm3, %v11922_v32  ;;  %13182 = vmatprep.subr.bf16.mxu1 %v19003_v1  ;;  %v14302_v32 = vld [vmem:[%s18693_s3 + $0x1e8] sm:$0xff]   ;;  %v19215_v0 = vld [vmem:[#allocation69_spill] sm:$0xff]  ;;  %v14303_v59 = vld [vmem:[%s18693_s3 + $0x1d0] sm:$0xff]  }
 0x1fe   :  { %13171 = vmatpush3.bf16.msra.mxu0 %v14299_v61  ;;  %13178 = vmatprep.mubr.msk.bf16.mxu0 %vm14600_vm2, %v19003_v1  ;;  %v3634_v3 = vadd.f32 %v16582_v42, %v19219_v48  ;;  %v19221_v62 = vld [vmem:[#allocation71_spill] sm:$0xff] }
 0x1ff   :  { %19209 = vst [vmem:[#allocation43_spill] sm:$0xff] %v16665_v12  ;;  %v16677_v18 = vmax.f32 %v19212_v20, %v2471_v27  ;;  %13167 = vmatmul.mubr.msk.bf16.vlgmr.msra.gmra.mrb[200].mxu1 %vm4788_vm3, %v11923_v33  ;;  %13172 = vmatprep.subr.bf16.mxu0 %v19003_v1  ;;  %v19216_v27 = vmax.f32 %v19214_v7, %v19215_v0  ;;  %v19220_v20 = vld [vmem:[#allocation70_spill] sm:$0xff]  ;;  %v19225_v7 = vld [vmem:[#allocation72_spill] sm:$0xff]  ;;  %v19226_v0 = vld [vmem:[#allocation73_spill] sm:$0xff] }
 0x200   :  { %13183 = vmatpush3.bf16.msra.mxu1 %v14300_v23  ;;  %13190 = vmatprep.mubr.msk.bf16.mxu1 %vm14600_vm2, %v19003_v1  ;;  %v19222_v53 = vmax.f32 %v19220_v20, %v19221_v62  ;;  %v19230_v62 = vmax.f32 %v16070_v5, %v16065_v46  ;;  %v14305_v46 = vld [vmem:[%s18693_s3 + $0x1d8] sm:$0xff]   ;;  %v3722_v5 = vmax.f32 %v3634_v3, 0.0 }
 0x201   :  { %v12878_v61 = vpop.f32.mrb[144].mxu0  ;;  %13184 = vmatprep.subr.bf16.mxu1 %v19003_v1  ;;  %v16700_v44 = vpop.f32.mrb[144].mxu1 }
 0x202   :  { %19213 = vst [vmem:[#allocation44_spill] sm:$0xff] %v16700_v44  ;;  %v16705_v31 = vmax.f32 %v19216_v27, %v12878_v61  ;;  %13173 = vmatpush3.bf16.msra.mxu0 %v14301_v55  ;;  %v2484_v33 = vpop.f32.mrb[145].mxu0  ;;  %v16707_v23 = vpop.f32.mrb[145].mxu1  ;;  %v19227_v27 = vmax.f32 %v19225_v7, %v19226_v0  ;;  %v3635_v20 = vadd.f32 %v16582_v42, %v19230_v62  ;;  %v19232_v7 = vld [vmem:[#allocation75_spill] sm:$0xff] }
 0x203   :  { %19218 = vst [vmem:[#allocation46_spill] sm:$0xff] %v16707_v23  ;;  %v16719_v12 = vmax.f32 %v19222_v53, %v2484_v33  ;;  %v12879_v61 = vpop.f32.mrb[146].mxu0  ;;  %13174 = vmatprep.subr.bf16.mxu0 %v19003_v1  ;;  %v16722_v55 = vpop.f32.mrb[146].mxu1  ;;  %v14304_v53 = vld [vmem:[%s18693_s3 + $0x1f0] sm:$0xff]   ;;  %v19231_v33 = vld [vmem:[#allocation74_spill] sm:$0xff] }
 0x204   :  { %19217 = vst [vmem:[#allocation45_spill] sm:$0xff] %v16705_v31  ;;  %19224 = vst [vmem:[#allocation48_spill] sm:$0xff] %v16722_v55  ;;  %v16727_v29 = vmax.f32 %v19227_v27, %v12879_v61  ;;  %13185 = vmatpush3.bf16.msra.mxu1 %v14302_v32  ;;  %v2487_v38 = vpop.f32.mrb[147].mxu0  ;;  %v16731_v48 = vpop.f32.mrb[147].mxu1  ;;  %v19233_v61 = vmax.f32 %v19231_v33, %v19232_v7  ;;  %v3723_v33 = vmax.f32 %v3635_v20, 0.0  ;;  %v19237_v27 = vld [vmem:[#allocation77_spill] sm:$0xff] }
 0x205   :  { %19223 = vst [vmem:[#allocation47_spill] sm:$0xff] %v16719_v12  ;;  %19229 = vst [vmem:[#allocation50_spill] sm:$0xff] %v16731_v48  ;;  %13186 = vmatprep.subr.bf16.mxu1 %v19003_v1  ;;  %v11924_v55 = vpack.c.bf16 %v3722_v5, %v3722_v5  ;;  %v19240_v20 = vld [vmem:[#allocation78_spill] sm:$0xff] }
 0x206   :  { %19228 = vst [vmem:[#allocation49_spill] sm:$0xff] %v16727_v29  ;;  %v16743_v0 = vmax.f32 %v19233_v61, %v2487_v38  ;;  %13175 = vmatpush3.bf16.msra.mxu0 %v14303_v59  ;;  %v14306_v38 = vld [vmem:[%s18693_s3 + $0x1f8] sm:$0xff]   ;;  %v19236_v61 = vld [vmem:[#allocation76_spill] sm:$0xff]  ;;  %v19241_v29 = vld [vmem:[#allocation79_spill] sm:$0xff] }
 0x207   :  { %13176 = vmatprep.subr.bf16.mxu0 %v19003_v1  ;;  %v19238_v2 = vmax.f32 %v19236_v61, %v19237_v27  ;;  %v19242_v44 = vmax.f32 %v19240_v20, %v19241_v29  ;;  %v14308_v29 = vld [vmem:[%s18693_s3 + $0x220] sm:$0xff]   ;;  %v19249_v20 = vld [vmem:[#allocation83_spill] sm:$0xff] }
 0x208   :  { %19234 = vst [vmem:[#allocation51_spill] sm:$0xff] %v16743_v0  ;;  %13187 = vmatpush3.bf16.msra.mxu1 %v14304_v53  ;;  %v14307_v53 = vld [vmem:[%s18693_s3 + $0x200] sm:$0xff]  }
 0x209   :  { %v12882_v7 = vpop.f32.mrb[148].mxu0  ;;  %13188 = vmatprep.subr.bf16.mxu1 %v19003_v1  ;;  %v16760_v59 = vpop.f32.mrb[148].mxu1 }
 0x20a   :  { %19235 = vst [vmem:[#allocation52_spill] sm:$0xff] %v16760_v59  ;;  %v16765_v3 = vmax.f32 %v19238_v2, %v12882_v7  ;;  %13177 = vmatpush3.bf16.msra.mxu0 %v14305_v46  ;;  %v2500_v62 = vpop.f32.mrb[149].mxu0  ;;  %v16767_v32 = vpop.f32.mrb[149].mxu1  ;;  %v19244_v2 = vld [vmem:[#allocation80_spill] sm:$0xff]  ;;  %v19245_v46 = vld [vmem:[#allocation81_spill] sm:$0xff] }
 0x20b   :  { %v16775_v31 = vmax.f32 %v19242_v44, %v2500_v62  ;;  %v12883_v48 = vpop.f32.mrb[150].mxu0  ;;  %13194 = vmatprep.subr.bf16.mxu0 %v19003_v1  ;;  %v16778_v27 = vpop.f32.mrb[150].mxu1  ;;  %v19246_v7 = vmax.f32 %v19244_v2, %v19245_v46  ;;  %v11925_v44 = vpack.c.bf16 %v3723_v33, %v3723_v33  ;;  %v19248_v62 = vld [vmem:[#allocation82_spill] sm:$0xff]  ;;  %v14309_v33 = vld [vmem:[%s18693_s3 + $0x208] sm:$0xff]   ;;  %v19252_v46 = vld [vmem:[#allocation84_spill] sm:$0xff] }
 0x20c   :  { %19239 = vst [vmem:[#allocation53_spill] sm:$0xff] %v16765_v3  ;;  %19243 = vst [vmem:[#allocation54_spill] sm:$0xff] %v16778_v27  ;;  %13189 = vmatpush3.bf16.msra.mxu1 %v14306_v38  ;;  %v2503_v5 = vpop.f32.mrb[151].mxu0  ;;  %v16787_v23 = vpop.f32.mrb[151].mxu1  ;;  %v19250_v12 = vmax.f32 %v19248_v62, %v19249_v20  ;;  %v14311_v20 = vld [vmem:[%s18693_s3 + $0x210] sm:$0xff]   ;;  %v19257_v38 = vmax.f32 %v16124_v54, %v16116_v50 }
 0x20d   :  { %v16783_v61 = vmax.f32 %v19246_v7, %v12883_v48  ;;  %13179 = vmatmul.mubr.msk.bf16.vlgmr.msra.gmra.mrb[204].mxu0 %vm4788_vm3, %v11924_v55  ;;  %13206 = vmatprep.subr.bf16.mxu1 %v19003_v1  ;;  %v14310_v55 = vld [vmem:[%s18693_s3 + $0x228] sm:$0xff]   ;;  %v19253_v7 = vld [vmem:[#allocation85_spill] sm:$0xff] }
 0x20e   :  { %v16795_v15 = vmax.f32 %v19250_v12, %v2503_v5  ;;  %13195 = vmatpush3.bf16.msra.mxu0 %v14307_v53  ;;  %13202 = vmatprep.mubr.msk.bf16.mxu0 %vm14600_vm2, %v19003_v1  ;;  %v19254_v5 = vmax.f32 %v19252_v46, %v19253_v7  ;;  %v3636_v0 = vadd.f32 %v16582_v42, %v19257_v38  ;;  %v19258_v12 = vld [vmem:[#allocation86_spill] sm:$0xff]  ;;  %v19259_v48 = vld [vmem:[#allocation87_spill] sm:$0xff]  ;;  %v19263_v46 = vld [vmem:[#allocation88_spill] sm:$0xff] }
 0x20f   :  { %19247 = vst [vmem:[#allocation55_spill] sm:$0xff] %v16783_v61  ;;  %13191 = vmatmul.mubr.msk.bf16.vlgmr.msra.gmra.mrb[204].mxu1 %vm4788_vm3, %v11925_v44  ;;  %13196 = vmatprep.subr.bf16.mxu0 %v19003_v1  ;;  %v19260_v27 = vmax.f32 %v19258_v12, %v19259_v48  ;;  %v19264_v7 = vld [vmem:[#allocation89_spill] sm:$0xff]  ;;  %v19268_v48 = vmax.f32 %v16148_v41, %v16136_v40 }
 0x210   :  { %13207 = vmatpush3.bf16.msra.mxu1 %v14308_v29  ;;  %13214 = vmatprep.mubr.msk.bf16.mxu1 %vm14600_vm2, %v19003_v1  ;;  %v14313_v40 = vld [vmem:[%s18693_s3 + $0x218] sm:$0xff]   ;;  %v3724_v41 = vmax.f32 %v3636_v0, 0.0 }
 0x211   :  { %v12886_v53 = vpop.f32.mrb[152].mxu0  ;;  %13208 = vmatprep.subr.bf16.mxu1 %v19003_v1  ;;  %v16818_v2 = vpop.f32.mrb[152].mxu1  ;;  %v3637_v12 = vadd.f32 %v16582_v42, %v19268_v48 }
 0x212   :  { %19251 = vst [vmem:[#allocation56_spill] sm:$0xff] %v16818_v2  ;;  %v16823_v62 = vmax.f32 %v19254_v5, %v12886_v53  ;;  %13197 = vmatpush3.bf16.msra.mxu0 %v14309_v33  ;;  %v2516_v44 = vpop.f32.mrb[153].mxu0  ;;  %v16825_v29 = vpop.f32.mrb[153].mxu1  ;;  %v19265_v5 = vmax.f32 %v19263_v46, %v19264_v7  ;;  %v19270_v46 = vld [vmem:[#allocation91_spill] sm:$0xff] }
 0x213   :  { %19256 = vst [vmem:[#allocation58_spill] sm:$0xff] %v16825_v29  ;;  %v16837_v61 = vmax.f32 %v19260_v27, %v2516_v44  ;;  %v12887_v53 = vpop.f32.mrb[154].mxu0  ;;  %13198 = vmatprep.subr.bf16.mxu0 %v19003_v1  ;;  %v16840_v33 = vpop.f32.mrb[154].mxu1  ;;  %v14312_v27 = vld [vmem:[%s18693_s3 + $0x230] sm:$0xff]   ;;  %v19269_v44 = vld [vmem:[#allocation90_spill] sm:$0xff] }
 0x214   :  { %19255 = vst [vmem:[#allocation57_spill] sm:$0xff] %v16823_v62  ;;  %19262 = vst [vmem:[#allocation60_spill] sm:$0xff] %v16840_v33  ;;  %v16845_v59 = vmax.f32 %v19265_v5, %v12887_v53  ;;  %13209 = vmatpush3.bf16.msra.mxu1 %v14310_v55  ;;  %v2519_v50 = vpop.f32.mrb[155].mxu0  ;;  %v16849_v38 = vpop.f32.mrb[155].mxu1  ;;  %v19271_v53 = vmax.f32 %v19269_v44, %v19270_v46  ;;  %v3725_v44 = vmax.f32 %v3637_v12, 0.0  ;;  %v19275_v5 = vld [vmem:[#allocation93_spill] sm:$0xff] }
 0x215   :  { %19261 = vst [vmem:[#allocation59_spill] sm:$0xff] %v16837_v61  ;;  %19267 = vst [vmem:[#allocation62_spill] sm:$0xff] %v16849_v38  ;;  %13210 = vmatprep.subr.bf16.mxu1 %v19003_v1  ;;  %v11926_v33 = vpack.c.bf16 %v3724_v41, %v3724_v41  ;;  %v19278_v12 = vld [vmem:[#allocation94_spill] sm:$0xff] }
 0x216   :  { %19266 = vst [vmem:[#allocation61_spill] sm:$0xff] %v16845_v59  ;;  %v16861_v7 = vmax.f32 %v19271_v53, %v2519_v50  ;;  %13199 = vmatpush3.bf16.msra.mxu0 %v14311_v20  ;;  %v14314_v50 = vld [vmem:[%s18693_s3 + $0x238] sm:$0xff]   ;;  %v19274_v53 = vld [vmem:[#allocation92_spill] sm:$0xff]  ;;  %v19279_v59 = vld [vmem:[#allocation95_spill] sm:$0xff] }
 0x217   :  { %13200 = vmatprep.subr.bf16.mxu0 %v19003_v1  ;;  %v19276_v54 = vmax.f32 %v19274_v53, %v19275_v5  ;;  %v19280_v2 = vmax.f32 %v19278_v12, %v19279_v59  ;;  %v14316_v59 = vld [vmem:[%s18693_s3 + $0x260] sm:$0xff]   ;;  %v19287_v12 = vld [vmem:[#allocation99_spill] sm:$0xff] }
 0x218   :  { %19272 = vst [vmem:[#allocation63_spill] sm:$0xff] %v16861_v7  ;;  %13211 = vmatpush3.bf16.msra.mxu1 %v14312_v27  ;;  %v14315_v27 = vld [vmem:[%s18693_s3 + $0x240] sm:$0xff]  }
 0x219   :  { %v12890_v46 = vpop.f32.mrb[156].mxu0  ;;  %13212 = vmatprep.subr.bf16.mxu1 %v19003_v1  ;;  %v16878_v20 = vpop.f32.mrb[156].mxu1 }
 0x21a   :  { %19273 = vst [vmem:[#allocation64_spill] sm:$0xff] %v16878_v20  ;;  %v16883_v0 = vmax.f32 %v19276_v54, %v12890_v46  ;;  %13201 = vmatpush3.bf16.msra.mxu0 %v14313_v40  ;;  %v2532_v48 = vpop.f32.mrb[157].mxu0  ;;  %v16885_v55 = vpop.f32.mrb[157].mxu1  ;;  %v19282_v54 = vld [vmem:[#allocation96_spill] sm:$0xff]  ;;  %v19283_v40 = vld [vmem:[#allocation97_spill] sm:$0xff] }
 0x21b   :  { %v16893_v62 = vmax.f32 %v19280_v2, %v2532_v48  ;;  %v12891_v38 = vpop.f32.mrb[158].mxu0  ;;  %13218 = vmatprep.subr.bf16.mxu0 %v19003_v1  ;;  %v16896_v5 = vpop.f32.mrb[158].mxu1  ;;  %v19284_v46 = vmax.f32 %v19282_v54, %v19283_v40  ;;  %v11927_v2 = vpack.c.bf16 %v3725_v44, %v3725_v44  ;;  %v19286_v48 = vld [vmem:[#allocation98_spill] sm:$0xff]  ;;  %v14317_v44 = vld [vmem:[%s18693_s3 + $0x248] sm:$0xff]   ;;  %v19290_v40 = vld [vmem:[#allocation100_spill] sm:$0xff] }
 0x21c   :  { %19277 = vst [vmem:[#allocation65_spill] sm:$0xff] %v16883_v0  ;;  %19281 = vst [vmem:[#allocation66_spill] sm:$0xff] %v16896_v5  ;;  %13213 = vmatpush3.bf16.msra.mxu1 %v14314_v50  ;;  %v2535_v41 = vpop.f32.mrb[159].mxu0  ;;  %v16905_v29 = vpop.f32.mrb[159].mxu1  ;;  %v19288_v61 = vmax.f32 %v19286_v48, %v19287_v12  ;;  %v14319_v12 = vld [vmem:[%s18693_s3 + $0x250] sm:$0xff]   ;;  %v19295_v50 = vmax.f32 %v16114_v47, %v16105_v28 }
 0x21d   :  { %v16901_v53 = vmax.f32 %v19284_v46, %v12891_v38  ;;  %13203 = vmatmul.mubr.msk.bf16.vlgmr.msra.gmra.mrb[208].mxu0 %vm4788_vm3, %v11926_v33  ;;  %13230 = vmatprep.subr.bf16.mxu1 %v19003_v1  ;;  %v14318_v33 = vld [vmem:[%s18693_s3 + $0x268] sm:$0xff]   ;;  %v19291_v46 = vld [vmem:[#allocation101_spill] sm:$0xff] }
 0x21e   :  { %v16913_v3 = vmax.f32 %v19288_v61, %v2535_v41  ;;  %13219 = vmatpush3.bf16.msra.mxu0 %v14315_v27  ;;  %13226 = vmatprep.mubr.msk.bf16.mxu0 %vm14600_vm2, %v19003_v1  ;;  %v19292_v41 = vmax.f32 %v19290_v40, %v19291_v46  ;;  %v3638_v7 = vadd.f32 %v16582_v42, %v19295_v50  ;;  %v19296_v61 = vld [vmem:[#allocation102_spill] sm:$0xff]  ;;  %v19297_v38 = vld [vmem:[#allocation103_spill] sm:$0xff]  ;;  %v19301_v40 = vld [vmem:[#allocation104_spill] sm:$0xff] }
 0x21f   :  { %19285 = vst [vmem:[#allocation67_spill] sm:$0xff] %v16901_v53  ;;  %13215 = vmatmul.mubr.msk.bf16.vlgmr.msra.gmra.mrb[208].mxu1 %vm4788_vm3, %v11927_v2  ;;  %13220 = vmatprep.subr.bf16.mxu0 %v19003_v1  ;;  %v19298_v5 = vmax.f32 %v19296_v61, %v19297_v38  ;;  %v19302_v46 = vld [vmem:[#allocation105_spill] sm:$0xff]  ;;  %v19306_v38 = vmax.f32 %v16132_v14, %v16127_v22 }
 0x220   :  { %13231 = vmatpush3.bf16.msra.mxu1 %v14316_v59  ;;  %13238 = vmatprep.mubr.msk.bf16.mxu1 %vm14600_vm2, %v19003_v1  ;;  %v14321_v22 = vld [vmem:[%s18693_s3 + $0x258] sm:$0xff]   ;;  %v3726_v14 = vmax.f32 %v3638_v7, 0.0 }
 0x221   :  { %v12894_v27 = vpop.f32.mrb[160].mxu0  ;;  %13232 = vmatprep.subr.bf16.mxu1 %v19003_v1  ;;  %v16936_v54 = vpop.f32.mrb[160].mxu1  ;;  %v3639_v61 = vadd.f32 %v16582_v42, %v19306_v38 }
 0x222   :  { %19289 = vst [vmem:[#allocation68_spill] sm:$0xff] %v16936_v54  ;;  %v16941_v48 = vmax.f32 %v19292_v41, %v12894_v27  ;;  %13221 = vmatpush3.bf16.msra.mxu0 %v14317_v44  ;;  %v2548_v2 = vpop.f32.mrb[161].mxu0  ;;  %v16943_v59 = vpop.f32.mrb[161].mxu1  ;;  %v19303_v41 = vmax.f32 %v19301_v40, %v19302_v46  ;;  %v19308_v40 = vld [vmem:[#allocation107_spill] sm:$0xff] }
 0x223   :  { %19294 = vst [vmem:[#allocation70_spill] sm:$0xff] %v16943_v59  ;;  %v16955_v53 = vmax.f32 %v19298_v5, %v2548_v2  ;;  %v12895_v27 = vpop.f32.mrb[162].mxu0  ;;  %13222 = vmatprep.subr.bf16.mxu0 %v19003_v1  ;;  %v16958_v44 = vpop.f32.mrb[162].mxu1  ;;  %v14320_v5 = vld [vmem:[%s18693_s3 + $0x270] sm:$0xff]   ;;  %v19307_v2 = vld [vmem:[#allocation106_spill] sm:$0xff] }
 0x224   :  { %19293 = vst [vmem:[#allocation69_spill] sm:$0xff] %v16941_v48  ;;  %19300 = vst [vmem:[#allocation72_spill] sm:$0xff] %v16958_v44  ;;  %v16963_v20 = vmax.f32 %v19303_v41, %v12895_v27  ;;  %13233 = vmatpush3.bf16.msra.mxu1 %v14318_v33  ;;  %v2551_v47 = vpop.f32.mrb[163].mxu0  ;;  %v16967_v50 = vpop.f32.mrb[163].mxu1  ;;  %v19309_v27 = vmax.f32 %v19307_v2, %v19308_v40  ;;  %v3727_v2 = vmax.f32 %v3639_v61, 0.0  ;;  %v19313_v41 = vld [vmem:[#allocation109_spill] sm:$0xff] }
 0x225   :  { %19299 = vst [vmem:[#allocation71_spill] sm:$0xff] %v16955_v53  ;;  %19305 = vst [vmem:[#allocation74_spill] sm:$0xff] %v16967_v50  ;;  %13234 = vmatprep.subr.bf16.mxu1 %v19003_v1  ;;  %v11928_v44 = vpack.c.bf16 %v3726_v14, %v3726_v14  ;;  %v19315_v61 = vld [vmem:[#allocation110_spill] sm:$0xff] }
 0x226   :  { %19304 = vst [vmem:[#allocation73_spill] sm:$0xff] %v16963_v20  ;;  %v16979_v46 = vmax.f32 %v19309_v27, %v2551_v47  ;;  %13223 = vmatpush3.bf16.msra.mxu0 %v14319_v12  ;;  %v14322_v47 = vld [vmem:[%s18693_s3 + $0x278] sm:$0xff]   ;;  %v19312_v27 = vld [vmem:[#allocation108_spill] sm:$0xff]  ;;  %v19316_v20 = vld [vmem:[#allocation111_spill] sm:$0xff] }
 0x227   :  { %13224 = vmatprep.subr.bf16.mxu0 %v19003_v1  ;;  %v19314_v28 = vmax.f32 %v19312_v27, %v19313_v41  ;;  %v19317_v54 = vmax.f32 %v19315_v61, %v19316_v20  ;;  %v14324_v20 = vld [vmem:[%s18693_s3 + $0x2a0] sm:$0xff]   ;;  %v19324_v61 = vld [vmem:[#allocation115_spill] sm:$0xff] }
 0x228   :  { %19310 = vst [vmem:[#allocation75_spill] sm:$0xff] %v16979_v46  ;;  %13235 = vmatpush3.bf16.msra.mxu1 %v14320_v5  ;;  %v14323_v5 = vld [vmem:[%s18693_s3 + $0x280] sm:$0xff]  }
 0x229   :  { %v12898_v40 = vpop.f32.mrb[164].mxu0  ;;  %13236 = vmatprep.subr.bf16.mxu1 %v19003_v1  ;;  %v16996_v12 = vpop.f32.mrb[164].mxu1 }
 0x22a   :  { %19311 = vst [vmem:[#allocation76_spill] sm:$0xff] %v16996_v12  ;;  %v17001_v7 = vmax.f32 %v19314_v28, %v12898_v40  ;;  %13225 = vmatpush3.bf16.msra.mxu0 %v14321_v22  ;;  %v2564_v38 = vpop.f32.mrb[165].mxu0  ;;  %v17003_v33 = vpop.f32.mrb[165].mxu1  ;;  %v19319_v28 = vld [vmem:[#allocation112_spill] sm:$0xff]  ;;  %v19320_v22 = vld [vmem:[#allocation113_spill] sm:$0xff] }
 0x22b   :  { %v17011_v48 = vmax.f32 %v19317_v54, %v2564_v38  ;;  %v12899_v50 = vpop.f32.mrb[166].mxu0  ;;  %13242 = vmatprep.subr.bf16.mxu0 %v19003_v1  ;;  %v17014_v41 = vpop.f32.mrb[166].mxu1  ;;  %v19321_v40 = vmax.f32 %v19319_v28, %v19320_v22  ;;  %v11929_v54 = vpack.c.bf16 %v3727_v2, %v3727_v2  ;;  %v19323_v38 = vld [vmem:[#allocation114_spill] sm:$0xff]  ;;  %v14325_v2 = vld [vmem:[%s18693_s3 + $0x288] sm:$0xff]   ;;  %v19327_v22 = vld [vmem:[#allocation116_spill] sm:$0xff] }
 0x22c   :  { %19318 = vst [vmem:[#allocation77_spill] sm:$0xff] %v17014_v41  ;;  %13237 = vmatpush3.bf16.msra.mxu1 %v14322_v47  ;;  %v2567_v14 = vpop.f32.mrb[167].mxu0  ;;  %v17023_v59 = vpop.f32.mrb[167].mxu1  ;;  %v19325_v53 = vmax.f32 %v19323_v38, %v19324_v61  ;;  %v14327_v61 = vld [vmem:[%s18693_s3 + $0x290] sm:$0xff]   ;;  %v19332_v47 = vmax.f32 %v16180_v34, %v16172_v11 }
 0x22d   :  { %v17019_v27 = vmax.f32 %v19321_v40, %v12899_v50  ;;  %13227 = vmatmul.mubr.msk.bf16.vlgmr.msra.gmra.mrb[212].mxu0 %vm4788_vm3, %v11928_v44  ;;  %13254 = vmatprep.subr.bf16.mxu1 %v19003_v1  ;;  %v14326_v44 = vld [vmem:[%s18693_s3 + $0x2a8] sm:$0xff]   ;;  %v19328_v40 = vld [vmem:[#allocation117_spill] sm:$0xff] }
 0x22e   :  { %v17031_v0 = vmax.f32 %v19325_v53, %v2567_v14  ;;  %13243 = vmatpush3.bf16.msra.mxu0 %v14323_v5  ;;  %13250 = vmatprep.mubr.msk.bf16.mxu0 %vm14600_vm2, %v19003_v1  ;;  %v19329_v14 = vmax.f32 %v19327_v22, %v19328_v40  ;;  %v3640_v46 = vadd.f32 %v16582_v42, %v19332_v47  ;;  %v19333_v53 = vld [vmem:[#allocation118_spill] sm:$0xff]  ;;  %v19334_v50 = vld [vmem:[#allocation119_spill] sm:$0xff]  ;;  %v19338_v22 = vld [vmem:[#allocation120_spill] sm:$0xff] }
 0x22f   :  { %19322 = vst [vmem:[#allocation78_spill] sm:$0xff] %v17019_v27  ;;  %13239 = vmatmul.mubr.msk.bf16.vlgmr.msra.gmra.mrb[212].mxu1 %vm4788_vm3, %v11929_v54  ;;  %13244 = vmatprep.subr.bf16.mxu0 %v19003_v1  ;;  %v19335_v41 = vmax.f32 %v19333_v53, %v19334_v50  ;;  %v19339_v40 = vld [vmem:[#allocation121_spill] sm:$0xff]  ;;  %v19343_v50 = vmax.f32 %v16200_v63, %v16192_v51 }
 0x230   :  { %13255 = vmatpush3.bf16.msra.mxu1 %v14324_v20  ;;  %13262 = vmatprep.mubr.msk.bf16.mxu1 %vm14600_vm2, %v19003_v1  ;;  %v14329_v63 = vld [vmem:[%s18693_s3 + $0x298] sm:$0xff]   ;;  %v3728_v51 = vmax.f32 %v3640_v46, 0.0 }
 0x231   :  { %v12902_v5 = vpop.f32.mrb[168].mxu0  ;;  %13256 = vmatprep.subr.bf16.mxu1 %v19003_v1  ;;  %v17054_v28 = vpop.f32.mrb[168].mxu1  ;;  %v3641_v53 = vadd.f32 %v16582_v42, %v19343_v50 }
 0x232   :  { %19326 = vst [vmem:[#allocation79_spill] sm:$0xff] %v17054_v28  ;;  %v17059_v38 = vmax.f32 %v19329_v14, %v12902_v5  ;;  %13245 = vmatpush3.bf16.msra.mxu0 %v14325_v2  ;;  %v2580_v54 = vpop.f32.mrb[169].mxu0  ;;  %v17061_v20 = vpop.f32.mrb[169].mxu1  ;;  %v19340_v14 = vmax.f32 %v19338_v22, %v19339_v40  ;;  %v19345_v22 = vld [vmem:[#allocation123_spill] sm:$0xff] }
 0x233   :  { %19331 = vst [vmem:[#allocation81_spill] sm:$0xff] %v17061_v20  ;;  %v17073_v27 = vmax.f32 %v19335_v41, %v2580_v54  ;;  %v12903_v5 = vpop.f32.mrb[170].mxu0  ;;  %13246 = vmatprep.subr.bf16.mxu0 %v19003_v1  ;;  %v17076_v2 = vpop.f32.mrb[170].mxu1  ;;  %v14328_v41 = vld [vmem:[%s18693_s3 + $0x2b0] sm:$0xff]   ;;  %v19344_v54 = vld [vmem:[#allocation122_spill] sm:$0xff] }
 0x234   :  { %19330 = vst [vmem:[#allocation80_spill] sm:$0xff] %v17059_v38  ;;  %19337 = vst [vmem:[#allocation83_spill] sm:$0xff] %v17076_v2  ;;  %v17081_v12 = vmax.f32 %v19340_v14, %v12903_v5  ;;  %13257 = vmatpush3.bf16.msra.mxu1 %v14326_v44  ;;  %v2583_v34 = vpop.f32.mrb[171].mxu0  ;;  %v17085_v47 = vpop.f32.mrb[171].mxu1  ;;  %v19346_v5 = vmax.f32 %v19344_v54, %v19345_v22  ;;  %v3729_v54 = vmax.f32 %v3641_v53, 0.0  ;;  %v19349_v14 = vld [vmem:[#allocation125_spill] sm:$0xff] }
 0x235   :  { %19336 = vst [vmem:[#allocation82_spill] sm:$0xff] %v17073_v27  ;;  %19342 = vst [vmem:[#allocation85_spill] sm:$0xff] %v17085_v47  ;;  %13258 = vmatprep.subr.bf16.mxu1 %v19003_v1  ;;  %v11930_v2 = vpack.c.bf16 %v3728_v51, %v3728_v51  ;;  %v19351_v53 = vld [vmem:[#allocation126_spill] sm:$0xff] }
 0x236   :  { %19341 = vst [vmem:[#allocation84_spill] sm:$0xff] %v17081_v12  ;;  %v17097_v40 = vmax.f32 %v19346_v5, %v2583_v34  ;;  %13247 = vmatpush3.bf16.msra.mxu0 %v14327_v61  ;;  %v14330_v34 = vld [vmem:[%s18693_s3 + $0x2b8] sm:$0xff]   ;;  %v19348_v5 = vld [vmem:[#allocation124_spill] sm:$0xff]  ;;  %v19352_v12 = vld [vmem:[#allocation127_spill] sm:$0xff] }
 0x237   :  { %13248 = vmatprep.subr.bf16.mxu0 %v19003_v1  ;;  %v19350_v11 = vmax.f32 %v19348_v5, %v19349_v14  ;;  %v19353_v28 = vmax.f32 %v19351_v53, %v19352_v12  ;;  %v14332_v12 = vld [vmem:[%s18693_s3 + $0x2e0] sm:$0xff]  }
 0x238   :  { %19347 = vst [vmem:[#allocation86_spill] sm:$0xff] %v17097_v40  ;;  %13259 = vmatpush3.bf16.msra.mxu1 %v14328_v41  ;;  %v14331_v41 = vld [vmem:[%s18693_s3 + $0x2c0] sm:$0xff]  }
 0x239   :  { %v12906_v22 = vpop.f32.mrb[172].mxu0  ;;  %13260 = vmatprep.subr.bf16.mxu1 %v19003_v1  ;;  %v17114_v61 = vpop.f32.mrb[172].mxu1  ;;  %v19357_v53 = vld [vmem:[#allocation130_spill] sm:$0xff] }
 0x23a   :  { %v17119_v46 = vmax.f32 %v19350_v11, %v12906_v22  ;;  %13249 = vmatpush3.bf16.msra.mxu0 %v14329_v63  ;;  %v2596_v50 = vpop.f32.mrb[173].mxu0  ;;  %v17121_v44 = vpop.f32.mrb[173].mxu1  ;;  %v19354_v11 = vld [vmem:[#allocation128_spill] sm:$0xff] }
 0x23b   :  { %v17129_v38 = vmax.f32 %v19353_v28, %v2596_v50  ;;  %v12907_v47 = vpop.f32.mrb[174].mxu0  ;;  %13266 = vmatprep.subr.bf16.mxu0 %v19003_v1  ;;  %v17132_v14 = vpop.f32.mrb[174].mxu1  ;;  %v19355_v63 = vmax.f32 %v15901_v10, %v19354_v11  ;;  %v11931_v28 = vpack.c.bf16 %v3729_v54, %v3729_v54  ;;  %v19356_v50 = vld [vmem:[#allocation129_spill] sm:$0xff]  ;;  %v14335_v54 = vld [vmem:[%s18693_s3 + $0x2d0] sm:$0xff]  }
 0x23c   :  { %v3611_v5 = vmax.f32 %v17119_v46, %v17114_v61  ;;  %13261 = vmatpush3.bf16.msra.mxu1 %v14330_v34  ;;  %v2599_v51 = vpop.f32.mrb[175].mxu0  ;;  %v17141_v40 = vpop.f32.mrb[175].mxu1  ;;  %v19358_v20 = vmax.f32 %v19356_v50, %v19357_v53  ;;  %v14333_v34 = vld [vmem:[%s18693_s3 + $0x2c8] sm:$0xff]   ;;  %v14340_v53 = vld [vmem:[%s18693_s3 + $0x320] sm:$0xff]   ;;  %v14593_v61 = vld [vmem:[%s18693_s3 + $0xad8] sm:$0xff]  }
 0x23d   :  { %v17137_v22 = vmax.f32 %v19355_v63, %v12907_v47  ;;  %v3609_v10 = vmax.f32 %v17129_v38, %v17121_v44  ;;  %13251 = vmatmul.mubr.msk.bf16.vlgmr.msra.gmra.mrb[216].mxu0 %vm4788_vm3, %v11930_v2  ;;  %13278 = vmatprep.subr.bf16.mxu1 %v19003_v1  ;;  %v14334_v2 = vld [vmem:[%s18693_s3 + $0x2e8] sm:$0xff]   ;;  %v14336_v63 = vld [vmem:[%s18693_s3 + $0x2f0] sm:$0xff]   ;;  %v14585_v38 = vld [vmem:[%s18693_s3 + $0xa98] sm:$0xff]  }
 0x23e   :  { %v17149_v27 = vmax.f32 %v19358_v20, %v2599_v51  ;;  %13267 = vmatpush3.bf16.msra.mxu0 %v14331_v41  ;;  %13274 = vmatprep.mubr.msk.bf16.mxu0 %vm14600_vm2, %v19003_v1  ;;  %v19359_v41 = vmax.f32 %v16170_v6, %v16165_v17  ;;  %v19360_v51 = vmax.f32 %v16188_v43, %v16183_v58  ;;  %v14337_v17 = vld [vmem:[%s18693_s3 + $0x2d8] sm:$0xff]   ;;  %v14339_v58 = vld [vmem:[%s18693_s3 + $0x300] sm:$0xff]  }
 0x23f   :  { %v3612_v47 = vmax.f32 %v17137_v22, %v17132_v14  ;;  %13263 = vmatmul.mubr.msk.bf16.vlgmr.msra.gmra.mrb[216].mxu1 %vm4788_vm3, %v11931_v28  ;;  %13268 = vmatprep.subr.bf16.mxu0 %v19003_v1  ;;  %v14338_v28 = vld [vmem:[%s18693_s3 + $0x2f8] sm:$0xff]  }
 0x240   :  { %v3610_v20 = vmax.f32 %v17149_v27, %v17141_v40  ;;  %13279 = vmatpush3.bf16.msra.mxu1 %v14332_v12  ;;  %13286 = vmatprep.mubr.msk.bf16.mxu1 %vm14600_vm2, %v19003_v1  ;;  %v3642_v11 = vadd.f32 %v16582_v42, %v19359_v41  ;;  %v3643_v12 = vadd.f32 %v16582_v42, %v19360_v51  ;;  %v14343_v41 = vld [vmem:[%s18693_s3 + $0x310] sm:$0xff]   ;;  %v14587_v27 = vld [vmem:[%s18693_s3 + $0xac0] sm:$0xff]  }
 0x241   :  { %13280 = vmatprep.subr.bf16.mxu1 %v19003_v1  ;;  %v14344_v51 = vld [vmem:[%s18693_s3 + $0x330] sm:$0xff]  }
 0x242   :  { %13269 = vmatpush3.bf16.msra.mxu0 %v14333_v34  ;;  %v3730_v6 = vmax.f32 %v3642_v11, 0.0  ;;  %v3731_v50 = vmax.f32 %v3643_v12, 0.0  ;;  %v19361_v11 = vmax.f32 %v16242_v57, %v16234_v30  ;;  %v19362_v12 = vmax.f32 %v16266_v19, %v16254_v25  ;;  %v14345_v57 = vld [vmem:[%s18693_s3 + $0x318] sm:$0xff]   ;;  %v14347_v25 = vld [vmem:[%s18693_s3 + $0x340] sm:$0xff]  }
 0x243   :  { %13270 = vmatprep.subr.bf16.mxu0 %v19003_v1 }
 0x244   :  { %13281 = vmatpush3.bf16.msra.mxu1 %v14334_v2  ;;  %v11932_v43 = vpack.c.bf16 %v3730_v6, %v3730_v6  ;;  %v11933_v34 = vpack.c.bf16 %v3731_v50, %v3731_v50  ;;  %v14341_v2 = vld [vmem:[%s18693_s3 + $0x308] sm:$0xff]   ;;  %v14346_v6 = vld [vmem:[%s18693_s3 + $0x338] sm:$0xff]   ;;  %v14348_v50 = vld [vmem:[%s18693_s3 + $0x360] sm:$0xff]  }
 0x245   :  { %13282 = vmatprep.subr.bf16.mxu1 %v19003_v1 }
 0x246   :  { %13271 = vmatpush3.bf16.msra.mxu0 %v14335_v54  ;;  %v14342_v54 = vld [vmem:[%s18693_s3 + $0x328] sm:$0xff]  }
 0x247   :  { %13272 = vmatprep.subr.bf16.mxu0 %v19003_v1 }
 0x248   :  { %13283 = vmatpush3.bf16.msra.mxu1 %v14336_v63  ;;  %v3644_v63 = vadd.f32 %v16582_v42, %v19361_v11  ;;  %v19364_v11 = vld [vmem:[#allocation3_spill] sm:$0xff] }
 0x249   :  { %13284 = vmatprep.subr.bf16.mxu1 %v19003_v1 }
 0x24a   :  { %13273 = vmatpush3.bf16.msra.mxu0 %v14337_v17  ;;  %v3645_v17 = vadd.f32 %v16582_v42, %v19362_v12  ;;  %v3732_v30 = vmax.f32 %v3644_v63, 0.0  ;;  %v19365_v63 = vld [vmem:[#allocation2_spill] sm:$0xff] }
 0x24b   :  { %13290 = vmatprep.subr.bf16.mxu0 %v19003_v1 }
 0x24c   :  { %13285 = vmatpush3.bf16.msra.mxu1 %v14338_v28  ;;  %v3733_v28 = vmax.f32 %v3645_v17, 0.0  ;;  %v11934_v19 = vpack.c.bf16 %v3732_v30, %v3732_v30  ;;  %v14354_v17 = vld [vmem:[%s18693_s3 + $0x378] sm:$0xff]   ;;  %v14355_v30 = vld [vmem:[%s18693_s3 + $0x380] sm:$0xff]  }
 0x24d   :  { %13275 = vmatmul.mubr.msk.bf16.vlgmr.msra.gmra.mrb[220].mxu0 %vm4788_vm3, %v11932_v43  ;;  %13302 = vmatprep.subr.bf16.mxu1 %v19003_v1  ;;  %v14349_v43 = vld [vmem:[%s18693_s3 + $0x348] sm:$0xff]  }
 0x24e   :  { %13291 = vmatpush3.bf16.msra.mxu0 %v14339_v58  ;;  %13298 = vmatprep.mubr.msk.bf16.mxu0 %vm14600_vm2, %v19003_v1  ;;  %v11935_v58 = vpack.c.bf16 %v3733_v28, %v3733_v28  ;;  %v14356_v28 = vld [vmem:[%s18693_s3 + $0x3a0] sm:$0xff]  }
 0x24f   :  { %13287 = vmatmul.mubr.msk.bf16.vlgmr.msra.gmra.mrb[220].mxu1 %vm4788_vm3, %v11933_v34  ;;  %13292 = vmatprep.subr.bf16.mxu0 %v19003_v1  ;;  %v14351_v34 = vld [vmem:[%s18693_s3 + $0x350] sm:$0xff]  }
 0x250   :  { %13303 = vmatpush3.bf16.msra.mxu1 %v14340_v53  ;;  %13310 = vmatprep.mubr.msk.bf16.mxu1 %vm14600_vm2, %v19003_v1  ;;  %v14350_v53 = vld [vmem:[%s18693_s3 + $0x368] sm:$0xff]  }
 0x251   :  { %13304 = vmatprep.subr.bf16.mxu1 %v19003_v1 }
 0x252   :  { %13293 = vmatpush3.bf16.msra.mxu0 %v14341_v2  ;;  %v19363_v2 = vmax.f32 %v16232_v26, %v16223_v39  ;;  %v14353_v39 = vld [vmem:[%s18693_s3 + $0x358] sm:$0xff]  }
 0x253   :  { %13294 = vmatprep.subr.bf16.mxu0 %v19003_v1 }
 0x254   :  { %13305 = vmatpush3.bf16.msra.mxu1 %v14342_v54  ;;  %v3646_v54 = vadd.f32 %v16582_v42, %v19363_v2  ;;  %v14359_v2 = vld [vmem:[%s18693_s3 + $0x390] sm:$0xff]  }
 0x255   :  { %13306 = vmatprep.subr.bf16.mxu1 %v19003_v1 }
 0x256   :  { %13295 = vmatpush3.bf16.msra.mxu0 %v14343_v41  ;;  %v14352_v41 = vld [vmem:[%s18693_s3 + $0x370] sm:$0xff]   ;;  %v3734_v26 = vmax.f32 %v3646_v54, 0.0  ;;  %v19367_v54 = vmax.f32 %v16298_v24, %v16290_v13  ;;  %v14361_v24 = vld [vmem:[%s18693_s3 + $0x398] sm:$0xff]  }
 0x257   :  { %13296 = vmatprep.subr.bf16.mxu0 %v19003_v1 }
 0x258   :  { %13307 = vmatpush3.bf16.msra.mxu1 %v14344_v51  ;;  %v19366_v51 = vmax.f32 %v19364_v11, %v19365_v63 }
 0x259   :  { %13308 = vmatprep.subr.bf16.mxu1 %v19003_v1 }
 0x25a   :  { %13297 = vmatpush3.bf16.msra.mxu0 %v14345_v57  ;;  %v3647_v12 = vadd.f32 %v16582_v42, %v19366_v51 }
 0x25b   :  { %13314 = vmatprep.subr.bf16.mxu0 %v19003_v1 }
 0x25c   :  { %13309 = vmatpush3.bf16.msra.mxu1 %v14346_v6  ;;  %v3735_v57 = vmax.f32 %v3647_v12, 0.0  ;;  %v11936_v6 = vpack.c.bf16 %v3734_v26, %v3734_v26  ;;  %v19368_v26 = vmax.f32 %v16318_v49, %v16310_v36  ;;  %v14363_v36 = vld [vmem:[%s18693_s3 + $0x3c0] sm:$0xff]  }
 0x25d   :  { %13299 = vmatmul.mubr.msk.bf16.vlgmr.msra.gmra.mrb[224].mxu0 %vm4788_vm3, %v11934_v19  ;;  %13326 = vmatprep.subr.bf16.mxu1 %v19003_v1  ;;  %v14357_v19 = vld [vmem:[%s18693_s3 + $0x388] sm:$0xff]  }
 0x25e   :  { %13315 = vmatpush3.bf16.msra.mxu0 %v14347_v25  ;;  %13322 = vmatprep.mubr.msk.bf16.mxu0 %vm14600_vm2, %v19003_v1  ;;  %v11937_v25 = vpack.c.bf16 %v3735_v57, %v3735_v57 }
 0x25f   :  { %13311 = vmatmul.mubr.msk.bf16.vlgmr.msra.gmra.mrb[224].mxu1 %vm4788_vm3, %v11935_v58  ;;  %13316 = vmatprep.subr.bf16.mxu0 %v19003_v1  ;;  %v14358_v58 = vld [vmem:[%s18693_s3 + $0x3a8] sm:$0xff]  }
 0x260   :  { %13327 = vmatpush3.bf16.msra.mxu1 %v14348_v50  ;;  %13334 = vmatprep.mubr.msk.bf16.mxu1 %vm14600_vm2, %v19003_v1 }
 0x261   :  { %13328 = vmatprep.subr.bf16.mxu1 %v19003_v1 }
 0x262   :  { %13317 = vmatpush3.bf16.msra.mxu0 %v14349_v43 }
 0x263   :  { %13318 = vmatprep.subr.bf16.mxu0 %v19003_v1 }
 0x264   :  { %13329 = vmatpush3.bf16.msra.mxu1 %v14350_v53 }
 0x265   :  { %13330 = vmatprep.subr.bf16.mxu1 %v19003_v1 }
 0x266   :  { %13319 = vmatpush3.bf16.msra.mxu0 %v14351_v34 }
 0x267   :  { %13320 = vmatprep.subr.bf16.mxu0 %v19003_v1 }
 0x268   :  { %13331 = vmatpush3.bf16.msra.mxu1 %v14352_v41  ;;  %v3648_v41 = vadd.f32 %v16582_v42, %v19367_v54  ;;  %v14367_v54 = vld [vmem:[%s18693_s3 + $0x3d0] sm:$0xff]  }
 0x269   :  { %13332 = vmatprep.subr.bf16.mxu1 %v19003_v1 }
 0x26a   :  { %13321 = vmatpush3.bf16.msra.mxu0 %v14353_v39  ;;  %v14360_v39 = vld [vmem:[%s18693_s3 + $0x3b0] sm:$0xff]   ;;  %v3736_v13 = vmax.f32 %v3648_v41, 0.0  ;;  %v19369_v41 = vld [vmem:[#allocation5_spill] sm:$0xff] }
 0x26b   :  { %13338 = vmatprep.subr.bf16.mxu0 %v19003_v1 }
 0x26c   :  { %13333 = vmatpush3.bf16.msra.mxu1 %v14354_v17  ;;  %v3649_v17 = vadd.f32 %v16582_v42, %v19368_v26  ;;  %v11938_v49 = vpack.c.bf16 %v3736_v13, %v3736_v13  ;;  %v19373_v13 = vld [vmem:[#allocation6_spill] sm:$0xff] }
 0x26d   :  { %13323 = vmatmul.mubr.msk.bf16.vlgmr.msra.gmra.mrb[228].mxu0 %vm4788_vm3, %v11936_v6  ;;  %13350 = vmatprep.subr.bf16.mxu1 %v19003_v1 }
 0x26e   :  { %13339 = vmatpush3.bf16.msra.mxu0 %v14355_v30  ;;  %13346 = vmatprep.mubr.msk.bf16.mxu0 %vm14600_vm2, %v19003_v1  ;;  %v14362_v30 = vld [vmem:[%s18693_s3 + $0x3b8] sm:$0xff]   ;;  %v3737_v6 = vmax.f32 %v3649_v17, 0.0 }
 0x26f   :  { %13335 = vmatmul.mubr.msk.bf16.vlgmr.msra.gmra.mrb[228].mxu1 %vm4788_vm3, %v11937_v25  ;;  %13340 = vmatprep.subr.bf16.mxu0 %v19003_v1 }
 0x270   :  { %13351 = vmatpush3.bf16.msra.mxu1 %v14356_v28  ;;  %v4826_v50 = vpop.f32.mrb[176].mxu0  ;;  %13358 = vmatprep.mubr.msk.bf16.mxu1 %vm14600_vm2, %v19003_v1  ;;  %v14364_v28 = vld [vmem:[%s18693_s3 + $0x3e0] sm:$0xff]   ;;  %v11939_v25 = vpack.c.bf16 %v3737_v6, %v3737_v6 }
 0x271   :  { %v13012_v43 = vpop.f32.mrb[177].mxu0  ;;  %13352 = vmatprep.subr.bf16.mxu1 %v19003_v1 }
 0x272   :  { %13341 = vmatpush3.bf16.msra.mxu0 %v14357_v19  ;;  %v4829_v53 = vpop.f32.mrb[178].mxu0  ;;  %v4893_v34 = vpop.f32.mrb[176].mxu1  ;;  %v14365_v19 = vld [vmem:[%s18693_s3 + $0x3c8] sm:$0xff]  }
 0x273   :  { %v10661_v11 = vadd.f32 %v4893_v34, %v4826_v50  ;;  %v13013_v63 = vpop.f32.mrb[179].mxu0  ;;  %v13024_v51 = vpop.f32.mrb[177].mxu1  ;;  %13342 = vmatprep.subr.bf16.mxu0 %v19003_v1 }
 0x274   :  { %13353 = vmatpush3.bf16.msra.mxu1 %v14358_v58  ;;  %v4896_v12 = vpop.f32.mrb[178].mxu1  ;;  %v14366_v58 = vld [vmem:[%s18693_s3 + $0x3e8] sm:$0xff]   ;;  %v19370_v63 = vld [vmem:[#allocation4_spill] sm:$0xff] }
 0x275   :  { %v13025_v57 = vpop.f32.mrb[179].mxu1  ;;  %13354 = vmatprep.subr.bf16.mxu1 %v19003_v1  ;;  %v19371_v51 = vmax.f32 %v19369_v41, %v19370_v63 }
 0x276   :  { %13343 = vmatpush3.bf16.msra.mxu0 %v14359_v2  ;;  %v14368_v57 = vld [vmem:[%s18693_s3 + $0x3f0] sm:$0xff]  }
 0x277   :  { %13344 = vmatprep.subr.bf16.mxu0 %v19003_v1  ;;  %v3650_v12 = vadd.f32 %v16582_v42, %v19371_v51 }
 0x278   :  { %13355 = vmatpush3.bf16.msra.mxu1 %v14360_v39 }
 0x279   :  { %13356 = vmatprep.subr.bf16.mxu1 %v19003_v1 }
 0x27a   :  { %13345 = vmatpush3.bf16.msra.mxu0 %v14361_v24  ;;  %v19372_v24 = vld [vmem:[#allocation7_spill] sm:$0xff] }
 0x27b   :  { %13362 = vmatprep.subr.bf16.mxu0 %v19003_v1 }
 0x27c   :  { %13357 = vmatpush3.bf16.msra.mxu1 %v14362_v30  ;;  %v19374_v30 = vmax.f32 %v19372_v24, %v19373_v13 }
 0x27d   :  { %13347 = vmatmul.mubr.msk.bf16.vlgmr.msra.gmra.mrb[232].mxu0 %vm4788_vm3, %v11938_v49  ;;  %13374 = vmatprep.subr.bf16.mxu1 %v19003_v1  ;;  %v14369_v49 = vld [vmem:[%s18693_s3 + $0x3d8] sm:$0xff]  }
 0x27e   :  { %13363 = vmatpush3.bf16.msra.mxu0 %v14363_v36  ;;  %13370 = vmatprep.mubr.msk.bf16.mxu0 %vm14600_vm2, %v19003_v1  ;;  %v3651_v6 = vadd.f32 %v16582_v42, %v19374_v30  ;;  %v14371_v42 = vld [vmem:[%s18693_s3 + $0x400] sm:$0xff]  }
 0x27f   :  { %13359 = vmatmul.mubr.msk.bf16.vlgmr.msra.gmra.mrb[232].mxu1 %vm4788_vm3, %v11939_v25  ;;  %13364 = vmatprep.subr.bf16.mxu0 %v19003_v1  ;;  %v14370_v25 = vld [vmem:[%s18693_s3 + $0x3f8] sm:$0xff]  }
 0x280   :  { %v4960_v50 = vpop.f32.mrb[180].mxu0  ;;  %13375 = vmatpush3.bf16.msra.mxu1 %v14364_v28  ;;  %13382 = vmatprep.mubr.msk.bf16.mxu1 %vm14600_vm2, %v19003_v1  ;;  %v3738_v28 = vmax.f32 %v3650_v12, 0.0  ;;  %v14375_v12 = vld [vmem:[%s18693_s3 + $0x410] sm:$0xff]  }
 0x281   :  { %v10662_v43 = vadd.f32 %v10661_v11, %v4960_v50  ;;  %v13036_v53 = vpop.f32.mrb[181].mxu0  ;;  %13376 = vmatprep.subr.bf16.mxu1 %v19003_v1 }
 0x282   :  { %v4963_v34 = vpop.f32.mrb[182].mxu0  ;;  %v5027_v2 = vpop.f32.mrb[180].mxu1  ;;  %13365 = vmatpush3.bf16.msra.mxu0 %v14365_v19  ;;  %v3739_v19 = vmax.f32 %v3651_v6, 0.0  ;;  %v11940_v50 = vpack.c.bf16 %v3738_v28, %v3738_v28  ;;  %v14373_v53 = vld [vmem:[%s18693_s3 + $0x408] sm:$0xff]   ;;  %v19379_v28 = vld [vmem:[#allocation14_spill] sm:$0xff] }
 0x283   :  { %v10663_v39 = vadd.f32 %v10662_v43, %v5027_v2  ;;  %v13037_v26 = vpop.f32.mrb[183].mxu0  ;;  %v13048_v17 = vpop.f32.mrb[181].mxu1  ;;  %13366 = vmatprep.subr.bf16.mxu0 %v19003_v1  ;;  %v14374_v2 = vld [vmem:[%s18693_s3 + $0x428] sm:$0xff]  }
 0x284   :  { %v5030_v11 = vpop.f32.mrb[182].mxu1  ;;  %13377 = vmatpush3.bf16.msra.mxu1 %v14366_v58  ;;  %v14372_v58 = vld [vmem:[%s18693_s3 + $0x420] sm:$0xff]   ;;  %v11941_v43 = vpack.c.bf16 %v3739_v19, %v3739_v19  ;;  %v19375_v17 = vld [vmem:[#allocation11_spill] sm:$0xff] }
 0x285   :  { %v13049_v36 = vpop.f32.mrb[183].mxu1  ;;  %13378 = vmatprep.subr.bf16.mxu1 %v19003_v1  ;;  %v17408_v26 = vld [vmem:[%s18694_s2] ss:$0 sm:$0xff] }
 0x286   :  { %13367 = vmatpush3.bf16.msra.mxu0 %v14367_v54  ;;  %v19376_v11 = vld [vmem:[#allocation10_spill] sm:$0xff]  ;;  %v14376_v36 = vld [vmem:[%s18693_s3 + $0x430] sm:$0xff]  }
 0x287   :  { %13368 = vmatprep.subr.bf16.mxu0 %v19003_v1 }
 0x288   :  { %13379 = vmatpush3.bf16.msra.mxu1 %v14368_v57  ;;  %v19377_v57 = vmax.f32 %v19375_v17, %v19376_v11 }
 0x289   :  { %13380 = vmatprep.subr.bf16.mxu1 %v19003_v1 }
 0x28a   :  { %13369 = vmatpush3.bf16.msra.mxu0 %v14369_v49  ;;  %v19378_v49 = vld [vmem:[#allocation15_spill] sm:$0xff] }
 0x28b   :  { %13386 = vmatprep.subr.bf16.mxu0 %v19003_v1 }
 0x28c   :  { %13381 = vmatpush3.bf16.msra.mxu1 %v14370_v25  ;;  %v19380_v25 = vmax.f32 %v19378_v49, %v19379_v28 }
 0x28d   :  { %13371 = vmatmul.mubr.msk.bf16.vlgmr.msra.gmra.mrb[236].mxu0 %vm4788_vm3, %v11940_v50  ;;  %13398 = vmatprep.subr.bf16.mxu1 %v19003_v1  ;;  %v14377_v50 = vld [vmem:[%s18693_s3 + $0x418] sm:$0xff]  }
 0x28e   :  { %13387 = vmatpush3.bf16.msra.mxu0 %v14371_v42  ;;  %13394 = vmatprep.mubr.msk.bf16.mxu0 %vm14600_vm2, %v19003_v1  ;;  %v3653_v19 = vadd.f32 %v17408_v26, %v19380_v25 }
 0x28f   :  { %13383 = vmatmul.mubr.msk.bf16.vlgmr.msra.gmra.mrb[236].mxu1 %vm4788_vm3, %v11941_v43  ;;  %13388 = vmatprep.subr.bf16.mxu0 %v19003_v1  ;;  %v14378_v43 = vld [vmem:[%s18693_s3 + $0x438] sm:$0xff]  }
 0x290   :  { %v5094_v34 = vpop.f32.mrb[184].mxu0  ;;  %13399 = vmatpush3.bf16.msra.mxu1 %v14372_v58  ;;  %13406 = vmatprep.mubr.msk.bf16.mxu1 %vm14600_vm2, %v19003_v1 }
 0x291   :  { %v10664_v54 = vadd.f32 %v10663_v39, %v5094_v34  ;;  %v13060_v41 = vpop.f32.mrb[185].mxu0  ;;  %13400 = vmatprep.subr.bf16.mxu1 %v19003_v1  ;;  %v3652_v39 = vadd.f32 %v17408_v26, %v19377_v57  ;;  %v14379_v34 = vld [vmem:[%s18693_s3 + $0x440] sm:$0xff]  }
 0x292   :  { %v5097_v63 = vpop.f32.mrb[186].mxu0  ;;  %v5161_v51 = vpop.f32.mrb[184].mxu1  ;;  %13389 = vmatpush3.bf16.msra.mxu0 %v14373_v53  ;;  %v3741_v53 = vmax.f32 %v3653_v19, 0.0 }
 0x293   :  { %v10665_v24 = vadd.f32 %v10664_v54, %v5161_v51  ;;  %v13061_v13 = vpop.f32.mrb[187].mxu0  ;;  %v13072_v30 = vpop.f32.mrb[185].mxu1  ;;  %13390 = vmatprep.subr.bf16.mxu0 %v19003_v1  ;;  %v3740_v58 = vmax.f32 %v3652_v39, 0.0  ;;  %v14380_v54 = vld [vmem:[%s18693_s3 + $0x460] sm:$0xff]   ;;  %v14381_v63 = vld [vmem:[%s18693_s3 + $0x448] sm:$0xff]  }
 0x294   :  { %v5164_v6 = vpop.f32.mrb[186].mxu1  ;;  %13401 = vmatpush3.bf16.msra.mxu1 %v14374_v2  ;;  %v11943_v41 = vpack.c.bf16 %v3741_v53, %v3741_v53  ;;  %v14383_v13 = vld [vmem:[%s18693_s3 + $0x450] sm:$0xff]   ;;  %v19381_v30 = vld [vmem:[#allocation9_spill] sm:$0xff] }
 0x295   :  { %v13073_v42 = vpop.f32.mrb[187].mxu1  ;;  %13402 = vmatprep.subr.bf16.mxu1 %v19003_v1  ;;  %v11942_v2 = vpack.c.bf16 %v3740_v58, %v3740_v58  ;;  %v19382_v6 = vld [vmem:[#allocation8_spill] sm:$0xff] }
 0x296   :  { %13391 = vmatpush3.bf16.msra.mxu0 %v14375_v12  ;;  %v14382_v12 = vld [vmem:[%s18693_s3 + $0x468] sm:$0xff]   ;;  %v14384_v42 = vld [vmem:[%s18693_s3 + $0x470] sm:$0xff]  }
 0x297   :  { %13392 = vmatprep.subr.bf16.mxu0 %v19003_v1  ;;  %v19385_v58 = vld [vmem:[#allocation12_spill] sm:$0xff] }
 0x298   :  { %13403 = vmatpush3.bf16.msra.mxu1 %v14376_v36  ;;  %v19383_v36 = vmax.f32 %v19381_v30, %v19382_v6 }
 0x299   :  { %13404 = vmatprep.subr.bf16.mxu1 %v19003_v1 }
 0x29a   :  { %13393 = vmatpush3.bf16.msra.mxu0 %v14377_v50  ;;  %v3654_v49 = vadd.f32 %v17408_v26, %v19383_v36  ;;  %v19384_v50 = vld [vmem:[#allocation13_spill] sm:$0xff] }
 0x29b   :  { %13410 = vmatprep.subr.bf16.mxu0 %v19003_v1 }
 0x29c   :  { %13405 = vmatpush3.bf16.msra.mxu1 %v14378_v43  ;;  %v19386_v43 = vmax.f32 %v19384_v50, %v19385_v58 }
 0x29d   :  { %13395 = vmatmul.mubr.msk.bf16.vlgmr.msra.gmra.mrb[240].mxu0 %vm4788_vm3, %v11942_v2  ;;  %13422 = vmatprep.subr.bf16.mxu1 %v19003_v1  ;;  %v14385_v2 = vld [vmem:[%s18693_s3 + $0x458] sm:$0xff]  }
 0x29e   :  { %13411 = vmatpush3.bf16.msra.mxu0 %v14379_v34  ;;  %13418 = vmatprep.mubr.msk.bf16.mxu0 %vm14600_vm2, %v19003_v1  ;;  %v3655_v53 = vadd.f32 %v17408_v26, %v19386_v43  ;;  %v14392_v43 = vld [vmem:[%s18693_s3 + $0x4b0] sm:$0xff]  }
 0x29f   :  { %13407 = vmatmul.mubr.msk.bf16.vlgmr.msra.gmra.mrb[240].mxu1 %vm4788_vm3, %v11943_v41  ;;  %13412 = vmatprep.subr.bf16.mxu0 %v19003_v1  ;;  %v14386_v41 = vld [vmem:[%s18693_s3 + $0x478] sm:$0xff]  }
 0x2a0   :  { %v5228_v51 = vpop.f32.mrb[188].mxu0  ;;  %13423 = vmatpush3.bf16.msra.mxu1 %v14380_v54  ;;  %13430 = vmatprep.mubr.msk.bf16.mxu1 %vm14600_vm2, %v19003_v1  ;;  %v3742_v54 = vmax.f32 %v3654_v49, 0.0 }
 0x2a1   :  { %v10666_v17 = vadd.f32 %v10665_v24, %v5228_v51  ;;  %v13084_v11 = vpop.f32.mrb[189].mxu0  ;;  %13424 = vmatprep.subr.bf16.mxu1 %v19003_v1  ;;  %v14387_v51 = vld [vmem:[%s18693_s3 + $0x480] sm:$0xff]  }
 0x2a2   :  { %v5231_v57 = vpop.f32.mrb[190].mxu0  ;;  %v5295_v39 = vpop.f32.mrb[188].mxu1  ;;  %13413 = vmatpush3.bf16.msra.mxu0 %v14381_v63  ;;  %v3743_v63 = vmax.f32 %v3655_v53, 0.0  ;;  %v19388_v53 = vmax.f32 %v16436_v37, %v16428_v21  ;;  %v14395_v37 = vld [vmem:[%s18693_s3 + $0x4c0] sm:$0xff]  }
 0x2a3   :  { %v10667_v28 = vadd.f32 %v10666_v17, %v5295_v39  ;;  %v13085_v25 = vpop.f32.mrb[191].mxu0  ;;  %v13096_v19 = vpop.f32.mrb[189].mxu1  ;;  %13414 = vmatprep.subr.bf16.mxu0 %v19003_v1  ;;  %v14388_v17 = vld [vmem:[%s18693_s3 + $0x4a0] sm:$0xff]   ;;  %v14389_v57 = vld [vmem:[%s18693_s3 + $0x488] sm:$0xff]  }
 0x2a4   :  { %v5298_v24 = vpop.f32.mrb[190].mxu1  ;;  %13425 = vmatpush3.bf16.msra.mxu1 %v14382_v12  ;;  %v11944_v12 = vpack.c.bf16 %v3742_v54, %v3742_v54  ;;  %v11945_v11 = vpack.c.bf16 %v3743_v63, %v3743_v63  ;;  %v14391_v25 = vld [vmem:[%s18693_s3 + $0x490] sm:$0xff]   ;;  %v19387_v19 = vmax.f32 %v16416_v4, %v16408_v45  ;;  %v14393_v4 = vld [vmem:[%s18693_s3 + $0x498] sm:$0xff]   ;;  %v14396_v63 = vld [vmem:[%s18693_s3 + $0x4e0] sm:$0xff]  }
 0x2a5   :  { %v13097_v34 = vpop.f32.mrb[191].mxu1  ;;  %13426 = vmatprep.subr.bf16.mxu1 %v19003_v1  ;;  %v14394_v54 = vld [vmem:[%s18693_s3 + $0x4b8] sm:$0xff]  }
 0x2a6   :  { %13415 = vmatpush3.bf16.msra.mxu0 %v14383_v13  ;;  %v14390_v13 = vld [vmem:[%s18693_s3 + $0x4a8] sm:$0xff]   ;;  %v3656_v24 = vadd.f32 %v17408_v26, %v19387_v19  ;;  %v3657_v34 = vadd.f32 %v17408_v26, %v19388_v53 }
 0x2a7   :  { %13416 = vmatprep.subr.bf16.mxu0 %v19003_v1 }
 0x2a8   :  { %13427 = vmatpush3.bf16.msra.mxu1 %v14384_v42  ;;  %v3744_v45 = vmax.f32 %v3656_v24, 0.0 }
 0x2a9   :  { %13428 = vmatprep.subr.bf16.mxu1 %v19003_v1 }
 0x2aa   :  { %13417 = vmatpush3.bf16.msra.mxu0 %v14385_v2  ;;  %v11946_v21 = vpack.c.bf16 %v3744_v45, %v3744_v45  ;;  %v14402_v45 = vld [vmem:[%s18693_s3 + $0x4f8] sm:$0xff]  }
 0x2ab   :  { %13434 = vmatprep.subr.bf16.mxu0 %v19003_v1 }
 0x2ac   :  { %13429 = vmatpush3.bf16.msra.mxu1 %v14386_v41  ;;  %v3745_v41 = vmax.f32 %v3657_v34, 0.0 }
 0x2ad   :  { %13419 = vmatmul.mubr.msk.bf16.vlgmr.msra.gmra.mrb[244].mxu0 %vm4788_vm3, %v11944_v12  ;;  %13446 = vmatprep.subr.bf16.mxu1 %v19003_v1  ;;  %v14397_v12 = vld [vmem:[%s18693_s3 + $0x4c8] sm:$0xff]  }
 0x2ae   :  { %13435 = vmatpush3.bf16.msra.mxu0 %v14387_v51  ;;  %13442 = vmatprep.mubr.msk.bf16.mxu0 %vm14600_vm2, %v19003_v1  ;;  %v11947_v51 = vpack.c.bf16 %v3745_v41, %v3745_v41  ;;  %v14403_v41 = vld [vmem:[%s18693_s3 + $0x500] sm:$0xff]  }
 0x2af   :  { %13431 = vmatmul.mubr.msk.bf16.vlgmr.msra.gmra.mrb[244].mxu1 %vm4788_vm3, %v11945_v11  ;;  %13436 = vmatprep.subr.bf16.mxu0 %v19003_v1  ;;  %v14398_v11 = vld [vmem:[%s18693_s3 + $0x4e8] sm:$0xff]  }
 0x2b0   :  { %v5362_v39 = vpop.f32.mrb[192].mxu0  ;;  %13447 = vmatpush3.bf16.msra.mxu1 %v14388_v17  ;;  %13454 = vmatprep.mubr.msk.bf16.mxu1 %vm14600_vm2, %v19003_v1 }
 0x2b1   :  { %v10668_v30 = vadd.f32 %v10667_v28, %v5362_v39  ;;  %v13108_v6 = vpop.f32.mrb[193].mxu0  ;;  %13448 = vmatprep.subr.bf16.mxu1 %v19003_v1 }
 0x2b2   :  { %v5365_v36 = vpop.f32.mrb[194].mxu0  ;;  %v5429_v49 = vpop.f32.mrb[192].mxu1  ;;  %13437 = vmatpush3.bf16.msra.mxu0 %v14389_v57  ;;  %v14399_v6 = vld [vmem:[%s18693_s3 + $0x4d0] sm:$0xff]  }
 0x2b3   :  { %v10669_v42 = vadd.f32 %v10668_v30, %v5429_v49  ;;  %v13109_v50 = vpop.f32.mrb[195].mxu0  ;;  %v13120_v58 = vpop.f32.mrb[193].mxu1  ;;  %13438 = vmatprep.subr.bf16.mxu0 %v19003_v1  ;;  %v19389_v36 = vld [vmem:[#allocation16_spill] sm:$0xff] }
 0x2b4   :  { %v5432_v28 = vpop.f32.mrb[194].mxu1  ;;  %13449 = vmatpush3.bf16.msra.mxu1 %v14390_v13  ;;  %v19390_v49 = vmax.f32 %v16406_v56, %v19389_v36  ;;  %v14400_v58 = vld [vmem:[%s18693_s3 + $0x4f0] sm:$0xff]   ;;  %v14401_v56 = vld [vmem:[%s18693_s3 + $0x4d8] sm:$0xff]  }
 0x2b5   :  { %v13121_v2 = vpop.f32.mrb[195].mxu1  ;;  %13450 = vmatprep.subr.bf16.mxu1 %v19003_v1  ;;  %v19391_v28 = vld [vmem:[#allocation18_spill] sm:$0xff]  ;;  %v19395_v36 = vld [vmem:[#allocation21_spill] sm:$0xff] }
 0x2b6   :  { %13439 = vmatpush3.bf16.msra.mxu0 %v14391_v25  ;;  %v3658_v25 = vadd.f32 %v17408_v26, %v19390_v49 }
 0x2b7   :  { %13440 = vmatprep.subr.bf16.mxu0 %v19003_v1 }
 0x2b8   :  { %13451 = vmatpush3.bf16.msra.mxu1 %v14392_v43  ;;  %v19392_v43 = vld [vmem:[#allocation17_spill] sm:$0xff] }
 0x2b9   :  { %13452 = vmatprep.subr.bf16.mxu1 %v19003_v1  ;;  %v19393_v53 = vmax.f32 %v19391_v28, %v19392_v43  ;;  %v19397_v28 = vld [vmem:[#allocation26_spill] sm:$0xff]  ;;  %v19398_v43 = vld [vmem:[#allocation25_spill] sm:$0xff] }
 0x2ba   :  { %13441 = vmatpush3.bf16.msra.mxu0 %v14393_v4  ;;  %v3746_v4 = vmax.f32 %v3658_v25, 0.0 }
 0x2bb   :  { %13458 = vmatprep.subr.bf16.mxu0 %v19003_v1  ;;  %v3659_v34 = vadd.f32 %v17408_v26, %v19393_v53  ;;  %v19399_v53 = vmax.f32 %v19397_v28, %v19398_v43  ;;  %v19403_v28 = vld [vmem:[#allocation24_spill] sm:$0xff]  ;;  %v19404_v43 = vld [vmem:[#allocation23_spill] sm:$0xff] }
 0x2bc   :  { %13453 = vmatpush3.bf16.msra.mxu1 %v14394_v54 }
 0x2bd   :  { %13443 = vmatmul.mubr.msk.bf16.vlgmr.msra.gmra.mrb[248].mxu0 %vm4788_vm3, %v11946_v21  ;;  %13470 = vmatprep.subr.bf16.mxu1 %v19003_v1  ;;  %v3747_v54 = vmax.f32 %v3659_v34, 0.0  ;;  %v14404_v21 = vld [vmem:[%s18693_s3 + $0x520] sm:$0xff]   ;;  %v3661_v34 = vadd.f32 %v17408_v26, %v19399_v53  ;;  %v19405_v53 = vmax.f32 %v19403_v28, %v19404_v43 }
 0x2be   :  { %13459 = vmatpush3.bf16.msra.mxu0 %v14395_v37  ;;  %13466 = vmatprep.mubr.msk.bf16.mxu0 %vm14600_vm2, %v19003_v1  ;;  %v11948_v37 = vpack.c.bf16 %v3746_v4, %v3746_v4 }
 0x2bf   :  { %13455 = vmatmul.mubr.msk.bf16.vlgmr.msra.gmra.mrb[248].mxu1 %vm4788_vm3, %v11947_v51  ;;  %13460 = vmatprep.subr.bf16.mxu0 %v19003_v1  ;;  %v14405_v51 = vld [vmem:[%s18693_s3 + $0x508] sm:$0xff]  }
 0x2c0   :  { %v5496_v17 = vpop.f32.mrb[196].mxu0  ;;  %13471 = vmatpush3.bf16.msra.mxu1 %v14396_v63  ;;  %13478 = vmatprep.mubr.msk.bf16.mxu1 %vm14600_vm2, %v19003_v1  ;;  %v11949_v63 = vpack.c.bf16 %v3747_v54, %v3747_v54  ;;  %v3749_v54 = vmax.f32 %v3661_v34, 0.0  ;;  %v3663_v34 = vadd.f32 %v17408_v26, %v19405_v53  ;;  %v14426_v53 = vld [vmem:[%s18693_s3 + $0x5b8] sm:$0xff]  }
 0x2c1   :  { %v10670_v57 = vadd.f32 %v10669_v42, %v5496_v17  ;;  %v13132_v39 = vpop.f32.mrb[197].mxu0  ;;  %13472 = vmatprep.subr.bf16.mxu1 %v19003_v1  ;;  %v14406_v17 = vld [vmem:[%s18693_s3 + $0x528] sm:$0xff]  }
 0x2c2   :  { %v5499_v13 = vpop.f32.mrb[198].mxu0  ;;  %v5563_v30 = vpop.f32.mrb[196].mxu1  ;;  %13461 = vmatpush3.bf16.msra.mxu0 %v14397_v12 }
 0x2c3   :  { %v10671_v19 = vadd.f32 %v10670_v57, %v5563_v30  ;;  %v13133_v24 = vpop.f32.mrb[199].mxu0  ;;  %v13144_v50 = vpop.f32.mrb[197].mxu1  ;;  %13462 = vmatprep.subr.bf16.mxu0 %v19003_v1  ;;  %v14407_v30 = vld [vmem:[%s18693_s3 + $0x510] sm:$0xff]  }
 0x2c4   :  { %v5566_v42 = vpop.f32.mrb[198].mxu1  ;;  %13473 = vmatpush3.bf16.msra.mxu1 %v14398_v11 }
 0x2c5   :  { %v13145_v2 = vpop.f32.mrb[199].mxu1  ;;  %13474 = vmatprep.subr.bf16.mxu1 %v19003_v1 }
 0x2c6   :  { %13463 = vmatpush3.bf16.msra.mxu0 %v14399_v6  ;;  %v19394_v6 = vld [vmem:[#allocation22_spill] sm:$0xff] }
 0x2c7   :  { %13464 = vmatprep.subr.bf16.mxu0 %v19003_v1  ;;  %v19396_v49 = vmax.f32 %v19394_v6, %v19395_v36  ;;  %v19400_v6 = vld [vmem:[#allocation20_spill] sm:$0xff]  ;;  %v19401_v36 = vld [vmem:[#allocation19_spill] sm:$0xff] }
 0x2c8   :  { %13475 = vmatpush3.bf16.msra.mxu1 %v14400_v58  ;;  %v14408_v58 = vld [vmem:[%s18693_s3 + $0x530] sm:$0xff]  }
 0x2c9   :  { %13476 = vmatprep.subr.bf16.mxu1 %v19003_v1  ;;  %v3660_v25 = vadd.f32 %v17408_v26, %v19396_v49  ;;  %v19402_v49 = vmax.f32 %v19400_v6, %v19401_v36  ;;  %v19406_v6 = vmax.f32 %v16534_v16, %v16526_v9  ;;  %v14425_v16 = vld [vmem:[%s18693_s3 + $0x598] sm:$0xff]  }
 0x2ca   :  { %13465 = vmatpush3.bf16.msra.mxu0 %v14401_v56  ;;  %v14409_v56 = vld [vmem:[%s18693_s3 + $0x518] sm:$0xff]  }
 0x2cb   :  { %13482 = vmatprep.subr.bf16.mxu0 %v19003_v1  ;;  %v3748_v4 = vmax.f32 %v3660_v25, 0.0  ;;  %v3662_v25 = vadd.f32 %v17408_v26, %v19402_v49  ;;  %v3664_v36 = vadd.f32 %v17408_v26, %v19406_v6 }
 0x2cc   :  { %13477 = vmatpush3.bf16.msra.mxu1 %v14402_v45  ;;  %v14410_v45 = vld [vmem:[%s18693_s3 + $0x538] sm:$0xff]  }
 0x2cd   :  { %13467 = vmatmul.mubr.msk.bf16.vlgmr.msra.gmra.mrb[252].mxu0 %vm4788_vm3, %v11948_v37  ;;  %13494 = vmatprep.subr.bf16.mxu1 %v19003_v1  ;;  %v11950_v37 = vpack.c.bf16 %v3748_v4, %v3748_v4  ;;  %v3750_v4 = vmax.f32 %v3662_v25, 0.0  ;;  %v3752_v9 = vmax.f32 %v3664_v36, 0.0 }
 0x2ce   :  { %13483 = vmatpush3.bf16.msra.mxu0 %v14403_v41  ;;  %13490 = vmatprep.mubr.msk.bf16.mxu0 %vm14600_vm2, %v19003_v1  ;;  %v14411_v41 = vld [vmem:[%s18693_s3 + $0x540] sm:$0xff]  }
 0x2cf   :  { %13479 = vmatmul.mubr.msk.bf16.vlgmr.msra.gmra.mrb[252].mxu1 %vm4788_vm3, %v11949_v63  ;;  %13484 = vmatprep.subr.bf16.mxu0 %v19003_v1  ;;  %v11951_v63 = vpack.c.bf16 %v3749_v54, %v3749_v54  ;;  %v3751_v54 = vmax.f32 %v3663_v34, 0.0 }
 0x2d0   :  { %v5630_v12 = vpop.f32.mrb[200].mxu0  ;;  %13495 = vmatpush3.bf16.msra.mxu1 %v14404_v21  ;;  %13502 = vmatprep.mubr.msk.bf16.mxu1 %vm14600_vm2, %v19003_v1  ;;  %v14412_v21 = vld [vmem:[%s18693_s3 + $0x560] sm:$0xff]  }
 0x2d1   :  { %v10672_v11 = vadd.f32 %v10671_v19, %v5630_v12  ;;  %v13156_v57 = vpop.f32.mrb[201].mxu0  ;;  %13496 = vmatprep.subr.bf16.mxu1 %v19003_v1 }
 0x2d2   :  { %v5633_v39 = vpop.f32.mrb[202].mxu0  ;;  %v5697_v13 = vpop.f32.mrb[200].mxu1  ;;  %13485 = vmatpush3.bf16.msra.mxu0 %v14405_v51  ;;  %v14413_v51 = vld [vmem:[%s18693_s3 + $0x548] sm:$0xff]  }
 0x2d3   :  { %v10673_v24 = vadd.f32 %v10672_v11, %v5697_v13  ;;  %v13157_v50 = vpop.f32.mrb[203].mxu0  ;;  %v13168_v42 = vpop.f32.mrb[201].mxu1  ;;  %13486 = vmatprep.subr.bf16.mxu0 %v19003_v1 }
 0x2d4   :  { %v5700_v19 = vpop.f32.mrb[202].mxu1  ;;  %13497 = vmatpush3.bf16.msra.mxu1 %v14406_v17  ;;  %v14414_v17 = vld [vmem:[%s18693_s3 + $0x568] sm:$0xff]  }
 0x2d5   :  { %v13169_v2 = vpop.f32.mrb[203].mxu1  ;;  %13498 = vmatprep.subr.bf16.mxu1 %v19003_v1 }
 0x2d6   :  { %13487 = vmatpush3.bf16.msra.mxu0 %v14407_v30  ;;  %v14415_v30 = vld [vmem:[%s18693_s3 + $0x550] sm:$0xff]  }
 0x2d7   :  { %13488 = vmatprep.subr.bf16.mxu0 %v19003_v1 }
 0x2d8   :  { %13499 = vmatpush3.bf16.msra.mxu1 %v14408_v58  ;;  %v14416_v58 = vld [vmem:[%s18693_s3 + $0x570] sm:$0xff]  }
 0x2d9   :  { %13500 = vmatprep.subr.bf16.mxu1 %v19003_v1 }
 0x2da   :  { %13489 = vmatpush3.bf16.msra.mxu0 %v14409_v56  ;;  %v14417_v56 = vld [vmem:[%s18693_s3 + $0x558] sm:$0xff]  }
 0x2db   :  { %13506 = vmatprep.subr.bf16.mxu0 %v19003_v1 }
 0x2dc   :  { %13501 = vmatpush3.bf16.msra.mxu1 %v14410_v45  ;;  %v14418_v45 = vld [vmem:[%s18693_s3 + $0x578] sm:$0xff]  }
 0x2dd   :  { %13491 = vmatmul.mubr.msk.bf16.vlgmr.msra.gmra.mrb[0].mxu0 %vm4788_vm3, %v11950_v37  ;;  %13518 = vmatprep.subr.bf16.mxu1 %v19003_v1  ;;  %v11952_v37 = vpack.c.bf16 %v3750_v4, %v3750_v4 }
 0x2de   :  { %13507 = vmatpush3.bf16.msra.mxu0 %v14411_v41  ;;  %13514 = vmatprep.mubr.msk.bf16.mxu0 %vm14600_vm2, %v19003_v1  ;;  %v14419_v41 = vld [vmem:[%s18693_s3 + $0x580] sm:$0xff]  }
 0x2df   :  { %13503 = vmatmul.mubr.msk.bf16.vlgmr.msra.gmra.mrb[0].mxu1 %vm4788_vm3, %v11951_v63  ;;  %13508 = vmatprep.subr.bf16.mxu0 %v19003_v1  ;;  %v11953_v63 = vpack.c.bf16 %v3751_v54, %v3751_v54 }
 0x2e0   :  { %v5764_v12 = vpop.f32.mrb[204].mxu0  ;;  %13519 = vmatpush3.bf16.msra.mxu1 %v14412_v21  ;;  %13526 = vmatprep.mubr.msk.bf16.mxu1 %vm14600_vm2, %v19003_v1  ;;  %v14420_v21 = vld [vmem:[%s18693_s3 + $0x5a0] sm:$0xff]  }
 0x2e1   :  { %v10674_v11 = vadd.f32 %v10673_v24, %v5764_v12  ;;  %v13180_v57 = vpop.f32.mrb[205].mxu0  ;;  %13520 = vmatprep.subr.bf16.mxu1 %v19003_v1 }
 0x2e2   :  { %v5767_v39 = vpop.f32.mrb[206].mxu0  ;;  %v5831_v13 = vpop.f32.mrb[204].mxu1  ;;  %13509 = vmatpush3.bf16.msra.mxu0 %v14413_v51  ;;  %v14421_v51 = vld [vmem:[%s18693_s3 + $0x588] sm:$0xff]  }
 0x2e3   :  { %v10675_v50 = vadd.f32 %v10674_v11, %v5831_v13  ;;  %v13181_v42 = vpop.f32.mrb[207].mxu0  ;;  %v13192_v19 = vpop.f32.mrb[205].mxu1  ;;  %13510 = vmatprep.subr.bf16.mxu0 %v19003_v1 }
 0x2e4   :  { %v5834_v24 = vpop.f32.mrb[206].mxu1  ;;  %13521 = vmatpush3.bf16.msra.mxu1 %v14414_v17  ;;  %v14422_v17 = vld [vmem:[%s18693_s3 + $0x5a8] sm:$0xff]   ;;  %v14424_v19 = vld [vmem:[%s18693_s3 + $0x5b0] sm:$0xff]  }
 0x2e5   :  { %v13193_v2 = vpop.f32.mrb[207].mxu1  ;;  %13522 = vmatprep.subr.bf16.mxu1 %v19003_v1  ;;  %v19407_v24 = vld [vmem:[#allocation31_spill] sm:$0xff] }
 0x2e6   :  { %13511 = vmatpush3.bf16.msra.mxu0 %v14415_v30  ;;  %v14423_v30 = vld [vmem:[%s18693_s3 + $0x590] sm:$0xff]   ;;  %v11954_v2 = vpack.c.bf16 %v3752_v9, %v3752_v9  ;;  %v14435_v9 = vld [vmem:[%s18693_s3 + $0x600] sm:$0xff]  }
 0x2e7   :  { %13512 = vmatprep.subr.bf16.mxu0 %v19003_v1 }
 0x2e8   :  { %13523 = vmatpush3.bf16.msra.mxu1 %v14416_v58  ;;  %v19408_v58 = vmax.f32 %v16554_v8, %v19407_v24  ;;  %v14427_v8 = vld [vmem:[%s18693_s3 + $0x5c0] sm:$0xff]  }
 0x2e9   :  { %13524 = vmatprep.subr.bf16.mxu1 %v19003_v1 }
 0x2ea   :  { %13513 = vmatpush3.bf16.msra.mxu0 %v14417_v56  ;;  %v3665_v28 = vadd.f32 %v17408_v26, %v19408_v58  ;;  %v14428_v56 = vld [vmem:[%s18693_s3 + $0x5e0] sm:$0xff]   ;;  %v14433_v58 = vld [vmem:[%s18693_s3 + $0x5d8] sm:$0xff]  }
 0x2eb   :  { %13530 = vmatprep.subr.bf16.mxu0 %v19003_v1 }
 0x2ec   :  { %13525 = vmatpush3.bf16.msra.mxu1 %v14418_v45  ;;  %v3753_v34 = vmax.f32 %v3665_v28, 0.0  ;;  %v14429_v45 = vld [vmem:[%s18693_s3 + $0x5c8] sm:$0xff]  }
 0x2ed   :  { %13515 = vmatmul.mubr.msk.bf16.vlgmr.msra.gmra.mrb[4].mxu0 %vm4788_vm3, %v11952_v37  ;;  %13542 = vmatprep.subr.bf16.mxu1 %v19003_v1 }
 0x2ee   :  { %13531 = vmatpush3.bf16.msra.mxu0 %v14419_v41  ;;  %13538 = vmatprep.mubr.msk.bf16.mxu0 %vm14600_vm2, %v19003_v1  ;;  %v11955_v4 = vpack.c.bf16 %v3753_v34, %v3753_v34  ;;  %v14430_v41 = vld [vmem:[%s18693_s3 + $0x5e8] sm:$0xff]   ;;  %v14436_v34 = vld [vmem:[%s18693_s3 + $0x620] sm:$0xff]  }
 0x2ef   :  { %13527 = vmatmul.mubr.msk.bf16.vlgmr.msra.gmra.mrb[4].mxu1 %vm4788_vm3, %v11953_v63  ;;  %13532 = vmatprep.subr.bf16.mxu0 %v19003_v1 }
 0x2f0   :  { %v5898_v12 = vpop.f32.mrb[208].mxu0  ;;  %13543 = vmatpush3.bf16.msra.mxu1 %v14420_v21  ;;  %13550 = vmatprep.mubr.msk.bf16.mxu1 %vm14600_vm2, %v19003_v1 }
 0x2f1   :  { %v10676_v11 = vadd.f32 %v10675_v50, %v5898_v12  ;;  %v13204_v57 = vpop.f32.mrb[209].mxu0  ;;  %13544 = vmatprep.subr.bf16.mxu1 %v19003_v1  ;;  %v14431_v12 = vld [vmem:[%s18693_s3 + $0x5d0] sm:$0xff]  }
 0x2f2   :  { %v5901_v39 = vpop.f32.mrb[210].mxu0  ;;  %v5965_v13 = vpop.f32.mrb[208].mxu1  ;;  %13533 = vmatpush3.bf16.msra.mxu0 %v14421_v51 }
 0x2f3   :  { %v10677_v49 = vadd.f32 %v10676_v11, %v5965_v13  ;;  %v13205_v25 = vpop.f32.mrb[211].mxu0  ;;  %v13216_v42 = vpop.f32.mrb[209].mxu1  ;;  %13534 = vmatprep.subr.bf16.mxu0 %v19003_v1  ;;  %v19410_v11 = vld [vmem:[#allocation27_spill] sm:$0xff] }
 0x2f4   :  { %v5968_v50 = vpop.f32.mrb[210].mxu1  ;;  %13545 = vmatpush3.bf16.msra.mxu1 %v14422_v17  ;;  %v19409_v17 = vld [vmem:[#allocation28_spill] sm:$0xff]  ;;  %v19412_v25 = vld [vmem:[#allocation30_spill] sm:$0xff]  ;;  %v19413_v42 = vld [vmem:[#allocation29_spill] sm:$0xff] }
 0x2f5   :  { %v13217_v43 = vpop.f32.mrb[211].mxu1  ;;  %13546 = vmatprep.subr.bf16.mxu1 %v19003_v1  ;;  %v19411_v57 = vmax.f32 %v19409_v17, %v19410_v11  ;;  %v19414_v50 = vmax.f32 %v19412_v25, %v19413_v42 }
 0x2f6   :  { %13535 = vmatpush3.bf16.msra.mxu0 %v14423_v30  ;;  %v14434_v43 = vld [vmem:[%s18693_s3 + $0x5f8] sm:$0xff]  }
 0x2f7   :  { %13536 = vmatprep.subr.bf16.mxu0 %v19003_v1  ;;  %v3666_v39 = vadd.f32 %v17408_v26, %v19411_v57 }
 0x2f8   :  { %13547 = vmatpush3.bf16.msra.mxu1 %v14424_v19  ;;  %v3667_v19 = vadd.f32 %v17408_v26, %v19414_v50  ;;  %v14441_v50 = vld [vmem:[%s18693_s3 + $0x618] sm:$0xff]  }
 0x2f9   :  { %13548 = vmatprep.subr.bf16.mxu1 %v19003_v1  ;;  %v3754_v28 = vmax.f32 %v3666_v39, 0.0 }
 0x2fa   :  { %13537 = vmatpush3.bf16.msra.mxu0 %v14425_v16  ;;  %v3755_v16 = vmax.f32 %v3667_v19, 0.0 }
 0x2fb   :  { %13554 = vmatprep.subr.bf16.mxu0 %v19003_v1 }
 0x2fc   :  { %13549 = vmatpush3.bf16.msra.mxu1 %v14426_v53  ;;  %v11956_v53 = vpack.c.bf16 %v3754_v28, %v3754_v28  ;;  %v14443_v28 = vld [vmem:[%s18693_s3 + $0x640] sm:$0xff]  }
 0x2fd   :  { %13539 = vmatmul.mubr.msk.bf16.vlgmr.msra.gmra.mrb[8].mxu0 %vm4788_vm3, %v11954_v2  ;;  %13566 = vmatprep.subr.bf16.mxu1 %v19003_v1  ;;  %v14437_v2 = vld [vmem:[%s18693_s3 + $0x608] sm:$0xff]  }
 0x2fe   :  { %13555 = vmatpush3.bf16.msra.mxu0 %v14427_v8  ;;  %13562 = vmatprep.mubr.msk.bf16.mxu0 %vm14600_vm2, %v19003_v1  ;;  %v11957_v8 = vpack.c.bf16 %v3755_v16, %v3755_v16  ;;  %v14444_v16 = vld [vmem:[%s18693_s3 + $0x660] sm:$0xff]  }
 0x2ff   :  { %13551 = vmatmul.mubr.msk.bf16.vlgmr.msra.gmra.mrb[8].mxu1 %vm4788_vm3, %v11955_v4  ;;  %13556 = vmatprep.subr.bf16.mxu0 %v19003_v1  ;;  %v14438_v4 = vld [vmem:[%s18693_s3 + $0x628] sm:$0xff]  }
 0x300   :  { %v6032_v54 = vpop.f32.mrb[212].mxu0  ;;  %13567 = vmatpush3.bf16.msra.mxu1 %v14428_v56  ;;  %13574 = vmatprep.mubr.msk.bf16.mxu1 %vm14600_vm2, %v19003_v1 }
 0x301   :  { %v10678_v37 = vadd.f32 %v10677_v49, %v6032_v54  ;;  %v13228_v21 = vpop.f32.mrb[213].mxu0  ;;  %13568 = vmatprep.subr.bf16.mxu1 %v19003_v1  ;;  %v14432_v49 = vld [vmem:[%s18693_s3 + $0x5f0] sm:$0xff]  }
 0x302   :  { %v6035_v63 = vpop.f32.mrb[214].mxu0  ;;  %v6099_v51 = vpop.f32.mrb[212].mxu1  ;;  %13557 = vmatpush3.bf16.msra.mxu0 %v14429_v45  ;;  %v14439_v21 = vld [vmem:[%s18693_s3 + $0x610] sm:$0xff]  }
 0x303   :  { %v10679_v13 = vadd.f32 %v10678_v37, %v6099_v51  ;;  %v13229_v30 = vpop.f32.mrb[215].mxu0  ;;  %v13240_v6 = vpop.f32.mrb[213].mxu1  ;;  %13558 = vmatprep.subr.bf16.mxu0 %v19003_v1  ;;  %v19415_v63 = vld [vmem:[#allocation35_spill] sm:$0xff]  ;;  %v19416_v51 = vld [vmem:[#allocation34_spill] sm:$0xff] }
 0x304   :  { %v6102_v36 = vpop.f32.mrb[214].mxu1  ;;  %13569 = vmatpush3.bf16.msra.mxu1 %v14430_v41  ;;  %v14440_v30 = vld [vmem:[%s18693_s3 + $0x630] sm:$0xff]   ;;  %v19418_v6 = vld [vmem:[#allocation39_spill] sm:$0xff] }
 0x305   :  { %v13241_v24 = vpop.f32.mrb[215].mxu1  ;;  %13570 = vmatprep.subr.bf16.mxu1 %v19003_v1  ;;  %v19419_v36 = vld [vmem:[#allocation38_spill] sm:$0xff] }
 0x306   :  { %13559 = vmatpush3.bf16.msra.mxu0 %v14431_v12  ;;  %v19417_v12 = vmax.f32 %v19415_v63, %v19416_v51  ;;  %v14442_v24 = vld [vmem:[%s18693_s3 + $0x638] sm:$0xff]  }
 0x307   :  { %13560 = vmatprep.subr.bf16.mxu0 %v19003_v1 }
 0x308   :  { %13571 = vmatpush3.bf16.msra.mxu1 %v14432_v49  ;;  %v3668_v17 = vadd.f32 %v17408_v26, %v19417_v12  ;;  %v19420_v49 = vmax.f32 %v19418_v6, %v19419_v36 }
 0x309   :  { %13572 = vmatprep.subr.bf16.mxu1 %v19003_v1 }
 0x30a   :  { %13561 = vmatpush3.bf16.msra.mxu0 %v14433_v58  ;;  %v3669_v25 = vadd.f32 %v17408_v26, %v19420_v49  ;;  %v3756_v19 = vmax.f32 %v3668_v17, 0.0  ;;  %v14449_v49 = vld [vmem:[%s18693_s3 + $0x658] sm:$0xff]  }
 0x30b   :  { %13578 = vmatprep.subr.bf16.mxu0 %v19003_v1 }
 0x30c   :  { %13573 = vmatpush3.bf16.msra.mxu1 %v14434_v43  ;;  %v3757_v58 = vmax.f32 %v3669_v25, 0.0  ;;  %v11958_v43 = vpack.c.bf16 %v3756_v19, %v3756_v19  ;;  %v14451_v19 = vld [vmem:[%s18693_s3 + $0x680] sm:$0xff]  }
 0x30d   :  { %13563 = vmatmul.mubr.msk.bf16.vlgmr.msra.gmra.mrb[12].mxu0 %vm4788_vm3, %v11956_v53  ;;  %13590 = vmatprep.subr.bf16.mxu1 %v19003_v1  ;;  %v14445_v53 = vld [vmem:[%s18693_s3 + $0x648] sm:$0xff]  }
 0x30e   :  { %13579 = vmatpush3.bf16.msra.mxu0 %v14435_v9  ;;  %13586 = vmatprep.mubr.msk.bf16.mxu0 %vm14600_vm2, %v19003_v1  ;;  %v11959_v9 = vpack.c.bf16 %v3757_v58, %v3757_v58  ;;  %v14452_v58 = vld [vmem:[%s18693_s3 + $0x6a0] sm:$0xff]  }
 0x30f   :  { %13575 = vmatmul.mubr.msk.bf16.vlgmr.msra.gmra.mrb[12].mxu1 %vm4788_vm3, %v11957_v8  ;;  %13580 = vmatprep.subr.bf16.mxu0 %v19003_v1  ;;  %v14446_v8 = vld [vmem:[%s18693_s3 + $0x668] sm:$0xff]  }
 0x310   :  { %v6166_v56 = vpop.f32.mrb[216].mxu0  ;;  %13591 = vmatpush3.bf16.msra.mxu1 %v14436_v34  ;;  %13598 = vmatprep.mubr.msk.bf16.mxu1 %vm14600_vm2, %v19003_v1 }
 0x311   :  { %v10680_v45 = vadd.f32 %v10679_v13, %v6166_v56  ;;  %v13252_v54 = vpop.f32.mrb[217].mxu0  ;;  %13592 = vmatprep.subr.bf16.mxu1 %v19003_v1 }
 0x312   :  { %v6169_v41 = vpop.f32.mrb[218].mxu0  ;;  %v6233_v37 = vpop.f32.mrb[216].mxu1  ;;  %13581 = vmatpush3.bf16.msra.mxu0 %v14437_v2  ;;  %v14447_v54 = vld [vmem:[%s18693_s3 + $0x650] sm:$0xff]  }
 0x313   :  { %v10681_v11 = vadd.f32 %v10680_v45, %v6233_v37  ;;  %v13253_v57 = vpop.f32.mrb[219].mxu0  ;;  %v13264_v39 = vpop.f32.mrb[217].mxu1  ;;  %13582 = vmatprep.subr.bf16.mxu0 %v19003_v1  ;;  %v19421_v41 = vld [vmem:[#allocation33_spill] sm:$0xff]  ;;  %v19422_v37 = vld [vmem:[#allocation32_spill] sm:$0xff] }
 0x314   :  { %v6236_v13 = vpop.f32.mrb[218].mxu1  ;;  %13593 = vmatpush3.bf16.msra.mxu1 %v14438_v4  ;;  %v14448_v57 = vld [vmem:[%s18693_s3 + $0x670] sm:$0xff]   ;;  %v19424_v39 = vld [vmem:[#allocation37_spill] sm:$0xff] }
 0x315   :  { %v13265_v42 = vpop.f32.mrb[219].mxu1  ;;  %13594 = vmatprep.subr.bf16.mxu1 %v19003_v1  ;;  %v19425_v13 = vld [vmem:[#allocation36_spill] sm:$0xff] }
 0x316   :  { %13583 = vmatpush3.bf16.msra.mxu0 %v14439_v21  ;;  %v19423_v21 = vmax.f32 %v19421_v41, %v19422_v37  ;;  %v14450_v42 = vld [vmem:[%s18693_s3 + $0x678] sm:$0xff]  }
 0x317   :  { %13584 = vmatprep.subr.bf16.mxu0 %v19003_v1 }
 0x318   :  { %13595 = vmatpush3.bf16.msra.mxu1 %v14440_v30  ;;  %v3670_v63 = vadd.f32 %v17408_v26, %v19423_v21  ;;  %v19426_v30 = vmax.f32 %v19424_v39, %v19425_v13  ;;  %v14460_v39 = vld [vmem:[%s18693_s3 + $0x6e0] sm:$0xff]  }
 0x319   :  { %13596 = vmatprep.subr.bf16.mxu1 %v19003_v1 }
 0x31a   :  { %13585 = vmatpush3.bf16.msra.mxu0 %v14441_v50  ;;  %v3671_v6 = vadd.f32 %v17408_v26, %v19426_v30  ;;  %v3758_v25 = vmax.f32 %v3670_v63, 0.0  ;;  %v14456_v63 = vld [vmem:[%s18693_s3 + $0x6b0] sm:$0xff]   ;;  %v14461_v30 = vld [vmem:[%s18693_s3 + $0x6c8] sm:$0xff]  }
 0x31b   :  { %13602 = vmatprep.subr.bf16.mxu0 %v19003_v1 }
 0x31c   :  { %13597 = vmatpush3.bf16.msra.mxu1 %v14442_v24  ;;  %v3759_v50 = vmax.f32 %v3671_v6, 0.0  ;;  %v11960_v24 = vpack.c.bf16 %v3758_v25, %v3758_v25 }
 0x31d   :  { %13587 = vmatmul.mubr.msk.bf16.vlgmr.msra.gmra.mrb[16].mxu0 %vm4788_vm3, %v11958_v43  ;;  %13614 = vmatprep.subr.bf16.mxu1 %v19003_v1  ;;  %v14453_v43 = vld [vmem:[%s18693_s3 + $0x688] sm:$0xff]  }
 0x31e   :  { %13603 = vmatpush3.bf16.msra.mxu0 %v14443_v28  ;;  %13610 = vmatprep.mubr.msk.bf16.mxu0 %vm14600_vm2, %v19003_v1  ;;  %v11961_v28 = vpack.c.bf16 %v3759_v50, %v3759_v50 }
 0x31f   :  { %13599 = vmatmul.mubr.msk.bf16.vlgmr.msra.gmra.mrb[16].mxu1 %vm4788_vm3, %v11959_v9  ;;  %13604 = vmatprep.subr.bf16.mxu0 %v19003_v1  ;;  %v14454_v9 = vld [vmem:[%s18693_s3 + $0x6a8] sm:$0xff]  }
 0x320   :  { %v6300_v34 = vpop.f32.mrb[220].mxu0  ;;  %13615 = vmatpush3.bf16.msra.mxu1 %v14444_v16  ;;  %13622 = vmatprep.mubr.msk.bf16.mxu1 %vm14600_vm2, %v19003_v1 }
 0x321   :  { %v10682_v2 = vadd.f32 %v10681_v11, %v6300_v34  ;;  %v13276_v56 = vpop.f32.mrb[221].mxu0  ;;  %13616 = vmatprep.subr.bf16.mxu1 %v19003_v1 }
 0x322   :  { %v6303_v4 = vpop.f32.mrb[222].mxu0  ;;  %v6367_v45 = vpop.f32.mrb[220].mxu1  ;;  %13605 = vmatpush3.bf16.msra.mxu0 %v14445_v53  ;;  %v14455_v56 = vld [vmem:[%s18693_s3 + $0x690] sm:$0xff]  }
 0x323   :  { %v10683_v51 = vadd.f32 %v10682_v2, %v6367_v45  ;;  %v13277_v12 = vpop.f32.mrb[223].mxu0  ;;  %v13288_v17 = vpop.f32.mrb[221].mxu1  ;;  %13606 = vmatprep.subr.bf16.mxu0 %v19003_v1  ;;  %v19427_v4 = vmax.f32 %v16657_v35, %v16649_v60  ;;  %v14457_v35 = vld [vmem:[%s18693_s3 + $0x698] sm:$0xff]  }
 0x324   :  { %v6370_v11 = vpop.f32.mrb[222].mxu1  ;;  %13617 = vmatpush3.bf16.msra.mxu1 %v14446_v8 }
 0x325   :  { %v13289_v36 = vpop.f32.mrb[223].mxu1  ;;  %13618 = vmatprep.subr.bf16.mxu1 %v19003_v1  ;;  %v3672_v45 = vadd.f32 %v17408_v26, %v19427_v4  ;;  %v14458_v11 = vld [vmem:[%s18693_s3 + $0x6b8] sm:$0xff]  }
 0x326   :  { %13607 = vmatpush3.bf16.msra.mxu0 %v14447_v54  ;;  %v14462_v36 = vld [vmem:[%s18693_s3 + $0x6e8] sm:$0xff]  }
 0x327   :  { %13608 = vmatprep.subr.bf16.mxu0 %v19003_v1  ;;  %v3760_v60 = vmax.f32 %v3672_v45, 0.0 }
 0x328   :  { %13619 = vmatpush3.bf16.msra.mxu1 %v14448_v57 }
 0x329   :  { %13620 = vmatprep.subr.bf16.mxu1 %v19003_v1 }
 0x32a   :  { %13609 = vmatpush3.bf16.msra.mxu0 %v14449_v49 }
 0x32b   :  { %13626 = vmatprep.subr.bf16.mxu0 %v19003_v1 }
 0x32c   :  { %13621 = vmatpush3.bf16.msra.mxu1 %v14450_v42 }
 0x32d   :  { %13611 = vmatmul.mubr.msk.bf16.vlgmr.msra.gmra.mrb[20].mxu0 %vm4788_vm3, %v11960_v24  ;;  %13638 = vmatprep.subr.bf16.mxu1 %v19003_v1  ;;  %v19429_v24 = vld [vmem:[#allocation41_spill] sm:$0xff] }
 0x32e   :  { %13627 = vmatpush3.bf16.msra.mxu0 %v14451_v19  ;;  %13634 = vmatprep.mubr.msk.bf16.mxu0 %vm14600_vm2, %v19003_v1  ;;  %v14463_v19 = vld [vmem:[%s18693_s3 + $0x6d0] sm:$0xff]  }
 0x32f   :  { %13623 = vmatmul.mubr.msk.bf16.vlgmr.msra.gmra.mrb[20].mxu1 %vm4788_vm3, %v11961_v28  ;;  %13628 = vmatprep.subr.bf16.mxu0 %v19003_v1 }
 0x330   :  { %v6434_v16 = vpop.f32.mrb[224].mxu0  ;;  %13639 = vmatpush3.bf16.msra.mxu1 %v14452_v58  ;;  %13646 = vmatprep.mubr.msk.bf16.mxu1 %vm14600_vm2, %v19003_v1  ;;  %v19430_v58 = vld [vmem:[#allocation40_spill] sm:$0xff] }
 0x331   :  { %v10684_v53 = vadd.f32 %v10683_v51, %v6434_v16  ;;  %v13300_v34 = vpop.f32.mrb[225].mxu0  ;;  %13640 = vmatprep.subr.bf16.mxu1 %v19003_v1  ;;  %v19428_v51 = vmax.f32 %v16677_v18, %v16669_v52  ;;  %v14459_v52 = vld [vmem:[%s18693_s3 + $0x6c0] sm:$0xff]   ;;  %v11962_v18 = vpack.c.bf16 %v3760_v60, %v3760_v60  ;;  %v19431_v28 = vmax.f32 %v19429_v24, %v19430_v58  ;;  %v14472_v58 = vld [vmem:[%s18693_s3 + $0x730] sm:$0xff]  }
 0x332   :  { %v6437_v8 = vpop.f32.mrb[226].mxu0  ;;  %v6501_v2 = vpop.f32.mrb[224].mxu1  ;;  %13629 = vmatpush3.bf16.msra.mxu0 %v14453_v43 }
 0x333   :  { %v10685_v54 = vadd.f32 %v10684_v53, %v6501_v2  ;;  %v13301_v41 = vpop.f32.mrb[227].mxu0  ;;  %v13312_v37 = vpop.f32.mrb[225].mxu1  ;;  %13630 = vmatprep.subr.bf16.mxu0 %v19003_v1  ;;  %v3673_v12 = vadd.f32 %v17408_v26, %v19428_v51  ;;  %v3674_v43 = vadd.f32 %v17408_v26, %v19431_v28  ;;  %v14464_v8 = vld [vmem:[%s18693_s3 + $0x6f0] sm:$0xff]   ;;  %v19432_v2 = vld [vmem:[#allocation43_spill] sm:$0xff] }
 0x334   :  { %v6504_v21 = vpop.f32.mrb[226].mxu1  ;;  %13641 = vmatpush3.bf16.msra.mxu1 %v14454_v9  ;;  %v14465_v41 = vld [vmem:[%s18693_s3 + $0x6d8] sm:$0xff]   ;;  %v19438_v28 = vld [vmem:[#allocation51_spill] sm:$0xff] }
 0x335   :  { %v13313_v17 = vpop.f32.mrb[227].mxu1  ;;  %13642 = vmatprep.subr.bf16.mxu1 %v19003_v1  ;;  %v3761_v57 = vmax.f32 %v3673_v12, 0.0  ;;  %v3762_v37 = vmax.f32 %v3674_v43, 0.0  ;;  %v14466_v21 = vld [vmem:[%s18693_s3 + $0x6f8] sm:$0xff]   ;;  %v14468_v12 = vld [vmem:[%s18693_s3 + $0x720] sm:$0xff]  }
 0x336   :  { %13631 = vmatpush3.bf16.msra.mxu0 %v14455_v56  ;;  %v19433_v56 = vld [vmem:[#allocation42_spill] sm:$0xff] }
 0x337   :  { %13632 = vmatprep.subr.bf16.mxu0 %v19003_v1  ;;  %v11963_v13 = vpack.c.bf16 %v3761_v57, %v3761_v57  ;;  %v19434_v4 = vmax.f32 %v19432_v2, %v19433_v56  ;;  %v11964_v51 = vpack.c.bf16 %v3762_v37, %v3762_v37  ;;  %v19439_v43 = vld [vmem:[#allocation50_spill] sm:$0xff]  ;;  %v14474_v2 = vld [vmem:[%s18693_s3 + $0x738] sm:$0xff]   ;;  %v14477_v37 = vld [vmem:[%s18693_s3 + $0x748] sm:$0xff]  }
 0x338   :  { %13643 = vmatpush3.bf16.msra.mxu1 %v14456_v63 }
 0x339   :  { %13644 = vmatprep.subr.bf16.mxu1 %v19003_v1  ;;  %v3675_v45 = vadd.f32 %v17408_v26, %v19434_v4  ;;  %v14467_v26 = vld [vmem:[%s18693_s3 + $0x700] sm:$0xff]  }
 0x33a   :  { %13633 = vmatpush3.bf16.msra.mxu0 %v14457_v35  ;;  %v14469_v35 = vld [vmem:[%s18693_s3 + $0x708] sm:$0xff]   ;;  %v14475_v4 = vld [vmem:[%s18693_s3 + $0x740] sm:$0xff]  }
 0x33b   :  { %13650 = vmatprep.subr.bf16.mxu0 %v19003_v1  ;;  %v3763_v63 = vmax.f32 %v3675_v45, 0.0 }
 0x33c   :  { %13645 = vmatpush3.bf16.msra.mxu1 %v14458_v11  ;;  %v14470_v11 = vld [vmem:[%s18693_s3 + $0x728] sm:$0xff]  }
 0x33d   :  { %13635 = vmatmul.mubr.msk.bf16.vlgmr.msra.gmra.mrb[24].mxu0 %vm4788_vm3, %v11962_v18  ;;  %13662 = vmatprep.subr.bf16.mxu1 %v19003_v1  ;;  %v11965_v17 = vpack.c.bf16 %v3763_v63, %v3763_v63  ;;  %v14478_v63 = vld [vmem:[%s18693_s3 + $0x768] sm:$0xff]  }
 0x33e   :  { %13651 = vmatpush3.bf16.msra.mxu0 %v14459_v52  ;;  %13658 = vmatprep.mubr.msk.bf16.mxu0 %vm14600_vm2, %v19003_v1 }
 0x33f   :  { %13647 = vmatmul.mubr.msk.bf16.vlgmr.msra.gmra.mrb[24].mxu1 %vm4788_vm3, %v11963_v13  ;;  %13652 = vmatprep.subr.bf16.mxu0 %v19003_v1  ;;  %v14471_v13 = vld [vmem:[%s18693_s3 + $0x710] sm:$0xff]  }
 0x340   :  { %v6568_v6 = vpop.f32.mrb[228].mxu0  ;;  %13663 = vmatpush3.bf16.msra.mxu1 %v14460_v39  ;;  %13670 = vmatprep.mubr.msk.bf16.mxu1 %vm14600_vm2, %v19003_v1 }
 0x341   :  { %v10686_v49 = vadd.f32 %v10685_v54, %v6568_v6  ;;  %v13324_v25 = vpop.f32.mrb[229].mxu0  ;;  %13664 = vmatprep.subr.bf16.mxu1 %v19003_v1  ;;  %v19435_v6 = vld [vmem:[#allocation47_spill] sm:$0xff] }
 0x342   :  { %v6571_v42 = vpop.f32.mrb[230].mxu0  ;;  %v6635_v50 = vpop.f32.mrb[228].mxu1  ;;  %13653 = vmatpush3.bf16.msra.mxu0 %v14461_v30  ;;  %v17965_v30 = vld [vmem:[%s18694_s2] ss:$0 sm:$0xff] }
 0x343   :  { %v10687_v16 = vadd.f32 %v10686_v49, %v6635_v50  ;;  %v13325_v9 = vpop.f32.mrb[231].mxu0  ;;  %v13336_v53 = vpop.f32.mrb[229].mxu1  ;;  %13654 = vmatprep.subr.bf16.mxu0 %v19003_v1 }
 0x344   :  { %v6638_v34 = vpop.f32.mrb[230].mxu1  ;;  %13665 = vmatpush3.bf16.msra.mxu1 %v14462_v36  ;;  %v19436_v36 = vld [vmem:[#allocation46_spill] sm:$0xff] }
 0x345   :  { %v13337_v54 = vpop.f32.mrb[231].mxu1  ;;  %13666 = vmatprep.subr.bf16.mxu1 %v19003_v1  ;;  %v19437_v49 = vmax.f32 %v19435_v6, %v19436_v36  ;;  %v14473_v34 = vld [vmem:[%s18693_s3 + $0x718] sm:$0xff]   ;;  %v14480_v36 = vld [vmem:[%s18693_s3 + $0x770] sm:$0xff]  }
 0x346   :  { %13655 = vmatpush3.bf16.msra.mxu0 %v14463_v19  ;;  %v14476_v54 = vld [vmem:[%s18693_s3 + $0x760] sm:$0xff]  }
 0x347   :  { %13656 = vmatprep.subr.bf16.mxu0 %v19003_v1  ;;  %v3676_v25 = vadd.f32 %v17965_v30, %v19437_v49  ;;  %v19444_v49 = vld [vmem:[#allocation49_spill] sm:$0xff] }
 0x348   :  { %13667 = vmatpush3.bf16.msra.mxu1 %v14464_v8 }
 0x349   :  { %13668 = vmatprep.subr.bf16.mxu1 %v19003_v1  ;;  %v3764_v8 = vmax.f32 %v3676_v25, 0.0  ;;  %v19445_v25 = vld [vmem:[#allocation48_spill] sm:$0xff] }
 0x34a   :  { %13657 = vmatpush3.bf16.msra.mxu0 %v14465_v41 }
 0x34b   :  { %13674 = vmatprep.subr.bf16.mxu0 %v19003_v1  ;;  %v11966_v45 = vpack.c.bf16 %v3764_v8, %v3764_v8  ;;  %v14485_v8 = vld [vmem:[%s18693_s3 + $0x788] sm:$0xff]  }
 0x34c   :  { %13669 = vmatpush3.bf16.msra.mxu1 %v14466_v21 }
 0x34d   :  { %13659 = vmatmul.mubr.msk.bf16.vlgmr.msra.gmra.mrb[28].mxu0 %vm4788_vm3, %v11964_v51  ;;  %13686 = vmatprep.subr.bf16.mxu1 %v19003_v1 }
 0x34e   :  { %13675 = vmatpush3.bf16.msra.mxu0 %v14467_v26  ;;  %13682 = vmatprep.mubr.msk.bf16.mxu0 %vm14600_vm2, %v19003_v1 }
 0x34f   :  { %13671 = vmatmul.mubr.msk.bf16.vlgmr.msra.gmra.mrb[28].mxu1 %vm4788_vm3, %v11965_v17  ;;  %13676 = vmatprep.subr.bf16.mxu0 %v19003_v1 }
 0x350   :  { %v6702_v60 = vpop.f32.mrb[232].mxu0  ;;  %13687 = vmatpush3.bf16.msra.mxu1 %v14468_v12  ;;  %13694 = vmatprep.mubr.msk.bf16.mxu1 %vm14600_vm2, %v19003_v1 }
 0x351   :  { %v10688_v57 = vadd.f32 %v10687_v16, %v6702_v60  ;;  %v13348_v52 = vpop.f32.mrb[233].mxu0  ;;  %13688 = vmatprep.subr.bf16.mxu1 %v19003_v1  ;;  %v19440_v16 = vmax.f32 %v19438_v28, %v19439_v43  ;;  %v19441_v60 = vld [vmem:[#allocation45_spill] sm:$0xff] }
 0x352   :  { %v6705_v18 = vpop.f32.mrb[234].mxu0  ;;  %v6769_v39 = vpop.f32.mrb[232].mxu1  ;;  %13677 = vmatpush3.bf16.msra.mxu0 %v14469_v35  ;;  %v14479_v35 = vld [vmem:[%s18693_s3 + $0x750] sm:$0xff]   ;;  %v14482_v28 = vld [vmem:[%s18693_s3 + $0x778] sm:$0xff]  }
 0x353   :  { %v10689_v42 = vadd.f32 %v10688_v57, %v6769_v39  ;;  %v13349_v50 = vpop.f32.mrb[235].mxu0  ;;  %v13360_v19 = vpop.f32.mrb[233].mxu1  ;;  %13678 = vmatprep.subr.bf16.mxu0 %v19003_v1  ;;  %v3677_v9 = vadd.f32 %v17965_v30, %v19440_v16  ;;  %v14483_v16 = vld [vmem:[%s18693_s3 + $0x780] sm:$0xff]  }
 0x354   :  { %v6772_v24 = vpop.f32.mrb[234].mxu1  ;;  %13689 = vmatpush3.bf16.msra.mxu1 %v14470_v11  ;;  %v19442_v11 = vld [vmem:[#allocation44_spill] sm:$0xff] }
 0x355   :  { %v13361_v53 = vpop.f32.mrb[235].mxu1  ;;  %13690 = vmatprep.subr.bf16.mxu1 %v19003_v1  ;;  %v3765_v56 = vmax.f32 %v3677_v9, 0.0  ;;  %v19443_v57 = vmax.f32 %v19441_v60, %v19442_v11  ;;  %v14481_v24 = vld [vmem:[%s18693_s3 + $0x758] sm:$0xff]   ;;  %v19448_v60 = vmax.f32 %v16795_v15, %v16787_v23  ;;  %v14491_v15 = vld [vmem:[%s18693_s3 + $0x7c0] sm:$0xff]  }
 0x356   :  { %13679 = vmatpush3.bf16.msra.mxu0 %v14471_v13  ;;  %v14484_v53 = vld [vmem:[%s18693_s3 + $0x7a0] sm:$0xff]  }
 0x357   :  { %13680 = vmatprep.subr.bf16.mxu0 %v19003_v1  ;;  %v11967_v41 = vpack.c.bf16 %v3765_v56, %v3765_v56  ;;  %v3678_v52 = vadd.f32 %v17965_v30, %v19443_v57  ;;  %v14486_v56 = vld [vmem:[%s18693_s3 + $0x7a8] sm:$0xff]   ;;  %v3681_v11 = vadd.f32 %v17965_v30, %v19448_v60 }
 0x358   :  { %13691 = vmatpush3.bf16.msra.mxu1 %v14472_v58  ;;  %v14501_v60 = vld [vmem:[%s18693_s3 + $0x808] sm:$0xff]  }
 0x359   :  { %13692 = vmatprep.subr.bf16.mxu1 %v19003_v1  ;;  %v3766_v58 = vmax.f32 %v3678_v52, 0.0  ;;  %v14490_v52 = vld [vmem:[%s18693_s3 + $0x7b8] sm:$0xff]  }
 0x35a   :  { %13681 = vmatpush3.bf16.msra.mxu0 %v14473_v34 }
 0x35b   :  { %13698 = vmatprep.subr.bf16.mxu0 %v19003_v1  ;;  %v11968_v9 = vpack.c.bf16 %v3766_v58, %v3766_v58  ;;  %v19449_v58 = vld [vmem:[#allocation53_spill] sm:$0xff] }
 0x35c   :  { %13693 = vmatpush3.bf16.msra.mxu1 %v14474_v2 }
 0x35d   :  { %13683 = vmatmul.mubr.msk.bf16.vlgmr.msra.gmra.mrb[32].mxu0 %vm4788_vm3, %v11966_v45  ;;  %13710 = vmatprep.subr.bf16.mxu1 %v19003_v1 }
 0x35e   :  { %13699 = vmatpush3.bf16.msra.mxu0 %v14475_v4  ;;  %13706 = vmatprep.mubr.msk.bf16.mxu0 %vm14600_vm2, %v19003_v1 }
 0x35f   :  { %13695 = vmatmul.mubr.msk.bf16.vlgmr.msra.gmra.mrb[32].mxu1 %vm4788_vm3, %v11967_v41  ;;  %13700 = vmatprep.subr.bf16.mxu0 %v19003_v1 }
 0x360   :  { %v6836_v21 = vpop.f32.mrb[236].mxu0  ;;  %13711 = vmatpush3.bf16.msra.mxu1 %v14476_v54  ;;  %13718 = vmatprep.mubr.msk.bf16.mxu1 %vm14600_vm2, %v19003_v1 }
 0x361   :  { %v10690_v26 = vadd.f32 %v10689_v42, %v6836_v21  ;;  %v13372_v51 = vpop.f32.mrb[237].mxu0  ;;  %13712 = vmatprep.subr.bf16.mxu1 %v19003_v1  ;;  %v19446_v42 = vmax.f32 %v19444_v49, %v19445_v25  ;;  %v19447_v21 = vmax.f32 %v16775_v31, %v16767_v32  ;;  %v14489_v31 = vld [vmem:[%s18693_s3 + $0x798] sm:$0xff]   ;;  %v14494_v49 = vld [vmem:[%s18693_s3 + $0x7e8] sm:$0xff]  }
 0x362   :  { %v6839_v12 = vpop.f32.mrb[238].mxu0  ;;  %v6903_v17 = vpop.f32.mrb[236].mxu1  ;;  %13701 = vmatpush3.bf16.msra.mxu0 %v14477_v37  ;;  %v14487_v37 = vld [vmem:[%s18693_s3 + $0x790] sm:$0xff]  }
 0x363   :  { %v10691_v18 = vadd.f32 %v10690_v26, %v6903_v17  ;;  %v13373_v39 = vpop.f32.mrb[239].mxu0  ;;  %v13384_v13 = vpop.f32.mrb[237].mxu1  ;;  %13702 = vmatprep.subr.bf16.mxu0 %v19003_v1  ;;  %v3679_v50 = vadd.f32 %v17965_v30, %v19446_v42 }
 0x364   :  { %v6906_v6 = vpop.f32.mrb[238].mxu1  ;;  %13713 = vmatpush3.bf16.msra.mxu1 %v14478_v63  ;;  %v3680_v63 = vadd.f32 %v17965_v30, %v19447_v21  ;;  %v14492_v39 = vld [vmem:[%s18693_s3 + $0x7e0] sm:$0xff]  }
 0x365   :  { %v13385_v19 = vpop.f32.mrb[239].mxu1  ;;  %13714 = vmatprep.subr.bf16.mxu1 %v19003_v1  ;;  %v3767_v43 = vmax.f32 %v3679_v50, 0.0  ;;  %v14493_v6 = vld [vmem:[%s18693_s3 + $0x7c8] sm:$0xff]  }
 0x366   :  { %13703 = vmatpush3.bf16.msra.mxu0 %v14479_v35  ;;  %v14488_v35 = vld [vmem:[%s18693_s3 + $0x7b0] sm:$0xff]   ;;  %v3768_v32 = vmax.f32 %v3680_v63, 0.0  ;;  %v14498_v63 = vld [vmem:[%s18693_s3 + $0x7f8] sm:$0xff]  }
 0x367   :  { %13704 = vmatprep.subr.bf16.mxu0 %v19003_v1  ;;  %v11969_v34 = vpack.c.bf16 %v3767_v43, %v3767_v43 }
 0x368   :  { %13715 = vmatpush3.bf16.msra.mxu1 %v14480_v36  ;;  %v11970_v23 = vpack.c.bf16 %v3768_v32, %v3768_v32 }
 0x369   :  { %13716 = vmatprep.subr.bf16.mxu1 %v19003_v1 }
 0x36a   :  { %13705 = vmatpush3.bf16.msra.mxu0 %v14481_v24  ;;  %v14495_v24 = vld [vmem:[%s18693_s3 + $0x7d0] sm:$0xff]  }
 0x36b   :  { %13722 = vmatprep.subr.bf16.mxu0 %v19003_v1 }
 0x36c   :  { %13717 = vmatpush3.bf16.msra.mxu1 %v14482_v28  ;;  %v19450_v28 = vld [vmem:[#allocation52_spill] sm:$0xff] }
 0x36d   :  { %13707 = vmatmul.mubr.msk.bf16.vlgmr.msra.gmra.mrb[36].mxu0 %vm4788_vm3, %v11968_v9  ;;  %13734 = vmatprep.subr.bf16.mxu1 %v19003_v1  ;;  %v19451_v43 = vmax.f32 %v19449_v58, %v19450_v28 }
 0x36e   :  { %13723 = vmatpush3.bf16.msra.mxu0 %v14483_v16  ;;  %13730 = vmatprep.mubr.msk.bf16.mxu0 %vm14600_vm2, %v19003_v1 }
 0x36f   :  { %13719 = vmatmul.mubr.msk.bf16.vlgmr.msra.gmra.mrb[36].mxu1 %vm4788_vm3, %v11969_v34  ;;  %13724 = vmatprep.subr.bf16.mxu0 %v19003_v1  ;;  %v3682_v16 = vadd.f32 %v17965_v30, %v19451_v43 }
 0x370   :  { %v6970_v2 = vpop.f32.mrb[240].mxu0  ;;  %13735 = vmatpush3.bf16.msra.mxu1 %v14484_v53  ;;  %13742 = vmatprep.mubr.msk.bf16.mxu1 %vm14600_vm2, %v19003_v1 }
 0x371   :  { %v10692_v4 = vadd.f32 %v10691_v18, %v6970_v2  ;;  %v13396_v45 = vpop.f32.mrb[241].mxu0  ;;  %13736 = vmatprep.subr.bf16.mxu1 %v19003_v1  ;;  %v3769_v18 = vmax.f32 %v3681_v11, 0.0  ;;  %v14496_v2 = vld [vmem:[%s18693_s3 + $0x7f0] sm:$0xff]   ;;  %v3770_v21 = vmax.f32 %v3682_v16, 0.0  ;;  %v14505_v16 = vld [vmem:[%s18693_s3 + $0x818] sm:$0xff]  }
 0x372   :  { %v6973_v54 = vpop.f32.mrb[242].mxu0  ;;  %v7037_v41 = vpop.f32.mrb[240].mxu1  ;;  %13725 = vmatpush3.bf16.msra.mxu0 %v14485_v8 }
 0x373   :  { %v10693_v26 = vadd.f32 %v10692_v4, %v7037_v41  ;;  %v13397_v51 = vpop.f32.mrb[243].mxu0  ;;  %v13408_v12 = vpop.f32.mrb[241].mxu1  ;;  %13726 = vmatprep.subr.bf16.mxu0 %v19003_v1  ;;  %v11971_v13 = vpack.c.bf16 %v3769_v18, %v3769_v18  ;;  %v19453_v4 = vld [vmem:[#allocation54_spill] sm:$0xff] }
 0x374   :  { %v7040_v17 = vpop.f32.mrb[242].mxu1  ;;  %13737 = vmatpush3.bf16.msra.mxu1 %v14486_v56  ;;  %v19452_v56 = vld [vmem:[#allocation55_spill] sm:$0xff]  ;;  %v14499_v51 = vld [vmem:[%s18693_s3 + $0x800] sm:$0xff]   ;;  %v11972_v12 = vpack.c.bf16 %v3770_v21, %v3770_v21 }
 0x375   :  { %v13409_v57 = vpop.f32.mrb[243].mxu1  ;;  %13738 = vmatprep.subr.bf16.mxu1 %v19003_v1  ;;  %v19454_v45 = vmax.f32 %v19452_v56, %v19453_v4  ;;  %v14500_v17 = vld [vmem:[%s18693_s3 + $0x820] sm:$0xff]  }
 0x376   :  { %13727 = vmatpush3.bf16.msra.mxu0 %v14487_v37  ;;  %v14497_v37 = vld [vmem:[%s18693_s3 + $0x7d8] sm:$0xff]   ;;  %v14502_v57 = vld [vmem:[%s18693_s3 + $0x828] sm:$0xff]   ;;  %v14508_v56 = vld [vmem:[%s18693_s3 + $0x860] sm:$0xff]  }
 0x377   :  { %13728 = vmatprep.subr.bf16.mxu0 %v19003_v1  ;;  %v3683_v54 = vadd.f32 %v17965_v30, %v19454_v45  ;;  %v14509_v45 = vld [vmem:[%s18693_s3 + $0x848] sm:$0xff]  }
 0x378   :  { %13739 = vmatpush3.bf16.msra.mxu1 %v14488_v35 }
 0x379   :  { %13740 = vmatprep.subr.bf16.mxu1 %v19003_v1 }
 0x37a   :  { %13729 = vmatpush3.bf16.msra.mxu0 %v14489_v31 }
 0x37b   :  { %13746 = vmatprep.subr.bf16.mxu0 %v19003_v1 }
 0x37c   :  { %13741 = vmatpush3.bf16.msra.mxu1 %v14490_v52 }
 0x37d   :  { %13731 = vmatmul.mubr.msk.bf16.vlgmr.msra.gmra.mrb[40].mxu0 %vm4788_vm3, %v11970_v23  ;;  %13758 = vmatprep.subr.bf16.mxu1 %v19003_v1  ;;  %v19455_v23 = vld [vmem:[#allocation59_spill] sm:$0xff] }
 0x37e   :  { %13747 = vmatpush3.bf16.msra.mxu0 %v14491_v15  ;;  %13754 = vmatprep.mubr.msk.bf16.mxu0 %vm14600_vm2, %v19003_v1  ;;  %v14503_v15 = vld [vmem:[%s18693_s3 + $0x810] sm:$0xff]  }
 0x37f   :  { %13743 = vmatmul.mubr.msk.bf16.vlgmr.msra.gmra.mrb[40].mxu1 %vm4788_vm3, %v11971_v13  ;;  %13748 = vmatprep.subr.bf16.mxu0 %v19003_v1 }
 0x380   :  { %v7104_v36 = vpop.f32.mrb[244].mxu0  ;;  %13759 = vmatpush3.bf16.msra.mxu1 %v14492_v39  ;;  %13766 = vmatprep.mubr.msk.bf16.mxu1 %vm14600_vm2, %v19003_v1  ;;  %v19456_v39 = vld [vmem:[#allocation58_spill] sm:$0xff] }
 0x381   :  { %v10694_v25 = vadd.f32 %v10693_v26, %v7104_v36  ;;  %v13420_v42 = vpop.f32.mrb[245].mxu0  ;;  %13760 = vmatprep.subr.bf16.mxu1 %v19003_v1  ;;  %v3771_v26 = vmax.f32 %v3683_v54, 0.0  ;;  %v19457_v13 = vmax.f32 %v19455_v23, %v19456_v39 }
 0x382   :  { %v7107_v50 = vpop.f32.mrb[246].mxu0  ;;  %v7171_v19 = vpop.f32.mrb[244].mxu1  ;;  %13749 = vmatpush3.bf16.msra.mxu0 %v14493_v6 }
 0x383   :  { %v10695_v9 = vadd.f32 %v10694_v25, %v7171_v19  ;;  %v13421_v53 = vpop.f32.mrb[247].mxu0  ;;  %v13432_v34 = vpop.f32.mrb[245].mxu1  ;;  %13750 = vmatprep.subr.bf16.mxu0 %v19003_v1  ;;  %v11973_v35 = vpack.c.bf16 %v3771_v26, %v3771_v26  ;;  %v3684_v6 = vadd.f32 %v17965_v30, %v19457_v13  ;;  %v14504_v50 = vld [vmem:[%s18693_s3 + $0x830] sm:$0xff]   ;;  %v19458_v19 = vld [vmem:[#allocation63_spill] sm:$0xff] }
 0x384   :  { %v7174_v8 = vpop.f32.mrb[246].mxu1  ;;  %13761 = vmatpush3.bf16.msra.mxu1 %v14494_v49  ;;  %v14506_v53 = vld [vmem:[%s18693_s3 + $0x838] sm:$0xff]  }
 0x385   :  { %v13433_v41 = vpop.f32.mrb[247].mxu1  ;;  %13762 = vmatprep.subr.bf16.mxu1 %v19003_v1  ;;  %v14507_v8 = vld [vmem:[%s18693_s3 + $0x840] sm:$0xff]  }
 0x386   :  { %13751 = vmatpush3.bf16.msra.mxu0 %v14495_v24  ;;  %v19459_v24 = vld [vmem:[#allocation62_spill] sm:$0xff]  ;;  %v14510_v41 = vld [vmem:[%s18693_s3 + $0x868] sm:$0xff]  }
 0x387   :  { %13752 = vmatprep.subr.bf16.mxu0 %v19003_v1  ;;  %v19460_v58 = vmax.f32 %v19458_v19, %v19459_v24  ;;  %v14516_v19 = vld [vmem:[%s18693_s3 + $0x8a0] sm:$0xff]  }
 0x388   :  { %13763 = vmatpush3.bf16.msra.mxu1 %v14496_v2 }
 0x389   :  { %13764 = vmatprep.subr.bf16.mxu1 %v19003_v1  ;;  %v3685_v28 = vadd.f32 %v17965_v30, %v19460_v58  ;;  %v14517_v58 = vld [vmem:[%s18693_s3 + $0x888] sm:$0xff]  }
 0x38a   :  { %13753 = vmatpush3.bf16.msra.mxu0 %v14497_v37 }
 0x38b   :  { %13770 = vmatprep.subr.bf16.mxu0 %v19003_v1  ;;  %v3773_v34 = vmax.f32 %v3685_v28, 0.0 }
 0x38c   :  { %13765 = vmatpush3.bf16.msra.mxu1 %v14498_v63 }
 0x38d   :  { %13755 = vmatmul.mubr.msk.bf16.vlgmr.msra.gmra.mrb[44].mxu0 %vm4788_vm3, %v11972_v12  ;;  %13782 = vmatprep.subr.bf16.mxu1 %v19003_v1  ;;  %v11975_v4 = vpack.c.bf16 %v3773_v34, %v3773_v34  ;;  %v19461_v12 = vld [vmem:[#allocation57_spill] sm:$0xff] }
 0x38e   :  { %13771 = vmatpush3.bf16.msra.mxu0 %v14499_v51  ;;  %13778 = vmatprep.mubr.msk.bf16.mxu0 %vm14600_vm2, %v19003_v1  ;;  %v14511_v51 = vld [vmem:[%s18693_s3 + $0x850] sm:$0xff]  }
 0x38f   :  { %13767 = vmatmul.mubr.msk.bf16.vlgmr.msra.gmra.mrb[44].mxu1 %vm4788_vm3, %v11973_v35  ;;  %13772 = vmatprep.subr.bf16.mxu0 %v19003_v1 }
 0x390   :  { %v7238_v11 = vpop.f32.mrb[248].mxu0  ;;  %13783 = vmatpush3.bf16.msra.mxu1 %v14500_v17  ;;  %13790 = vmatprep.mubr.msk.bf16.mxu1 %vm14600_vm2, %v19003_v1  ;;  %v19462_v17 = vld [vmem:[#allocation56_spill] sm:$0xff] }
 0x391   :  { %v10696_v31 = vadd.f32 %v10695_v9, %v7238_v11  ;;  %v13444_v32 = vpop.f32.mrb[249].mxu0  ;;  %13784 = vmatprep.subr.bf16.mxu1 %v19003_v1  ;;  %v3772_v9 = vmax.f32 %v3684_v6, 0.0  ;;  %v19463_v35 = vmax.f32 %v19461_v12, %v19462_v17  ;;  %v14513_v6 = vld [vmem:[%s18693_s3 + $0x858] sm:$0xff]   ;;  %v14524_v17 = vld [vmem:[%s18693_s3 + $0x8e0] sm:$0xff]  }
 0x392   :  { %v7241_v52 = vpop.f32.mrb[250].mxu0  ;;  %v7305_v18 = vpop.f32.mrb[248].mxu1  ;;  %13773 = vmatpush3.bf16.msra.mxu0 %v14501_v60 }
 0x393   :  { %v10697_v36 = vadd.f32 %v10696_v31, %v7305_v18  ;;  %v13445_v49 = vpop.f32.mrb[251].mxu0  ;;  %v13456_v25 = vpop.f32.mrb[249].mxu1  ;;  %13774 = vmatprep.subr.bf16.mxu0 %v19003_v1  ;;  %v11974_v2 = vpack.c.bf16 %v3772_v9, %v3772_v9  ;;  %v3686_v60 = vadd.f32 %v17965_v30, %v19463_v35  ;;  %v14512_v52 = vld [vmem:[%s18693_s3 + $0x870] sm:$0xff]   ;;  %v19464_v18 = vld [vmem:[#allocation61_spill] sm:$0xff] }
 0x394   :  { %v7308_v42 = vpop.f32.mrb[250].mxu1  ;;  %13785 = vmatpush3.bf16.msra.mxu1 %v14502_v57  ;;  %v14514_v49 = vld [vmem:[%s18693_s3 + $0x878] sm:$0xff]  }
 0x395   :  { %v13457_v43 = vpop.f32.mrb[251].mxu1  ;;  %13786 = vmatprep.subr.bf16.mxu1 %v19003_v1  ;;  %v14515_v42 = vld [vmem:[%s18693_s3 + $0x880] sm:$0xff]  }
 0x396   :  { %13775 = vmatpush3.bf16.msra.mxu0 %v14503_v15  ;;  %v19465_v15 = vld [vmem:[#allocation60_spill] sm:$0xff]  ;;  %v14518_v43 = vld [vmem:[%s18693_s3 + $0x8a8] sm:$0xff]  }
 0x397   :  { %13776 = vmatprep.subr.bf16.mxu0 %v19003_v1  ;;  %v19466_v23 = vmax.f32 %v19464_v18, %v19465_v15  ;;  %v14527_v15 = vld [vmem:[%s18693_s3 + $0x8d0] sm:$0xff]  }
 0x398   :  { %13787 = vmatpush3.bf16.msra.mxu1 %v14504_v50 }
 0x399   :  { %13788 = vmatprep.subr.bf16.mxu1 %v19003_v1  ;;  %v3687_v39 = vadd.f32 %v17965_v30, %v19466_v23  ;;  %v19469_v23 = vld [vmem:[#allocation65_spill] sm:$0xff] }
 0x39a   :  { %13777 = vmatpush3.bf16.msra.mxu0 %v14505_v16 }
 0x39b   :  { %13794 = vmatprep.subr.bf16.mxu0 %v19003_v1  ;;  %v3775_v25 = vmax.f32 %v3687_v39, 0.0  ;;  %v19470_v39 = vld [vmem:[#allocation64_spill] sm:$0xff] }
 0x39c   :  { %13789 = vmatpush3.bf16.msra.mxu1 %v14506_v53 }
 0x39d   :  { %13779 = vmatmul.mubr.msk.bf16.vlgmr.msra.gmra.mrb[48].mxu0 %vm4788_vm3, %v11974_v2  ;;  %13806 = vmatprep.subr.bf16.mxu1 %v19003_v1  ;;  %v11977_v24 = vpack.c.bf16 %v3775_v25, %v3775_v25  ;;  %v19467_v2 = vmax.f32 %v16893_v62, %v16885_v55  ;;  %v14521_v62 = vld [vmem:[%s18693_s3 + $0x898] sm:$0xff]  }
 0x39e   :  { %13795 = vmatpush3.bf16.msra.mxu0 %v14507_v8  ;;  %13802 = vmatprep.mubr.msk.bf16.mxu0 %vm14600_vm2, %v19003_v1  ;;  %v14519_v8 = vld [vmem:[%s18693_s3 + $0x890] sm:$0xff]  }
 0x39f   :  { %13791 = vmatmul.mubr.msk.bf16.vlgmr.msra.gmra.mrb[48].mxu1 %vm4788_vm3, %v11975_v4  ;;  %13796 = vmatprep.subr.bf16.mxu0 %v19003_v1 }
 0x3a0   :  { %v7372_v54 = vpop.f32.mrb[252].mxu0  ;;  %13807 = vmatpush3.bf16.msra.mxu1 %v14508_v56  ;;  %13814 = vmatprep.mubr.msk.bf16.mxu1 %vm14600_vm2, %v19003_v1  ;;  %v3688_v56 = vadd.f32 %v17965_v30, %v19467_v2 }
 0x3a1   :  { %v10698_v37 = vadd.f32 %v10697_v36, %v7372_v54  ;;  %v13468_v21 = vpop.f32.mrb[253].mxu0  ;;  %13808 = vmatprep.subr.bf16.mxu1 %v19003_v1  ;;  %v3774_v36 = vmax.f32 %v3686_v60, 0.0  ;;  %v14525_v60 = vld [vmem:[%s18693_s3 + $0x8c8] sm:$0xff]  }
 0x3a2   :  { %v7375_v63 = vpop.f32.mrb[254].mxu0  ;;  %v7439_v26 = vpop.f32.mrb[252].mxu1  ;;  %13797 = vmatpush3.bf16.msra.mxu0 %v14509_v45  ;;  %v19468_v21 = vmax.f32 %v16913_v3, %v16905_v29  ;;  %v3776_v55 = vmax.f32 %v3688_v56, 0.0  ;;  %v14523_v3 = vld [vmem:[%s18693_s3 + $0x8c0] sm:$0xff]  }
 0x3a3   :  { %v10699_v11 = vadd.f32 %v10698_v37, %v7439_v26  ;;  %v13469_v57 = vpop.f32.mrb[255].mxu0  ;;  %v13480_v31 = vpop.f32.mrb[253].mxu1  ;;  %13798 = vmatprep.subr.bf16.mxu0 %v19003_v1  ;;  %v11976_v50 = vpack.c.bf16 %v3774_v36, %v3774_v36  ;;  %v14520_v37 = vld [vmem:[%s18693_s3 + $0x8b0] sm:$0xff]   ;;  %v14532_v56 = vld [vmem:[%s18693_s3 + $0x920] sm:$0xff]  }
 0x3a4   :  { %v7442_v32 = vpop.f32.mrb[254].mxu1  ;;  %13809 = vmatpush3.bf16.msra.mxu1 %v14510_v41  ;;  %v3689_v63 = vadd.f32 %v17965_v30, %v19468_v21  ;;  %v11978_v29 = vpack.c.bf16 %v3776_v55, %v3776_v55  ;;  %v14526_v57 = vld [vmem:[%s18693_s3 + $0x8e8] sm:$0xff]  }
 0x3a5   :  { %v13481_v13 = vpop.f32.mrb[255].mxu1  ;;  %13810 = vmatprep.subr.bf16.mxu1 %v19003_v1  ;;  %v19475_v55 = vld [vmem:[#allocation71_spill] sm:$0xff] }
 0x3a6   :  { %13799 = vmatpush3.bf16.msra.mxu0 %v14511_v51  ;;  %v14522_v51 = vld [vmem:[%s18693_s3 + $0x8b8] sm:$0xff]   ;;  %v3777_v12 = vmax.f32 %v3689_v63, 0.0  ;;  %v19471_v13 = vmax.f32 %v19469_v23, %v19470_v39 }
 0x3a7   :  { %13800 = vmatprep.subr.bf16.mxu0 %v19003_v1  ;;  %v14538_v39 = vld [vmem:[%s18693_s3 + $0x938] sm:$0xff]  }
 0x3a8   :  { %13811 = vmatpush3.bf16.msra.mxu1 %v14512_v52  ;;  %v11979_v35 = vpack.c.bf16 %v3777_v12, %v3777_v12 }
 0x3a9   :  { %13812 = vmatprep.subr.bf16.mxu1 %v19003_v1 }
 0x3aa   :  { %13801 = vmatpush3.bf16.msra.mxu0 %v14513_v6  ;;  %v3690_v6 = vadd.f32 %v17965_v30, %v19471_v13 }
 0x3ab   :  { %13818 = vmatprep.subr.bf16.mxu0 %v19003_v1 }
 0x3ac   :  { %13813 = vmatpush3.bf16.msra.mxu1 %v14514_v49 }
 0x3ad   :  { %13803 = vmatmul.mubr.msk.bf16.vlgmr.msra.gmra.mrb[52].mxu0 %vm4788_vm3, %v11976_v50  ;;  %13830 = vmatprep.subr.bf16.mxu1 %v19003_v1  ;;  %v14528_v50 = vld [vmem:[%s18693_s3 + $0x8f0] sm:$0xff]  }
 0x3ae   :  { %13819 = vmatpush3.bf16.msra.mxu0 %v14515_v42  ;;  %13826 = vmatprep.mubr.msk.bf16.mxu0 %vm14600_vm2, %v19003_v1 }
 0x3af   :  { %13815 = vmatmul.mubr.msk.bf16.vlgmr.msra.gmra.mrb[52].mxu1 %vm4788_vm3, %v11977_v24  ;;  %13820 = vmatprep.subr.bf16.mxu0 %v19003_v1  ;;  %v19473_v24 = vld [vmem:[#allocation66_spill] sm:$0xff] }
 0x3b0   :  { %v7506_v28 = vpop.f32.mrb[0].mxu0  ;;  %13831 = vmatpush3.bf16.msra.mxu1 %v14516_v19  ;;  %13838 = vmatprep.mubr.msk.bf16.mxu1 %vm14600_vm2, %v19003_v1  ;;  %v19472_v19 = vld [vmem:[#allocation67_spill] sm:$0xff] }
 0x3b1   :  { %v10700_v16 = vadd.f32 %v10699_v11, %v7506_v28  ;;  %v13492_v9 = vpop.f32.mrb[1].mxu0  ;;  %13832 = vmatprep.subr.bf16.mxu1 %v19003_v1 }
 0x3b2   :  { %v7509_v53 = vpop.f32.mrb[2].mxu0  ;;  %v7573_v34 = vpop.f32.mrb[0].mxu1  ;;  %13821 = vmatpush3.bf16.msra.mxu0 %v14517_v58  ;;  %v19474_v58 = vmax.f32 %v19472_v19, %v19473_v24  ;;  %v3778_v9 = vmax.f32 %v3690_v6, 0.0  ;;  %v14539_v6 = vld [vmem:[%s18693_s3 + $0x940] sm:$0xff]   ;;  %v14542_v19 = vld [vmem:[%s18693_s3 + $0x968] sm:$0xff]  }
 0x3b3   :  { %v10701_v4 = vadd.f32 %v10700_v16, %v7573_v34  ;;  %v13493_v45 = vpop.f32.mrb[3].mxu0  ;;  %v13504_v54 = vpop.f32.mrb[1].mxu1  ;;  %13822 = vmatprep.subr.bf16.mxu0 %v19003_v1  ;;  %v14529_v16 = vld [vmem:[%s18693_s3 + $0x8d8] sm:$0xff]  }
 0x3b4   :  { %v7576_v41 = vpop.f32.mrb[2].mxu1  ;;  %13833 = vmatpush3.bf16.msra.mxu1 %v14518_v43  ;;  %v3691_v28 = vadd.f32 %v17965_v30, %v19474_v58  ;;  %v14530_v53 = vld [vmem:[%s18693_s3 + $0x8f8] sm:$0xff]   ;;  %v11980_v2 = vpack.c.bf16 %v3778_v9, %v3778_v9  ;;  %v14533_v45 = vld [vmem:[%s18693_s3 + $0x908] sm:$0xff]  }
 0x3b5   :  { %v13505_v26 = vpop.f32.mrb[3].mxu1  ;;  %13834 = vmatprep.subr.bf16.mxu1 %v19003_v1  ;;  %v14534_v41 = vld [vmem:[%s18693_s3 + $0x928] sm:$0xff]   ;;  %v19481_v9 = vld [vmem:[#allocation69_spill] sm:$0xff] }
 0x3b6   :  { %13823 = vmatpush3.bf16.msra.mxu0 %v14519_v8  ;;  %v3779_v34 = vmax.f32 %v3691_v28, 0.0  ;;  %v14531_v8 = vld [vmem:[%s18693_s3 + $0x900] sm:$0xff]  }
 0x3b7   :  { %13824 = vmatprep.subr.bf16.mxu0 %v19003_v1 }
 0x3b8   :  { %13835 = vmatpush3.bf16.msra.mxu1 %v14520_v37 }
 0x3b9   :  { %13836 = vmatprep.subr.bf16.mxu1 %v19003_v1 }
 0x3ba   :  { %13825 = vmatpush3.bf16.msra.mxu0 %v14521_v62  ;;  %v14535_v62 = vld [vmem:[%s18693_s3 + $0x910] sm:$0xff]  }
 0x3bb   :  { %13842 = vmatprep.subr.bf16.mxu0 %v19003_v1 }
 0x3bc   :  { %13837 = vmatpush3.bf16.msra.mxu1 %v14522_v51  ;;  %v19476_v51 = vld [vmem:[#allocation70_spill] sm:$0xff] }
 0x3bd   :  { %13827 = vmatmul.mubr.msk.bf16.vlgmr.msra.gmra.mrb[56].mxu0 %vm4788_vm3, %v11978_v29  ;;  %13854 = vmatprep.subr.bf16.mxu1 %v19003_v1  ;;  %v19477_v12 = vmax.f32 %v19475_v55, %v19476_v51  ;;  %v14546_v51 = vld [vmem:[%s18693_s3 + $0x978] sm:$0xff]  }
 0x3be   :  { %13843 = vmatpush3.bf16.msra.mxu0 %v14523_v3  ;;  %13850 = vmatprep.mubr.msk.bf16.mxu0 %vm14600_vm2, %v19003_v1 }
 0x3bf   :  { %13839 = vmatmul.mubr.msk.bf16.vlgmr.msra.gmra.mrb[56].mxu1 %vm4788_vm3, %v11979_v35  ;;  %13844 = vmatprep.subr.bf16.mxu0 %v19003_v1  ;;  %v3692_v3 = vadd.f32 %v17965_v30, %v19477_v12 }
 0x3c0   :  { %v7640_v11 = vpop.f32.mrb[4].mxu0  ;;  %13855 = vmatpush3.bf16.msra.mxu1 %v14524_v17  ;;  %13862 = vmatprep.mubr.msk.bf16.mxu1 %vm14600_vm2, %v19003_v1 }
 0x3c1   :  { %v10702_v31 = vadd.f32 %v10701_v4, %v7640_v11  ;;  %v13516_v32 = vpop.f32.mrb[5].mxu0  ;;  %13856 = vmatprep.subr.bf16.mxu1 %v19003_v1  ;;  %v11981_v4 = vpack.c.bf16 %v3779_v34, %v3779_v34  ;;  %v14536_v11 = vld [vmem:[%s18693_s3 + $0x930] sm:$0xff]   ;;  %v3780_v23 = vmax.f32 %v3692_v3, 0.0  ;;  %v14547_v3 = vld [vmem:[%s18693_s3 + $0x980] sm:$0xff]  }
 0x3c2   :  { %v7643_v52 = vpop.f32.mrb[6].mxu0  ;;  %v7707_v18 = vpop.f32.mrb[4].mxu1  ;;  %13845 = vmatpush3.bf16.msra.mxu0 %v14525_v60 }
 0x3c3   :  { %v10703_v36 = vadd.f32 %v10702_v31, %v7707_v18  ;;  %v13517_v49 = vpop.f32.mrb[7].mxu0  ;;  %v13528_v25 = vpop.f32.mrb[5].mxu1  ;;  %13846 = vmatprep.subr.bf16.mxu0 %v19003_v1  ;;  %v19479_v31 = vld [vmem:[#allocation74_spill] sm:$0xff] }
 0x3c4   :  { %v7710_v42 = vpop.f32.mrb[6].mxu1  ;;  %13857 = vmatpush3.bf16.msra.mxu1 %v14526_v57  ;;  %v19478_v57 = vld [vmem:[#allocation75_spill] sm:$0xff]  ;;  %v14540_v49 = vld [vmem:[%s18693_s3 + $0x960] sm:$0xff]  }
 0x3c5   :  { %v13529_v43 = vpop.f32.mrb[7].mxu1  ;;  %13858 = vmatprep.subr.bf16.mxu1 %v19003_v1  ;;  %v19480_v32 = vmax.f32 %v19478_v57, %v19479_v31  ;;  %v14541_v42 = vld [vmem:[%s18693_s3 + $0x948] sm:$0xff]  }
 0x3c6   :  { %13847 = vmatpush3.bf16.msra.mxu0 %v14527_v15  ;;  %v14537_v15 = vld [vmem:[%s18693_s3 + $0x918] sm:$0xff]   ;;  %v14550_v57 = vld [vmem:[%s18693_s3 + $0x9a8] sm:$0xff]  }
 0x3c7   :  { %13848 = vmatprep.subr.bf16.mxu0 %v19003_v1  ;;  %v3693_v52 = vadd.f32 %v17965_v30, %v19480_v32 }
 0x3c8   :  { %13859 = vmatpush3.bf16.msra.mxu1 %v14528_v50 }
 0x3c9   :  { %13860 = vmatprep.subr.bf16.mxu1 %v19003_v1  ;;  %v3781_v13 = vmax.f32 %v3693_v52, 0.0 }
 0x3ca   :  { %13849 = vmatpush3.bf16.msra.mxu0 %v14529_v16  ;;  %v14543_v16 = vld [vmem:[%s18693_s3 + $0x950] sm:$0xff]  }
 0x3cb   :  { %13866 = vmatprep.subr.bf16.mxu0 %v19003_v1  ;;  %v11983_v25 = vpack.c.bf16 %v3781_v13, %v3781_v13 }
 0x3cc   :  { %13861 = vmatpush3.bf16.msra.mxu1 %v14530_v53  ;;  %v19482_v53 = vld [vmem:[#allocation68_spill] sm:$0xff] }
 0x3cd   :  { %13851 = vmatmul.mubr.msk.bf16.vlgmr.msra.gmra.mrb[60].mxu0 %vm4788_vm3, %v11980_v2  ;;  %13878 = vmatprep.subr.bf16.mxu1 %v19003_v1  ;;  %v19483_v34 = vmax.f32 %v19481_v9, %v19482_v53  ;;  %v14558_v53 = vld [vmem:[%s18693_s3 + $0x9e8] sm:$0xff]  }
 0x3ce   :  { %13867 = vmatpush3.bf16.msra.mxu0 %v14531_v8  ;;  %13874 = vmatprep.mubr.msk.bf16.mxu0 %vm14600_vm2, %v19003_v1 }
 0x3cf   :  { %13863 = vmatmul.mubr.msk.bf16.vlgmr.msra.gmra.mrb[60].mxu1 %vm4788_vm3, %v11981_v4  ;;  %13868 = vmatprep.subr.bf16.mxu0 %v19003_v1  ;;  %v3694_v8 = vadd.f32 %v17965_v30, %v19483_v34 }
 0x3d0   :  { %v7774_v54 = vpop.f32.mrb[8].mxu0  ;;  %13879 = vmatpush3.bf16.msra.mxu1 %v14532_v56  ;;  %13886 = vmatprep.mubr.msk.bf16.mxu1 %vm14600_vm2, %v19003_v1 }
 0x3d1   :  { %v10704_v37 = vadd.f32 %v10703_v36, %v7774_v54  ;;  %v13540_v21 = vpop.f32.mrb[9].mxu0  ;;  %13880 = vmatprep.subr.bf16.mxu1 %v19003_v1  ;;  %v11982_v36 = vpack.c.bf16 %v3780_v23, %v3780_v23  ;;  %v14544_v54 = vld [vmem:[%s18693_s3 + $0x970] sm:$0xff]   ;;  %v3782_v55 = vmax.f32 %v3694_v8, 0.0  ;;  %v19487_v23 = vmax.f32 %v17011_v48, %v17003_v33  ;;  %v14553_v48 = vld [vmem:[%s18693_s3 + $0x998] sm:$0xff]  }
 0x3d2   :  { %v7777_v63 = vpop.f32.mrb[10].mxu0  ;;  %v7841_v26 = vpop.f32.mrb[8].mxu1  ;;  %13869 = vmatpush3.bf16.msra.mxu0 %v14533_v45 }
 0x3d3   :  { %v10705_v29 = vadd.f32 %v10704_v37, %v7841_v26  ;;  %v13541_v17 = vpop.f32.mrb[11].mxu0  ;;  %v13552_v35 = vpop.f32.mrb[9].mxu1  ;;  %13870 = vmatprep.subr.bf16.mxu0 %v19003_v1  ;;  %v19485_v37 = vld [vmem:[#allocation72_spill] sm:$0xff] }
 0x3d4   :  { %v7844_v60 = vpop.f32.mrb[10].mxu1  ;;  %13881 = vmatpush3.bf16.msra.mxu1 %v14534_v41  ;;  %v19484_v41 = vld [vmem:[#allocation73_spill] sm:$0xff]  ;;  %v14548_v17 = vld [vmem:[%s18693_s3 + $0x9a0] sm:$0xff]  }
 0x3d5   :  { %v13553_v18 = vpop.f32.mrb[11].mxu1  ;;  %13882 = vmatprep.subr.bf16.mxu1 %v19003_v1  ;;  %v19486_v21 = vmax.f32 %v19484_v41, %v19485_v37  ;;  %v14549_v60 = vld [vmem:[%s18693_s3 + $0x988] sm:$0xff]  }
 0x3d6   :  { %13871 = vmatpush3.bf16.msra.mxu0 %v14535_v62  ;;  %v14545_v62 = vld [vmem:[%s18693_s3 + $0x958] sm:$0xff]  }
 0x3d7   :  { %13872 = vmatprep.subr.bf16.mxu0 %v19003_v1  ;;  %v3695_v63 = vadd.f32 %v17965_v30, %v19486_v21 }
 0x3d8   :  { %13883 = vmatpush3.bf16.msra.mxu1 %v14536_v11 }
 0x3d9   :  { %13884 = vmatprep.subr.bf16.mxu1 %v19003_v1  ;;  %v3783_v12 = vmax.f32 %v3695_v63, 0.0 }
 0x3da   :  { %13873 = vmatpush3.bf16.msra.mxu0 %v14537_v15  ;;  %v14551_v15 = vld [vmem:[%s18693_s3 + $0x990] sm:$0xff]  }
 0x3db   :  { %13890 = vmatprep.subr.bf16.mxu0 %v19003_v1  ;;  %v11985_v35 = vpack.c.bf16 %v3783_v12, %v3783_v12 }
 0x3dc   :  { %13885 = vmatpush3.bf16.msra.mxu1 %v14538_v39  ;;  %v3696_v39 = vadd.f32 %v17965_v30, %v19487_v23 }
 0x3dd   :  { %13875 = vmatmul.mubr.msk.bf16.vlgmr.msra.gmra.mrb[64].mxu0 %vm4788_vm3, %v11982_v36  ;;  %13902 = vmatprep.subr.bf16.mxu1 %v19003_v1 }
 0x3de   :  { %13891 = vmatpush3.bf16.msra.mxu0 %v14539_v6  ;;  %13898 = vmatprep.mubr.msk.bf16.mxu0 %vm14600_vm2, %v19003_v1  ;;  %v3784_v33 = vmax.f32 %v3696_v39, 0.0 }
 0x3df   :  { %13887 = vmatmul.mubr.msk.bf16.vlgmr.msra.gmra.mrb[64].mxu1 %vm4788_vm3, %v11983_v25  ;;  %13892 = vmatprep.subr.bf16.mxu0 %v19003_v1  ;;  %v14552_v25 = vld [vmem:[%s18693_s3 + $0x9b0] sm:$0xff]  }
 0x3e0   :  { %v7908_v50 = vpop.f32.mrb[12].mxu0  ;;  %13903 = vmatpush3.bf16.msra.mxu1 %v14540_v49  ;;  %13910 = vmatprep.mubr.msk.bf16.mxu1 %vm14600_vm2, %v19003_v1 }
 0x3e1   :  { %v10706_v24 = vadd.f32 %v10705_v29, %v7908_v50  ;;  %v13564_v58 = vpop.f32.mrb[13].mxu0  ;;  %13904 = vmatprep.subr.bf16.mxu1 %v19003_v1  ;;  %v11984_v29 = vpack.c.bf16 %v3782_v55, %v3782_v55  ;;  %v19491_v55 = vld [vmem:[#allocation78_spill] sm:$0xff] }
 0x3e2   :  { %v7911_v28 = vpop.f32.mrb[14].mxu0  ;;  %v7975_v43 = vpop.f32.mrb[12].mxu1  ;;  %13893 = vmatpush3.bf16.msra.mxu0 %v14541_v42  ;;  %v19488_v42 = vmax.f32 %v17031_v0, %v17023_v59  ;;  %v14555_v0 = vld [vmem:[%s18693_s3 + $0x9c0] sm:$0xff]   ;;  %v11986_v59 = vpack.c.bf16 %v3784_v33, %v3784_v33 }
 0x3e3   :  { %v10707_v2 = vadd.f32 %v10706_v24, %v7975_v43  ;;  %v13565_v56 = vpop.f32.mrb[15].mxu0  ;;  %v13576_v4 = vpop.f32.mrb[13].mxu1  ;;  %13894 = vmatprep.subr.bf16.mxu0 %v19003_v1  ;;  %v14554_v24 = vld [vmem:[%s18693_s3 + $0x9b8] sm:$0xff]   ;;  %v14556_v28 = vld [vmem:[%s18693_s3 + $0x9e0] sm:$0xff]  }
 0x3e4   :  { %v7978_v45 = vpop.f32.mrb[14].mxu1  ;;  %13905 = vmatpush3.bf16.msra.mxu1 %v14542_v19  ;;  %v3697_v50 = vadd.f32 %v17965_v30, %v19488_v42  ;;  %v14559_v4 = vld [vmem:[%s18693_s3 + $0x9d0] sm:$0xff]  }
 0x3e5   :  { %v13577_v26 = vpop.f32.mrb[15].mxu1  ;;  %13906 = vmatprep.subr.bf16.mxu1 %v19003_v1  ;;  %v19489_v45 = vld [vmem:[#allocation76_spill] sm:$0xff] }
 0x3e6   :  { %13895 = vmatpush3.bf16.msra.mxu0 %v14543_v16  ;;  %v3785_v58 = vmax.f32 %v3697_v50, 0.0  ;;  %v14557_v16 = vld [vmem:[%s18693_s3 + $0x9c8] sm:$0xff]  }
 0x3e7   :  { %13896 = vmatprep.subr.bf16.mxu0 %v19003_v1 }
 0x3e8   :  { %13907 = vmatpush3.bf16.msra.mxu1 %v14544_v54  ;;  %v11987_v43 = vpack.c.bf16 %v3785_v58, %v3785_v58  ;;  %v19490_v54 = vmax.f32 %v17001_v7, %v19489_v45  ;;  %v14561_v7 = vld [vmem:[%s18693_s3 + $0x9d8] sm:$0xff]   ;;  %v14568_v58 = vld [vmem:[%s18693_s3 + $0xa30] sm:$0xff]  }
 0x3e9   :  { %13908 = vmatprep.subr.bf16.mxu1 %v19003_v1 }
 0x3ea   :  { %13897 = vmatpush3.bf16.msra.mxu0 %v14545_v62  ;;  %v3698_v41 = vadd.f32 %v17965_v30, %v19490_v54  ;;  %v14560_v62 = vld [vmem:[%s18693_s3 + $0x9f0] sm:$0xff]   ;;  %v14573_v54 = vld [vmem:[%s18693_s3 + $0xa48] sm:$0xff]  }
 0x3eb   :  { %13914 = vmatprep.subr.bf16.mxu0 %v19003_v1 }
 0x3ec   :  { %13909 = vmatpush3.bf16.msra.mxu1 %v14546_v51  ;;  %v19492_v51 = vld [vmem:[#allocation77_spill] sm:$0xff] }
 0x3ed   :  { %13899 = vmatmul.mubr.msk.bf16.vlgmr.msra.gmra.mrb[68].mxu0 %vm4788_vm3, %v11984_v29  ;;  %13926 = vmatprep.subr.bf16.mxu1 %v19003_v1  ;;  %v19493_v12 = vmax.f32 %v19491_v55, %v19492_v51  ;;  %v14575_v55 = vld [vmem:[%s18693_s3 + $0xa50] sm:$0xff]  }
 0x3ee   :  { %13915 = vmatpush3.bf16.msra.mxu0 %v14547_v3  ;;  %13922 = vmatprep.mubr.msk.bf16.mxu0 %vm14600_vm2, %v19003_v1  ;;  %v19500_v51 = vld [vmem:[#allocation80_spill] sm:$0xff] }
 0x3ef   :  { %13911 = vmatmul.mubr.msk.bf16.vlgmr.msra.gmra.mrb[68].mxu1 %vm4788_vm3, %v11985_v35  ;;  %13916 = vmatprep.subr.bf16.mxu0 %v19003_v1  ;;  %v3699_v3 = vadd.f32 %v17965_v30, %v19493_v12  ;;  %v14562_v35 = vld [vmem:[%s18693_s3 + $0x9f8] sm:$0xff]   ;;  %v14563_v30 = vld [vmem:[%s18693_s3 + $0xa00] sm:$0xff]   ;;  %v19501_v12 = vld [vmem:[#allocation79_spill] sm:$0xff] }
 0x3f0   :  { %v8042_v11 = vpop.f32.mrb[16].mxu0  ;;  %13927 = vmatpush3.bf16.msra.mxu1 %v14548_v17  ;;  %13934 = vmatprep.mubr.msk.bf16.mxu1 %vm14600_vm2, %v19003_v1  ;;  %v3786_v17 = vmax.f32 %v3698_v41, 0.0 }
 0x3f1   :  { %v10708_v31 = vadd.f32 %v10707_v2, %v8042_v11  ;;  %v13588_v32 = vpop.f32.mrb[17].mxu0  ;;  %13928 = vmatprep.subr.bf16.mxu1 %v19003_v1 }
 0x3f2   :  { %v8045_v52 = vpop.f32.mrb[18].mxu0  ;;  %v8109_v18 = vpop.f32.mrb[16].mxu1  ;;  %13917 = vmatpush3.bf16.msra.mxu0 %v14549_v60  ;;  %v3787_v60 = vmax.f32 %v3699_v3, 0.0  ;;  %v11988_v11 = vpack.c.bf16 %v3786_v17, %v3786_v17  ;;  %v14565_v32 = vld [vmem:[%s18693_s3 + $0xa08] sm:$0xff]   ;;  %v19502_v3 = vmax.f32 %v19500_v51, %v19501_v12 }
 0x3f3   :  { %v10709_v13 = vadd.f32 %v10708_v31, %v8109_v18  ;;  %v13589_v6 = vpop.f32.mrb[19].mxu0  ;;  %v13600_v36 = vpop.f32.mrb[17].mxu1  ;;  %13918 = vmatprep.subr.bf16.mxu0 %v19003_v1  ;;  %v14566_v18 = vld [vmem:[%s18693_s3 + $0xa28] sm:$0xff]  }
 0x3f4   :  { %v8112_v49 = vpop.f32.mrb[18].mxu1  ;;  %13929 = vmatpush3.bf16.msra.mxu1 %v14550_v57  ;;  %v14564_v57 = vld [vmem:[%s18693_s3 + $0xa20] sm:$0xff]   ;;  %v11989_v31 = vpack.c.bf16 %v3787_v60, %v3787_v60  ;;  %v14567_v6 = vld [vmem:[%s18693_s3 + $0xa10] sm:$0xff]  }
 0x3f5   :  { %v13601_v19 = vpop.f32.mrb[19].mxu1  ;;  %13930 = vmatprep.subr.bf16.mxu1 %v19003_v1  ;;  %v18522_v36 = vld [vmem:[%s18694_s2] ss:$0 sm:$0xff] }
 0x3f6   :  { %13919 = vmatpush3.bf16.msra.mxu0 %v14551_v15  ;;  %v19494_v49 = vld [vmem:[#allocation82_spill] sm:$0xff] }
 0x3f7   :  { %13920 = vmatprep.subr.bf16.mxu0 %v19003_v1 }
 0x3f8   :  { %13931 = vmatpush3.bf16.msra.mxu1 %v14552_v25  ;;  %v19495_v25 = vld [vmem:[#allocation81_spill] sm:$0xff] }
 0x3f9   :  { %13932 = vmatprep.subr.bf16.mxu1 %v19003_v1  ;;  %v19496_v42 = vmax.f32 %v19494_v49, %v19495_v25  ;;  %v14580_v49 = vld [vmem:[%s18693_s3 + $0xaa0] sm:$0xff]  }
 0x3fa   :  { %13921 = vmatpush3.bf16.msra.mxu0 %v14553_v48 }
 0x3fb   :  { %13938 = vmatprep.subr.bf16.mxu0 %v19003_v1  ;;  %v3700_v50 = vadd.f32 %v18522_v36, %v19496_v42  ;;  %v14581_v42 = vld [vmem:[%s18693_s3 + $0xa88] sm:$0xff]  }
 0x3fc   :  { %13933 = vmatpush3.bf16.msra.mxu1 %v14554_v24 }
 0x3fd   :  { %13923 = vmatmul.mubr.msk.bf16.vlgmr.msra.gmra.mrb[72].mxu0 %vm4788_vm3, %v11986_v59  ;;  %13950 = vmatprep.subr.bf16.mxu1 %v19003_v1  ;;  %v19498_v59 = vld [vmem:[#allocation85_spill] sm:$0xff] }
 0x3fe   :  { %13939 = vmatpush3.bf16.msra.mxu0 %v14555_v0  ;;  %13946 = vmatprep.mubr.msk.bf16.mxu0 %vm14600_vm2, %v19003_v1  ;;  %v19497_v0 = vld [vmem:[#allocation86_spill] sm:$0xff] }
 0x3ff   :  { %13935 = vmatmul.mubr.msk.bf16.vlgmr.msra.gmra.mrb[72].mxu1 %vm4788_vm3, %v11987_v43  ;;  %13940 = vmatprep.subr.bf16.mxu0 %v19003_v1 }
 0x400   :  { %v8176_v9 = vpop.f32.mrb[20].mxu0  ;;  %13951 = vmatpush3.bf16.msra.mxu1 %v14556_v28  ;;  %13958 = vmatprep.mubr.msk.bf16.mxu1 %vm14600_vm2, %v19003_v1  ;;  %v19499_v28 = vmax.f32 %v19497_v0, %v19498_v59  ;;  %v14583_v0 = vld [vmem:[%s18693_s3 + $0xa90] sm:$0xff]   ;;  %v3704_v59 = vadd.f32 %v18522_v36, %v3609_v10  ;;  %v14586_v10 = vld [vmem:[%s18693_s3 + $0xab8] sm:$0xff]  }
 0x401   :  { %v10710_v34 = vadd.f32 %v10709_v13, %v8176_v9  ;;  %v13612_v8 = vpop.f32.mrb[21].mxu0  ;;  %13952 = vmatprep.subr.bf16.mxu1 %v19003_v1  ;;  %v14569_v9 = vld [vmem:[%s18693_s3 + $0xa18] sm:$0xff]  }
 0x402   :  { %v8179_v2 = vpop.f32.mrb[22].mxu0  ;;  %v8243_v56 = vpop.f32.mrb[20].mxu1  ;;  %13941 = vmatpush3.bf16.msra.mxu0 %v14557_v16  ;;  %v3701_v43 = vadd.f32 %v18522_v36, %v19499_v28  ;;  %v3792_v44 = vmax.f32 %v3704_v59, 0.0 }
 0x403   :  { %v10711_v37 = vadd.f32 %v10710_v34, %v8243_v56  ;;  %v13613_v21 = vpop.f32.mrb[23].mxu0  ;;  %v13624_v63 = vpop.f32.mrb[21].mxu1  ;;  %13942 = vmatprep.subr.bf16.mxu0 %v19003_v1  ;;  %v14570_v34 = vld [vmem:[%s18693_s3 + $0xa38] sm:$0xff]   ;;  %v14571_v2 = vld [vmem:[%s18693_s3 + $0xa40] sm:$0xff]  }
 0x404   :  { %v8246_v26 = vpop.f32.mrb[22].mxu1  ;;  %13953 = vmatpush3.bf16.msra.mxu1 %v14558_v53  ;;  %v3788_v53 = vmax.f32 %v3700_v50, 0.0  ;;  %v3789_v8 = vmax.f32 %v3701_v43, 0.0  ;;  %v11994_v40 = vpack.c.bf16 %v3792_v44, %v3792_v44 }
 0x405   :  { %v13625_v29 = vpop.f32.mrb[23].mxu1  ;;  %13954 = vmatprep.subr.bf16.mxu1 %v19003_v1 }
 0x406   :  { %13943 = vmatpush3.bf16.msra.mxu0 %v14559_v4  ;;  %v11990_v56 = vpack.c.bf16 %v3788_v53, %v3788_v53  ;;  %v14572_v4 = vld [vmem:[%s18693_s3 + $0xa60] sm:$0xff]   ;;  %v11991_v45 = vpack.c.bf16 %v3789_v8, %v3789_v8  ;;  %v3702_v29 = vadd.f32 %v18522_v36, %v19502_v3  ;;  %v14584_v53 = vld [vmem:[%s18693_s3 + $0xab0] sm:$0xff]  }
 0x407   :  { %13944 = vmatprep.subr.bf16.mxu0 %v19003_v1 }
 0x408   :  { %13955 = vmatpush3.bf16.msra.mxu1 %v14560_v62 }
 0x409   :  { %13956 = vmatprep.subr.bf16.mxu1 %v19003_v1 }
 0x40a   :  { %13945 = vmatpush3.bf16.msra.mxu0 %v14561_v7 }
 0x40b   :  { %13962 = vmatprep.subr.bf16.mxu0 %v19003_v1 }
 0x40c   :  { %13957 = vmatpush3.bf16.msra.mxu1 %v14562_v35 }
 0x40d   :  { %13947 = vmatmul.mubr.msk.bf16.vlgmr.msra.gmra.mrb[76].mxu0 %vm4788_vm3, %v11988_v11  ;;  %13974 = vmatprep.subr.bf16.mxu1 %v19003_v1  ;;  %v19503_v11 = vld [vmem:[#allocation84_spill] sm:$0xff] }
 0x40e   :  { %13963 = vmatpush3.bf16.msra.mxu0 %v14563_v30  ;;  %13970 = vmatprep.mubr.msk.bf16.mxu0 %vm14600_vm2, %v19003_v1  ;;  %v14576_v30 = vld [vmem:[%s18693_s3 + $0xa70] sm:$0xff]  }
 0x40f   :  { %13959 = vmatmul.mubr.msk.bf16.vlgmr.msra.gmra.mrb[76].mxu1 %vm4788_vm3, %v11989_v31  ;;  %13964 = vmatprep.subr.bf16.mxu0 %v19003_v1 }
 0x410   :  { %v8310_v52 = vpop.f32.mrb[24].mxu0  ;;  %13975 = vmatpush3.bf16.msra.mxu1 %v14564_v57  ;;  %13982 = vmatprep.mubr.msk.bf16.mxu1 %vm14600_vm2, %v19003_v1  ;;  %v19504_v57 = vld [vmem:[#allocation83_spill] sm:$0xff] }
 0x411   :  { %v10712_v15 = vadd.f32 %v10711_v37, %v8310_v52  ;;  %v13636_v23 = vpop.f32.mrb[25].mxu0  ;;  %13976 = vmatprep.subr.bf16.mxu1 %v19003_v1  ;;  %v14574_v37 = vld [vmem:[%s18693_s3 + $0xa68] sm:$0xff]   ;;  %v19505_v31 = vmax.f32 %v19503_v11, %v19504_v57 }
 0x412   :  { %v8313_v39 = vpop.f32.mrb[26].mxu0  ;;  %v8377_v13 = vpop.f32.mrb[24].mxu1  ;;  %13965 = vmatpush3.bf16.msra.mxu0 %v14565_v32  ;;  %v14578_v23 = vld [vmem:[%s18693_s3 + $0xa78] sm:$0xff]  }
 0x413   :  { %v10713_v19 = vadd.f32 %v10712_v15, %v8377_v13  ;;  %v13637_v48 = vpop.f32.mrb[27].mxu0  ;;  %v13648_v33 = vpop.f32.mrb[25].mxu1  ;;  %13966 = vmatprep.subr.bf16.mxu0 %v19003_v1  ;;  %v3703_v32 = vadd.f32 %v18522_v36, %v19505_v31  ;;  %v3790_v15 = vmax.f32 %v3702_v29, 0.0  ;;  %v14579_v13 = vld [vmem:[%s18693_s3 + $0xa80] sm:$0xff]   ;;  %v14592_v29 = vld [vmem:[%s18693_s3 + $0xaf0] sm:$0xff]  }
 0x414   :  { %v8380_v24 = vpop.f32.mrb[26].mxu1  ;;  %13977 = vmatpush3.bf16.msra.mxu1 %v14566_v18  ;;  %v14577_v18 = vld [vmem:[%s18693_s3 + $0xa58] sm:$0xff]  }
 0x415   :  { %v13649_v16 = vpop.f32.mrb[27].mxu1  ;;  %13978 = vmatprep.subr.bf16.mxu1 %v19003_v1  ;;  %v3791_v39 = vmax.f32 %v3703_v32, 0.0 }
 0x416   :  { %13967 = vmatpush3.bf16.msra.mxu0 %v14567_v6  ;;  %v11992_v6 = vpack.c.bf16 %v3790_v15, %v3790_v15 }
 0x417   :  { %13968 = vmatprep.subr.bf16.mxu0 %v19003_v1  ;;  %v11993_v25 = vpack.c.bf16 %v3791_v39, %v3791_v39 }
 0x418   :  { %13979 = vmatpush3.bf16.msra.mxu1 %v14568_v58 }
 0x419   :  { %13980 = vmatprep.subr.bf16.mxu1 %v19003_v1 }
 0x41a   :  { %13969 = vmatpush3.bf16.msra.mxu0 %v14569_v9 }
 0x41b   :  { %13986 = vmatprep.subr.bf16.mxu0 %v19003_v1 }
 0x41c   :  { %13981 = vmatpush3.bf16.msra.mxu1 %v14570_v34  ;;  %v3705_v34 = vadd.f32 %v18522_v36, %v3610_v20  ;;  %v14588_v20 = vld [vmem:[%s18693_s3 + $0xae0] sm:$0xff]  }
 0x41d   :  { %13971 = vmatmul.mubr.msk.bf16.vlgmr.msra.gmra.mrb[80].mxu0 %vm4788_vm3, %v11990_v56  ;;  %13998 = vmatprep.subr.bf16.mxu1 %v19003_v1 }
 0x41e   :  { %13987 = vmatpush3.bf16.msra.mxu0 %v14571_v2  ;;  %13994 = vmatprep.mubr.msk.bf16.mxu0 %vm14600_vm2, %v19003_v1  ;;  %v3793_v2 = vmax.f32 %v3705_v34, 0.0 }
 0x41f   :  { %13983 = vmatmul.mubr.msk.bf16.vlgmr.msra.gmra.mrb[80].mxu1 %vm4788_vm3, %v11991_v45  ;;  %13988 = vmatprep.subr.bf16.mxu0 %v19003_v1 }
 0x420   :  { %v8444_v41 = vpop.f32.mrb[28].mxu0  ;;  %13999 = vmatpush3.bf16.msra.mxu1 %v14572_v4  ;;  %14006 = vmatprep.mubr.msk.bf16.mxu1 %vm14600_vm2, %v19003_v1  ;;  %v11995_v56 = vpack.c.bf16 %v3793_v2, %v3793_v2  ;;  %v14589_v4 = vld [vmem:[%s18693_s3 + $0xac8] sm:$0xff]  }
 0x421   :  { %v10714_v21 = vadd.f32 %v10713_v19, %v8444_v41  ;;  %v13660_v63 = vpop.f32.mrb[29].mxu0  ;;  %14000 = vmatprep.subr.bf16.mxu1 %v19003_v1  ;;  %v14582_v19 = vld [vmem:[%s18693_s3 + $0xaa8] sm:$0xff]  }
 0x422   :  { %v8447_v26 = vpop.f32.mrb[30].mxu0  ;;  %v8511_v62 = vpop.f32.mrb[28].mxu1  ;;  %13989 = vmatpush3.bf16.msra.mxu0 %v14573_v54  ;;  %v14590_v54 = vld [vmem:[%s18693_s3 + $0xae8] sm:$0xff]  }
 0x423   :  { %v10715_v7 = vadd.f32 %v10714_v21, %v8511_v62  ;;  %v13661_v17 = vpop.f32.mrb[31].mxu0  ;;  %v13672_v35 = vpop.f32.mrb[29].mxu1  ;;  %13990 = vmatprep.subr.bf16.mxu0 %v19003_v1  ;;  %v14591_v26 = vld [vmem:[%s18693_s3 + $0xad0] sm:$0xff]   ;;  %v3706_v62 = vadd.f32 %v18522_v36, %v3611_v5  ;;  %v14594_v5 = vld [vmem:[%s18693_s3 + $0xaf8] sm:$0xff]  }
 0x424   :  { %v8514_v60 = vpop.f32.mrb[30].mxu1  ;;  %14001 = vmatpush3.bf16.msra.mxu1 %v14574_v37 }
 0x425   :  { %v13673_v52 = vpop.f32.mrb[31].mxu1  ;;  %14002 = vmatprep.subr.bf16.mxu1 %v19003_v1  ;;  %v3794_v46 = vmax.f32 %v3706_v62, 0.0 }
 0x426   :  { %13991 = vmatpush3.bf16.msra.mxu0 %v14575_v55 }
 0x427   :  { %13992 = vmatprep.subr.bf16.mxu0 %v19003_v1  ;;  %v11996_v14 = vpack.c.bf16 %v3794_v46, %v3794_v46 }
 0x428   :  { %14003 = vmatpush3.bf16.msra.mxu1 %v14576_v30 }
 0x429   :  { %14004 = vmatprep.subr.bf16.mxu1 %v19003_v1 }
 0x42a   :  { %13993 = vmatpush3.bf16.msra.mxu0 %v14577_v18 }
 0x42b   :  { %14010 = vmatprep.subr.bf16.mxu0 %v19003_v1 }
 0x42c   :  { %14005 = vmatpush3.bf16.msra.mxu1 %v14578_v23 }
 0x42d   :  { %13995 = vmatmul.mubr.msk.bf16.vlgmr.msra.gmra.mrb[84].mxu0 %vm4788_vm3, %v11992_v6  ;;  %14022 = vmatprep.subr.bf16.mxu1 %v19003_v1 }
 0x42e   :  { %14011 = vmatpush3.bf16.msra.mxu0 %v14579_v13  ;;  %14018 = vmatprep.mubr.msk.bf16.mxu0 %vm14600_vm2, %v19003_v1 }
 0x42f   :  { %14007 = vmatmul.mubr.msk.bf16.vlgmr.msra.gmra.mrb[84].mxu1 %vm4788_vm3, %v11993_v25  ;;  %14012 = vmatprep.subr.bf16.mxu0 %v19003_v1 }
 0x430   :  { %v8578_v50 = vpop.f32.mrb[32].mxu0  ;;  %14023 = vmatpush3.bf16.msra.mxu1 %v14580_v49  ;;  %14030 = vmatprep.mubr.msk.bf16.mxu1 %vm14600_vm2, %v19003_v1 }
 0x431   :  { %v10716_v48 = vadd.f32 %v10715_v7, %v8578_v50  ;;  %v13684_v33 = vpop.f32.mrb[33].mxu0  ;;  %14024 = vmatprep.subr.bf16.mxu1 %v19003_v1  ;;  %v3707_v7 = vadd.f32 %v18522_v36, %v3612_v47 }
 0x432   :  { %v8581_v24 = vpop.f32.mrb[34].mxu0  ;;  %v8645_v58 = vpop.f32.mrb[32].mxu1  ;;  %14013 = vmatpush3.bf16.msra.mxu0 %v14581_v42 }
 0x433   :  { %v10717_v28 = vadd.f32 %v10716_v48, %v8645_v58  ;;  %v13685_v43 = vpop.f32.mrb[35].mxu0  ;;  %v13696_v16 = vpop.f32.mrb[33].mxu1  ;;  %14014 = vmatprep.subr.bf16.mxu0 %v19003_v1  ;;  %v3795_v35 = vmax.f32 %v3707_v7, 0.0 }
 0x434   :  { %v8648_v9 = vpop.f32.mrb[34].mxu1  ;;  %14025 = vmatpush3.bf16.msra.mxu1 %v14582_v19 }
 0x435   :  { %v13697_v8 = vpop.f32.mrb[35].mxu1  ;;  %14026 = vmatprep.subr.bf16.mxu1 %v19003_v1  ;;  %v11997_v22 = vpack.c.bf16 %v3795_v35, %v3795_v35 }
 0x436   :  { %14015 = vmatpush3.bf16.msra.mxu0 %v14583_v0 }
 0x437   :  { %14016 = vmatprep.subr.bf16.mxu0 %v19003_v1 }
 0x438   :  { %14027 = vmatpush3.bf16.msra.mxu1 %v14584_v53 }
 0x439   :  { %14028 = vmatprep.subr.bf16.mxu1 %v19003_v1 }
 0x43a   :  { %14017 = vmatpush3.bf16.msra.mxu0 %v14585_v38 }
 0x43b   :  { %14034 = vmatprep.subr.bf16.mxu0 %v19003_v1 }
 0x43c   :  { %14029 = vmatpush3.bf16.msra.mxu1 %v14586_v10 }
 0x43d   :  { %14019 = vmatmul.mubr.msk.bf16.vlgmr.msra.gmra.mrb[88].mxu0 %vm4788_vm3, %v11994_v40  ;;  %14046 = vmatprep.subr.bf16.mxu1 %v19003_v1 }
 0x43e   :  { %14035 = vmatpush3.bf16.msra.mxu0 %v14587_v27  ;;  %14042 = vmatprep.mubr.msk.bf16.mxu0 %vm14600_vm2, %v19003_v1 }
 0x43f   :  { %14031 = vmatmul.mubr.msk.bf16.vlgmr.msra.gmra.mrb[88].mxu1 %vm4788_vm3, %v11995_v56  ;;  %14036 = vmatprep.subr.bf16.mxu0 %v19003_v1 }
 0x440   :  { %v8712_v45 = vpop.f32.mrb[36].mxu0  ;;  %14047 = vmatpush3.bf16.msra.mxu1 %v14588_v20  ;;  %14054 = vmatprep.mubr.msk.bf16.mxu1 %vm14600_vm2, %v19003_v1 }
 0x441   :  { %v10718_v41 = vadd.f32 %v10717_v28, %v8712_v45  ;;  %v13708_v37 = vpop.f32.mrb[37].mxu0  ;;  %14048 = vmatprep.subr.bf16.mxu1 %v19003_v1 }
 0x442   :  { %v8715_v21 = vpop.f32.mrb[38].mxu0  ;;  %v8779_v63 = vpop.f32.mrb[36].mxu1  ;;  %14037 = vmatpush3.bf16.msra.mxu0 %v14589_v4 }
 0x443   :  { %v10719_v55 = vadd.f32 %v10718_v41, %v8779_v63  ;;  %v13709_v51 = vpop.f32.mrb[39].mxu0  ;;  %v13720_v12 = vpop.f32.mrb[37].mxu1  ;;  %14038 = vmatprep.subr.bf16.mxu0 %v19003_v1 }
 0x444   :  { %v8782_v3 = vpop.f32.mrb[38].mxu1  ;;  %14049 = vmatpush3.bf16.msra.mxu1 %v14590_v54 }
 0x445   :  { %v13721_v17 = vpop.f32.mrb[39].mxu1  ;;  %14050 = vmatprep.subr.bf16.mxu1 %v19003_v1 }
 0x446   :  { %14039 = vmatpush3.bf16.msra.mxu0 %v14591_v26 }
 0x447   :  { %14040 = vmatprep.subr.bf16.mxu0 %v19003_v1 }
 0x448   :  { %14051 = vmatpush3.bf16.msra.mxu1 %v14592_v29 }
 0x449   :  { %14052 = vmatprep.subr.bf16.mxu1 %v19003_v1 }
 0x44a   :  { %14041 = vmatpush3.bf16.msra.mxu0 %v14593_v61 }
 0x44c   :  { %14053 = vmatpush3.bf16.msra.mxu1 %v14594_v5 }
 0x44d   :  { %14043 = vmatmul.mubr.msk.bf16.vlgmr.msra.gmra.mrb[92].mxu0 %vm4788_vm3, %v11996_v14 }
 0x44f   :  { %14055 = vmatmul.mubr.msk.bf16.vlgmr.msra.gmra.mrb[92].mxu1 %vm4788_vm3, %v11997_v22 }
 0x450   :  { %v8846_v47 = vpop.f32.mrb[40].mxu0 }
 0x451   :  { %v10720_v36 = vadd.f32 %v10719_v55, %v8846_v47  ;;  %v13732_v60 = vpop.f32.mrb[41].mxu0 }
 0x452   :  { %v8849_v30 = vpop.f32.mrb[42].mxu0  ;;  %v8913_v11 = vpop.f32.mrb[40].mxu1 }
 0x453   :  { %v10721_v57 = vadd.f32 %v10720_v36, %v8913_v11  ;;  %v13733_v31 = vpop.f32.mrb[43].mxu0  ;;  %v13744_v32 = vpop.f32.mrb[41].mxu1 }
 0x454   :  { %v8916_v52 = vpop.f32.mrb[42].mxu1 }
 0x455   :  { %v13745_v18 = vpop.f32.mrb[43].mxu1 }
 0x460   :  { %v8980_v15 = vpop.f32.mrb[44].mxu0 }
 0x461   :  { %v10722_v1 = vadd.f32 %v10721_v57, %v8980_v15  ;;  %v13756_v23 = vpop.f32.mrb[45].mxu0 }
 0x462   :  { %v8983_v39 = vpop.f32.mrb[46].mxu0  ;;  %v9047_v13 = vpop.f32.mrb[44].mxu1 }
 0x463   :  { %v10723_v6 = vadd.f32 %v10722_v1, %v9047_v13  ;;  %v13757_v49 = vpop.f32.mrb[47].mxu0  ;;  %v13768_v25 = vpop.f32.mrb[45].mxu1 }
 0x464   :  { %v9050_v42 = vpop.f32.mrb[46].mxu1 }
 0x465   :  { %v13769_v50 = vpop.f32.mrb[47].mxu1 }
 0x470   :  { %v9114_v19 = vpop.f32.mrb[48].mxu0 }
 0x471   :  { %v10724_v48 = vadd.f32 %v10723_v6, %v9114_v19  ;;  %v13780_v33 = vpop.f32.mrb[49].mxu0 }
 0x472   :  { %v9117_v24 = vpop.f32.mrb[50].mxu0  ;;  %v9181_v58 = vpop.f32.mrb[48].mxu1 }
 0x473   :  { %v10725_v0 = vadd.f32 %v10724_v48, %v9181_v58  ;;  %v13781_v59 = vpop.f32.mrb[51].mxu0  ;;  %v13792_v28 = vpop.f32.mrb[49].mxu1 }
 0x474   :  { %v9184_v43 = vpop.f32.mrb[50].mxu1 }
 0x475   :  { %v13793_v16 = vpop.f32.mrb[51].mxu1 }
 0x480   :  { %v9248_v9 = vpop.f32.mrb[52].mxu0 }
 0x481   :  { %v10726_v53 = vadd.f32 %v10725_v0, %v9248_v9  ;;  %v13804_v34 = vpop.f32.mrb[53].mxu0 }
 0x482   :  { %v9251_v8 = vpop.f32.mrb[54].mxu0  ;;  %v9315_v38 = vpop.f32.mrb[52].mxu1 }
 0x483   :  { %v10727_v44 = vadd.f32 %v10726_v53, %v9315_v38  ;;  %v13805_v10 = vpop.f32.mrb[55].mxu0  ;;  %v13816_v2 = vpop.f32.mrb[53].mxu1 }
 0x484   :  { %v9318_v27 = vpop.f32.mrb[54].mxu1 }
 0x485   :  { %v13817_v40 = vpop.f32.mrb[55].mxu1 }
 0x490   :  { %v9382_v20 = vpop.f32.mrb[56].mxu0 }
 0x491   :  { %v10728_v56 = vadd.f32 %v10727_v44, %v9382_v20  ;;  %v13828_v4 = vpop.f32.mrb[57].mxu0 }
 0x492   :  { %v9385_v45 = vpop.f32.mrb[58].mxu0  ;;  %v9449_v54 = vpop.f32.mrb[56].mxu1 }
 0x493   :  { %v10729_v41 = vadd.f32 %v10728_v56, %v9449_v54  ;;  %v13829_v37 = vpop.f32.mrb[59].mxu0  ;;  %v13840_v21 = vpop.f32.mrb[57].mxu1 }
 0x494   :  { %v9452_v63 = vpop.f32.mrb[58].mxu1 }
 0x495   :  { %v13841_v26 = vpop.f32.mrb[59].mxu1 }
 0x4a0   :  { %v9516_v62 = vpop.f32.mrb[60].mxu0 }
 0x4a1   :  { %v10730_v55 = vadd.f32 %v10729_v41, %v9516_v62  ;;  %v13852_v51 = vpop.f32.mrb[61].mxu0 }
 0x4a2   :  { %v9519_v12 = vpop.f32.mrb[62].mxu0  ;;  %v9583_v3 = vpop.f32.mrb[60].mxu1 }
 0x4a3   :  { %v10731_v29 = vadd.f32 %v10730_v55, %v9583_v3  ;;  %v13853_v7 = vpop.f32.mrb[63].mxu0  ;;  %v13864_v17 = vpop.f32.mrb[61].mxu1 }
 0x4a4   :  { %v9586_v61 = vpop.f32.mrb[62].mxu1 }
 0x4a5   :  { %v13865_v46 = vpop.f32.mrb[63].mxu1 }
 0x4b0   :  { %v9650_v5 = vpop.f32.mrb[64].mxu0 }
 0x4b1   :  { %v10732_v35 = vadd.f32 %v10731_v29, %v9650_v5  ;;  %v13876_v14 = vpop.f32.mrb[65].mxu0 }
 0x4b2   :  { %v9653_v22 = vpop.f32.mrb[66].mxu0  ;;  %v9717_v47 = vpop.f32.mrb[64].mxu1 }
 0x4b3   :  { %v10733_v36 = vadd.f32 %v10732_v35, %v9717_v47  ;;  %v13877_v60 = vpop.f32.mrb[67].mxu0  ;;  %v13888_v30 = vpop.f32.mrb[65].mxu1 }
 0x4b4   :  { %v9720_v11 = vpop.f32.mrb[66].mxu1 }
 0x4b5   :  { %v13889_v57 = vpop.f32.mrb[67].mxu1 }
 0x4c0   :  { %v9784_v31 = vpop.f32.mrb[68].mxu0 }
 0x4c1   :  { %v10734_v32 = vadd.f32 %v10733_v36, %v9784_v31  ;;  %v13900_v52 = vpop.f32.mrb[69].mxu0 }
 0x4c2   :  { %v9787_v18 = vpop.f32.mrb[70].mxu0  ;;  %v9851_v15 = vpop.f32.mrb[68].mxu1 }
 0x4c3   :  { %v10735_v1 = vadd.f32 %v10734_v32, %v9851_v15  ;;  %v13901_v23 = vpop.f32.mrb[71].mxu0  ;;  %v13912_v39 = vpop.f32.mrb[69].mxu1  ;;  %v11909_v32 = vld [vmem:[%s18695_s4] ss:$0 sm:$0xff] }
 0x4c4   :  { %v9854_v13 = vpop.f32.mrb[70].mxu1 }
 0x4c5   :  { %v13913_v6 = vpop.f32.mrb[71].mxu1 }
 0x4d0   :  { %v9918_v49 = vpop.f32.mrb[72].mxu0 }
 0x4d1   :  { %v10736_v25 = vadd.f32 %v10735_v1, %v9918_v49  ;;  %v13924_v42 = vpop.f32.mrb[73].mxu0 }
 0x4d2   :  { %v9921_v50 = vpop.f32.mrb[74].mxu0  ;;  %v9985_v19 = vpop.f32.mrb[72].mxu1 }
 0x4d3   :  { %v10737_v48 = vadd.f32 %v10736_v25, %v9985_v19  ;;  %v13925_v33 = vpop.f32.mrb[75].mxu0  ;;  %v13936_v24 = vpop.f32.mrb[73].mxu1 }
 0x4d4   :  { %v9988_v58 = vpop.f32.mrb[74].mxu1 }
 0x4d5   :  { %v13937_v0 = vpop.f32.mrb[75].mxu1 }
 0x4e0   :  { %v10052_v59 = vpop.f32.mrb[76].mxu0 }
 0x4e1   :  { %v10738_v28 = vadd.f32 %v10737_v48, %v10052_v59  ;;  %v13948_v43 = vpop.f32.mrb[77].mxu0 }
 0x4e2   :  { %v10055_v16 = vpop.f32.mrb[78].mxu0  ;;  %v10119_v9 = vpop.f32.mrb[76].mxu1 }
 0x4e3   :  { %v10739_v53 = vadd.f32 %v10738_v28, %v10119_v9  ;;  %v13949_v34 = vpop.f32.mrb[79].mxu0  ;;  %v13960_v8 = vpop.f32.mrb[77].mxu1 }
 0x4e4   :  { %v10122_v38 = vpop.f32.mrb[78].mxu1 }
 0x4e5   :  { %v13961_v44 = vpop.f32.mrb[79].mxu1 }
 0x4f0   :  { %v10186_v10 = vpop.f32.mrb[80].mxu0 }
 0x4f1   :  { %v10740_v2 = vadd.f32 %v10739_v53, %v10186_v10  ;;  %v13972_v27 = vpop.f32.mrb[81].mxu0 }
 0x4f2   :  { %v10189_v40 = vpop.f32.mrb[82].mxu0  ;;  %v10253_v20 = vpop.f32.mrb[80].mxu1 }
 0x4f3   :  { %v10741_v56 = vadd.f32 %v10740_v2, %v10253_v20  ;;  %v13973_v4 = vpop.f32.mrb[83].mxu0  ;;  %v13984_v45 = vpop.f32.mrb[81].mxu1 }
 0x4f4   :  { %v10256_v54 = vpop.f32.mrb[82].mxu1 }
 0x4f5   :  { %v13985_v41 = vpop.f32.mrb[83].mxu1 }
 0x500   :  { %v10320_v37 = vpop.f32.mrb[84].mxu0 }
 0x501   :  { %v10742_v21 = vadd.f32 %v10741_v56, %v10320_v37  ;;  %v13996_v63 = vpop.f32.mrb[85].mxu0 }
 0x502   :  { %v10323_v26 = vpop.f32.mrb[86].mxu0  ;;  %v10387_v62 = vpop.f32.mrb[84].mxu1 }
 0x503   :  { %v10743_v55 = vadd.f32 %v10742_v21, %v10387_v62  ;;  %v13997_v51 = vpop.f32.mrb[87].mxu0  ;;  %v14008_v12 = vpop.f32.mrb[85].mxu1 }
 0x504   :  { %v10390_v3 = vpop.f32.mrb[86].mxu1 }
 0x505   :  { %v14009_v29 = vpop.f32.mrb[87].mxu1 }
 0x510   :  { %v10454_v7 = vpop.f32.mrb[88].mxu0 }
 0x511   :  { %v10744_v17 = vadd.f32 %v10743_v55, %v10454_v7  ;;  %v14020_v61 = vpop.f32.mrb[89].mxu0 }
 0x512   :  { %v10457_v46 = vpop.f32.mrb[90].mxu0  ;;  %v10521_v5 = vpop.f32.mrb[88].mxu1 }
 0x513   :  { %v10745_v35 = vadd.f32 %v10744_v17, %v10521_v5  ;;  %v14021_v14 = vpop.f32.mrb[91].mxu0  ;;  %v14032_v22 = vpop.f32.mrb[89].mxu1 }
 0x514   :  { %v10524_v47 = vpop.f32.mrb[90].mxu1 }
 0x515   :  { %v14033_v36 = vpop.f32.mrb[91].mxu1 }
 0x520   :  { %v10588_v60 = vpop.f32.mrb[92].mxu0 }
 0x521   :  { %v10746_v30 = vadd.f32 %v10745_v35, %v10588_v60  ;;  %v14044_v11 = vpop.f32.mrb[93].mxu0 }
 0x522   :  { %v10591_v57 = vpop.f32.mrb[94].mxu0  ;;  %v10655_v31 = vpop.f32.mrb[92].mxu1 }
 0x523   :  { %v10747_v52 = vadd.f32 %v10746_v30, %v10655_v31  ;;  %v14045_v18 = vpop.f32.mrb[95].mxu0  ;;  %v14056_v15 = vpop.f32.mrb[93].mxu1 }
 0x524   :  { %v10658_v1 = vpop.f32.mrb[94].mxu1 }
 0x525   :  { %v10755_v23 = vadd.f32 %v11909_v32, %v10747_v52  ;;  %v14057_v39 = vpop.f32.mrb[95].mxu1 }
 0x527   :  { %10756 = vst [vmem:[%s18696_s5] sm:$0xff] %v10755_v23 }

</bundles_post_ra>
